<compile_context>
chip_gen: v7x
topology: tpu7x:2x2x1
jax: 0.10.0
libtpu: 0.0.40
codegen_flags: <defaults>
</compile_context>

<pallas_src>
import functools

import jax
import jax.numpy as jnp
from jax import lax
from jax.experimental import pallas as pl
from jax.experimental.pallas import tpu as pltpu


def _afg_kernel(x_ref, w_sa_ref, w1_ref, w1b_ref, bias_ref, o_ref, *, H, W):
    """One grid step = one batch element; everything lane-dense on H*W.

    x_ref:    (1, C, H*W)   input image, spatial flattened
    w_sa_ref: (C, 9)        depthwise 3x3 weights, tap-minor
    w1_ref:   (C*9, C)      AFG 1x1-conv weight
    w1b_ref:  (C*9, C)      W1 @ band  (conv_ca folded through the 1x1 conv)
    bias_ref: (C*9, 1)      W1 @ (b_sa + b_ca) + b1  (all biases pre-folded)
    o_ref:    (1, C*9, H*W)
    """
    C = x_ref.shape[1]
    HW = x_ref.shape[2]
    x = x_ref[0]                                        # (C, HW) f32

    # Flat-spatial lane index / column index, computed once per grid step.
    p = lax.broadcasted_iota(jnp.int32, (1, HW), 1)
    if (W & (W - 1)) == 0:
        col = jnp.bitwise_and(p, W - 1)                 # p % W, power-of-two fast path
    else:
        col = p % W  # TODO(synk): non-pow2 W relies on vector int-mod lowering
    # Border-validity base masks, hoisted out of the tap loop (built once,
    # reused by all 8 off-center taps -> no duplicated iota/compare ops).
    row_ok = {-1: p >= W, 0: None, 1: p < (H - 1) * W}
    col_ok = {-1: col >= 1, 0: None, 1: col <= W - 2}

    # --- SEKG.conv_sa: depthwise 3x3, stride 1, padding 1 (groups = C) ------
    # sa[c, p] = sum_{a,b} w[c, 3(a+1)+(b+1)] * x[c, p + a*W + b]  (masked at
    # the image border).  Rolls go to the XLU, masks/FMAs to the VPU, leaving
    # the MXU free for the 1x1-conv matmul below.
    sa = x * w_sa_ref[:, 4:5]                           # center tap: no roll, no mask
    for a in (-1, 0, 1):
        for b in (-1, 0, 1):
            if a == 0 and b == 0:
                continue
            t = (a + 1) * 3 + (b + 1)
            s = a * W + b
            shifted = pltpu.roll(x, shift=(-s) % HW, axis=1)
            m = row_ok[a]
            if col_ok[b] is not None:
                m = col_ok[b] if m is None else jnp.logical_and(m, col_ok[b])
            shifted = jnp.where(m, shifted, 0.0)
            sa = sa + shifted * w_sa_ref[:, t:t + 1]    # (C,1) lane-broadcast FMA

    # --- channel branch + all biases, pre-folded through the 1x1 conv -------
    y = jnp.sum(x, axis=1, keepdims=True) * (1.0 / HW)                    # (C, 1)
    colvec = jnp.dot(w1b_ref[...], y, preferred_element_type=jnp.float32)
    colvec = colvec + bias_ref[...]                                       # (CO, 1)

    # --- AFG.conv: 1x1 conv C -> C*9 as one lane-dense MXU matmul -----------
    out = jnp.dot(w1_ref[...], sa, preferred_element_type=jnp.float32)    # (CO, HW)
    o_ref[0] = (out + colvec).astype(o_ref.dtype)


def afg_forward(x, w_sa, b_sa, w_ca, b_ca, w1, b1, *, kernel_size=3):
    """Pallas equivalent of AFG.forward.

    x:    (B, C, H, W)
    w_sa: (C, 1, 3, 3) SEKG.conv_sa weight (depthwise),   b_sa: (C,)
    w_ca: (1, 1, k)    SEKG.conv_ca weight,               b_ca: (1,)
    w1:   (C*k*k, C, 1, 1) AFG.conv weight,               b1:   (C*k*k,)
    returns: (B, C, k*k, H, W)
    """
    B, C, H, W = x.shape
    K2 = kernel_size * kernel_size
    HW = H * W
    CO = C * K2

    # Free, layout-only reshapes (no transposes) at the boundary.
    x_flat = x.reshape(B, C, HW)
    w_sa_flat = w_sa.reshape(C, 9).astype(jnp.float32)
    w1_mat = w1.reshape(CO, C).astype(jnp.float32)

    # conv_ca on the pooled (C,) vector == multiply by a banded (C, C) matrix.
    # Fold it (and every bias) through the 1x1 conv so the kernel only needs
    # one big matmul plus one tiny matvec per image.
    pad = (kernel_size - 1) // 2
    w_ca_flat = w_ca.reshape(-1).astype(jnp.float32)
    band = jnp.zeros((C, C), jnp.float32)
    for t in range(kernel_size):
        band = band + w_ca_flat[t] * jnp.eye(C, k=t - pad, dtype=jnp.float32)
    w1_band = jnp.dot(w1_mat, band, precision=lax.Precision.HIGHEST)        # (CO, C)
    b_eff = (b_sa.reshape(C, 1) + b_ca.reshape(1, 1)).astype(jnp.float32)    # (C, 1)
    bias_out = (jnp.dot(w1_mat, b_eff, precision=lax.Precision.HIGHEST)
                + b1.reshape(CO, 1).astype(jnp.float32))                     # (CO, 1)

    kernel = functools.partial(_afg_kernel, H=H, W=W)

    out_flat = pl.pallas_call(
        kernel,
        out_shape=jax.ShapeDtypeStruct((B, CO, HW), x.dtype),
        grid_spec=pltpu.PrefetchScalarGridSpec(
            num_scalar_prefetch=0,
            grid=(B,),
            in_specs=[
                pl.BlockSpec((1, C, HW), lambda b: (b, 0, 0)),
                pl.BlockSpec((C, 9), lambda b: (0, 0)),
                pl.BlockSpec((CO, C), lambda b: (0, 0)),
                pl.BlockSpec((CO, C), lambda b: (0, 0)),
                pl.BlockSpec((CO, 1), lambda b: (0, 0)),
            ],
            out_specs=pl.BlockSpec((1, CO, HW), lambda b: (b, 0, 0)),
        ),
        compiler_params=pltpu.CompilerParams(
            dimension_semantics=("parallel",)),
    )(x_flat, w_sa_flat, w1_mat, w1_band, bias_out)

    # Free contiguous split: (B, C*9, H*W) -> (B, C, 9, H, W)  (matches torch reshape).
    return out_flat.reshape(B, C, K2, H, W)


if __name__ == "__main__":
    key = jax.random.PRNGKey(0)
    ks = jax.random.split(key, 7)

    # AFG(in_channels=64, kernel_size=3); small input (B, C, H, W) = (2, 64, 16, 16)
    B, C, H, W = 2, 64, 16, 16
    ksize = 3
    K2 = ksize * ksize

    x = jax.random.normal(ks[0], (B, C, H, W), dtype=jnp.float32)
    # SEKG.conv_sa: depthwise Conv2d(C, C, 3, padding=1, groups=C)
    w_sa = jax.random.normal(ks[1], (C, 1, 3, 3), jnp.float32) * (2.0 / 9.0) ** 0.5
    b_sa = jax.random.normal(ks[2], (C,), jnp.float32) * 0.1
    # SEKG.conv_ca: Conv1d(1, 1, 3, padding=1)
    w_ca = jax.random.normal(ks[3], (1, 1, ksize), jnp.float32) * (2.0 / 3.0) ** 0.5
    b_ca = jax.random.normal(ks[4], (1,), jnp.float32) * 0.1
    # AFG.conv: Conv2d(C, C*9, 1)
    w1 = jax.random.normal(ks[5], (C * K2, C, 1, 1), jnp.float32) * (2.0 / C) ** 0.5
    b1 = jax.random.normal(ks[6], (C * K2,), jnp.float32) * 0.1

    afg = jax.jit(afg_forward)
    out = afg(x, w_sa, b_sa, w_ca, b_ca, w1, b1)
    out = jax.block_until_ready(out)
    assert out.shape == (B, C, K2, H, W)

    # --- reference (plain XLA), mirrors the PyTorch forward exactly ---------
    sa_ref = lax.conv_general_dilated(
        x, w_sa, (1, 1), [(1, 1), (1, 1)],
        dimension_numbers=("NCHW", "OIHW", "NCHW"),
        feature_group_count=C, precision=lax.Precision.HIGHEST,
    ) + b_sa.reshape(1, C, 1, 1)
    y = jnp.mean(x, axis=(2, 3))                               # (B, C)
    yp = jnp.pad(y, ((0, 0), (1, 1)))
    ca_ref = (w_ca[0, 0, 0] * yp[:, :C]
              + w_ca[0, 0, 1] * yp[:, 1:C + 1]
              + w_ca[0, 0, 2] * yp[:, 2:]) + b_ca[0]
    sekg_ref = sa_ref + ca_ref.reshape(B, C, 1, 1)
    conv_ref = lax.conv_general_dilated(
        sekg_ref, w1, (1, 1), [(0, 0), (0, 0)],
        dimension_numbers=("NCHW", "OIHW", "NCHW"),
        precision=lax.Precision.HIGHEST,
    ) + b1.reshape(1, C * K2, 1, 1)
    ref = conv_ref.reshape(B, C, K2, H, W)

    assert jnp.allclose(out, ref, atol=5e-3, rtol=5e-3), float(jnp.max(jnp.abs(out - ref)))

    print("KERNEL_OK")
</pallas_src>

<mosaic_0001>
module attributes {stable_mosaic.version = 11 : i64} {
  func.func @_afg_kernel(%arg0: i32, %arg1: memref<1x64x256xf32, #tpu.memory_space<vmem>>, %arg2: memref<64x9xf32, #tpu.memory_space<vmem>>, %arg3: memref<576x64xf32, #tpu.memory_space<vmem>>, %arg4: memref<576x64xf32, #tpu.memory_space<vmem>>, %arg5: memref<576x1xf32, #tpu.memory_space<vmem>>, %arg6: memref<1x576x256xf32, #tpu.memory_space<vmem>>) attributes {dimension_semantics = [#tpu.dimension_semantics<parallel>], iteration_bounds = array<i64: 2>, scalar_prefetch = 0 : i64, scratch_operands = 0 : i64, tpu.core_type = #tpu.core_type<tc>, window_params = [{transform_indices = @transform_0, window_bounds = array<i64: 1, 64, 256>}, {pipeline_mode = #tpu.pipeline_mode<synchronous>, transform_indices = @transform_1, window_bounds = array<i64: 64, 9>}, {pipeline_mode = #tpu.pipeline_mode<synchronous>, transform_indices = @transform_2, window_bounds = array<i64: 576, 64>}, {pipeline_mode = #tpu.pipeline_mode<synchronous>, transform_indices = @transform_3, window_bounds = array<i64: 576, 64>}, {pipeline_mode = #tpu.pipeline_mode<synchronous>, transform_indices = @transform_4, window_bounds = array<i64: 576, 1>}, {transform_indices = @transform_5, window_bounds = array<i64: 1, 576, 256>}]} {
    %c0 = arith.constant 0 : index
    %c0_0 = arith.constant 0 : index
    %c0_1 = arith.constant 0 : index
    %0 = vector.load %arg1[%c0, %c0_0, %c0_1] : memref<1x64x256xf32, #tpu.memory_space<vmem>>, vector<1x64x256xf32>
    %1 = vector.shape_cast %0 : vector<1x64x256xf32> to vector<64x256xf32>
    %2 = tpu.iota {dimensions = array<i32: 1>} : vector<1x256xi32>
    %c15_i32 = arith.constant 15 : i32
    %3 = vector.broadcast %c15_i32 : i32 to vector<1x256xi32>
    %4 = arith.andi %2, %3 : vector<1x256xi32>
    %c16_i32 = arith.constant 16 : i32
    %5 = vector.broadcast %c16_i32 : i32 to vector<1x256xi32>
    %6 = arith.cmpi sge, %2, %5 : vector<1x256xi32>
    %c240_i32 = arith.constant 240 : i32
    %7 = vector.broadcast %c240_i32 : i32 to vector<1x256xi32>
    %8 = arith.cmpi slt, %2, %7 : vector<1x256xi32>
    %c1_i32 = arith.constant 1 : i32
    %9 = vector.broadcast %c1_i32 : i32 to vector<1x256xi32>
    %10 = arith.cmpi sge, %4, %9 : vector<1x256xi32>
    %c14_i32 = arith.constant 14 : i32
    %11 = vector.broadcast %c14_i32 : i32 to vector<1x256xi32>
    %12 = arith.cmpi sle, %4, %11 : vector<1x256xi32>
    %c0_2 = arith.constant 0 : index
    %c4 = arith.constant 4 : index
    %13 = vector.load %arg2[%c0_2, %c4] : memref<64x9xf32, #tpu.memory_space<vmem>>, vector<64x1xf32>
    %14 = vector.broadcast %13 : vector<64x1xf32> to vector<64x256xf32>
    %15 = arith.mulf %1, %14 : vector<64x256xf32>
    %c17_i32 = arith.constant 17 : i32
    %16 = tpu.dynamic_rotate %1 by %c17_i32 dim 1 : vector<64x256xf32>, i32 -> vector<64x256xf32>
    %17 = arith.andi %6, %10 : vector<1x256xi1>
    %cst = arith.constant 0.000000e+00 : f32
    %18 = vector.shape_cast %17 : vector<1x256xi1> to vector<1x256xi1>
    %19 = vector.broadcast %18 : vector<1x256xi1> to vector<64x256xi1>
    %20 = vector.broadcast %cst : f32 to vector<64x256xf32>
    %21 = arith.select %19, %16, %20 : vector<64x256xi1>, vector<64x256xf32>
    %c0_3 = arith.constant 0 : index
    %c0_4 = arith.constant 0 : index
    %22 = vector.load %arg2[%c0_3, %c0_4] : memref<64x9xf32, #tpu.memory_space<vmem>>, vector<64x1xf32>
    %23 = vector.broadcast %22 : vector<64x1xf32> to vector<64x256xf32>
    %24 = arith.mulf %21, %23 : vector<64x256xf32>
    %25 = arith.addf %15, %24 : vector<64x256xf32>
    %c16_i32_5 = arith.constant 16 : i32
    %26 = tpu.dynamic_rotate %1 by %c16_i32_5 dim 1 : vector<64x256xf32>, i32 -> vector<64x256xf32>
    %cst_6 = arith.constant 0.000000e+00 : f32
    %27 = vector.shape_cast %6 : vector<1x256xi1> to vector<1x256xi1>
    %28 = vector.broadcast %27 : vector<1x256xi1> to vector<64x256xi1>
    %29 = vector.broadcast %cst_6 : f32 to vector<64x256xf32>
    %30 = arith.select %28, %26, %29 : vector<64x256xi1>, vector<64x256xf32>
    %c0_7 = arith.constant 0 : index
    %c1 = arith.constant 1 : index
    %31 = vector.load %arg2[%c0_7, %c1] : memref<64x9xf32, #tpu.memory_space<vmem>>, vector<64x1xf32>
    %32 = vector.broadcast %31 : vector<64x1xf32> to vector<64x256xf32>
    %33 = arith.mulf %30, %32 : vector<64x256xf32>
    %34 = arith.addf %25, %33 : vector<64x256xf32>
    %c15_i32_8 = arith.constant 15 : i32
    %35 = tpu.dynamic_rotate %1 by %c15_i32_8 dim 1 : vector<64x256xf32>, i32 -> vector<64x256xf32>
    %36 = arith.andi %6, %12 : vector<1x256xi1>
    %cst_9 = arith.constant 0.000000e+00 : f32
    %37 = vector.shape_cast %36 : vector<1x256xi1> to vector<1x256xi1>
    %38 = vector.broadcast %37 : vector<1x256xi1> to vector<64x256xi1>
    %39 = vector.broadcast %cst_9 : f32 to vector<64x256xf32>
    %40 = arith.select %38, %35, %39 : vector<64x256xi1>, vector<64x256xf32>
    %c0_10 = arith.constant 0 : index
    %c2 = arith.constant 2 : index
    %41 = vector.load %arg2[%c0_10, %c2] : memref<64x9xf32, #tpu.memory_space<vmem>>, vector<64x1xf32>
    %42 = vector.broadcast %41 : vector<64x1xf32> to vector<64x256xf32>
    %43 = arith.mulf %40, %42 : vector<64x256xf32>
    %44 = arith.addf %34, %43 : vector<64x256xf32>
    %c1_i32_11 = arith.constant 1 : i32
    %45 = tpu.dynamic_rotate %1 by %c1_i32_11 dim 1 : vector<64x256xf32>, i32 -> vector<64x256xf32>
    %cst_12 = arith.constant 0.000000e+00 : f32
    %46 = vector.shape_cast %10 : vector<1x256xi1> to vector<1x256xi1>
    %47 = vector.broadcast %46 : vector<1x256xi1> to vector<64x256xi1>
    %48 = vector.broadcast %cst_12 : f32 to vector<64x256xf32>
    %49 = arith.select %47, %45, %48 : vector<64x256xi1>, vector<64x256xf32>
    %c0_13 = arith.constant 0 : index
    %c3 = arith.constant 3 : index
    %50 = vector.load %arg2[%c0_13, %c3] : memref<64x9xf32, #tpu.memory_space<vmem>>, vector<64x1xf32>
    %51 = vector.broadcast %50 : vector<64x1xf32> to vector<64x256xf32>
    %52 = arith.mulf %49, %51 : vector<64x256xf32>
    %53 = arith.addf %44, %52 : vector<64x256xf32>
    %c255_i32 = arith.constant 255 : i32
    %54 = tpu.dynamic_rotate %1 by %c255_i32 dim 1 : vector<64x256xf32>, i32 -> vector<64x256xf32>
    %cst_14 = arith.constant 0.000000e+00 : f32
    %55 = vector.shape_cast %12 : vector<1x256xi1> to vector<1x256xi1>
    %56 = vector.broadcast %55 : vector<1x256xi1> to vector<64x256xi1>
    %57 = vector.broadcast %cst_14 : f32 to vector<64x256xf32>
    %58 = arith.select %56, %54, %57 : vector<64x256xi1>, vector<64x256xf32>
    %c0_15 = arith.constant 0 : index
    %c5 = arith.constant 5 : index
    %59 = vector.load %arg2[%c0_15, %c5] : memref<64x9xf32, #tpu.memory_space<vmem>>, vector<64x1xf32>
    %60 = vector.broadcast %59 : vector<64x1xf32> to vector<64x256xf32>
    %61 = arith.mulf %58, %60 : vector<64x256xf32>
    %62 = arith.addf %53, %61 : vector<64x256xf32>
    %c241_i32 = arith.constant 241 : i32
    %63 = tpu.dynamic_rotate %1 by %c241_i32 dim 1 : vector<64x256xf32>, i32 -> vector<64x256xf32>
    %64 = arith.andi %8, %10 : vector<1x256xi1>
    %cst_16 = arith.constant 0.000000e+00 : f32
    %65 = vector.shape_cast %64 : vector<1x256xi1> to vector<1x256xi1>
    %66 = vector.broadcast %65 : vector<1x256xi1> to vector<64x256xi1>
    %67 = vector.broadcast %cst_16 : f32 to vector<64x256xf32>
    %68 = arith.select %66, %63, %67 : vector<64x256xi1>, vector<64x256xf32>
    %c0_17 = arith.constant 0 : index
    %c6 = arith.constant 6 : index
    %69 = vector.load %arg2[%c0_17, %c6] : memref<64x9xf32, #tpu.memory_space<vmem>>, vector<64x1xf32>
    %70 = vector.broadcast %69 : vector<64x1xf32> to vector<64x256xf32>
    %71 = arith.mulf %68, %70 : vector<64x256xf32>
    %72 = arith.addf %62, %71 : vector<64x256xf32>
    %c240_i32_18 = arith.constant 240 : i32
    %73 = tpu.dynamic_rotate %1 by %c240_i32_18 dim 1 : vector<64x256xf32>, i32 -> vector<64x256xf32>
    %cst_19 = arith.constant 0.000000e+00 : f32
    %74 = vector.shape_cast %8 : vector<1x256xi1> to vector<1x256xi1>
    %75 = vector.broadcast %74 : vector<1x256xi1> to vector<64x256xi1>
    %76 = vector.broadcast %cst_19 : f32 to vector<64x256xf32>
    %77 = arith.select %75, %73, %76 : vector<64x256xi1>, vector<64x256xf32>
    %c0_20 = arith.constant 0 : index
    %c7 = arith.constant 7 : index
    %78 = vector.load %arg2[%c0_20, %c7] : memref<64x9xf32, #tpu.memory_space<vmem>>, vector<64x1xf32>
    %79 = vector.broadcast %78 : vector<64x1xf32> to vector<64x256xf32>
    %80 = arith.mulf %77, %79 : vector<64x256xf32>
    %81 = arith.addf %72, %80 : vector<64x256xf32>
    %c239_i32 = arith.constant 239 : i32
    %82 = tpu.dynamic_rotate %1 by %c239_i32 dim 1 : vector<64x256xf32>, i32 -> vector<64x256xf32>
    %83 = arith.andi %8, %12 : vector<1x256xi1>
    %cst_21 = arith.constant 0.000000e+00 : f32
    %84 = vector.shape_cast %83 : vector<1x256xi1> to vector<1x256xi1>
    %85 = vector.broadcast %84 : vector<1x256xi1> to vector<64x256xi1>
    %86 = vector.broadcast %cst_21 : f32 to vector<64x256xf32>
    %87 = arith.select %85, %82, %86 : vector<64x256xi1>, vector<64x256xf32>
    %c0_22 = arith.constant 0 : index
    %c8 = arith.constant 8 : index
    %88 = vector.load %arg2[%c0_22, %c8] : memref<64x9xf32, #tpu.memory_space<vmem>>, vector<64x1xf32>
    %89 = vector.broadcast %88 : vector<64x1xf32> to vector<64x256xf32>
    %90 = arith.mulf %87, %89 : vector<64x256xf32>
    %91 = arith.addf %81, %90 : vector<64x256xf32>
    %cst_23 = arith.constant dense<0.000000e+00> : vector<64xf32>
    %92 = vector.multi_reduction <add>, %1, %cst_23 [1] : vector<64x256xf32> to vector<64xf32>
    %93 = vector.shape_cast %92 : vector<64xf32> to vector<64x1xf32>
    %cst_24 = arith.constant 3.906250e-03 : f32
    %94 = vector.broadcast %cst_24 : f32 to vector<64x1xf32>
    %95 = arith.mulf %93, %94 : vector<64x1xf32>
    %c0_25 = arith.constant 0 : index
    %c0_26 = arith.constant 0 : index
    %96 = vector.load %arg4[%c0_25, %c0_26] : memref<576x64xf32, #tpu.memory_space<vmem>>, vector<576x64xf32>
    %cst_27 = arith.constant dense<0.000000e+00> : vector<576x1xf32>
    %97 = tpu.matmul %96, %95, %cst_27 {dimension_numbers = #tpu.dot_dimension_numbers<[1], [0], [0], [1], [0, 0, 1, 1], [], []>} : vector<576x64xf32>, vector<64x1xf32>, vector<576x1xf32> -> vector<576x1xf32>
    %c0_28 = arith.constant 0 : index
    %c0_29 = arith.constant 0 : index
    %98 = vector.load %arg5[%c0_28, %c0_29] : memref<576x1xf32, #tpu.memory_space<vmem>>, vector<576x1xf32>
    %99 = arith.addf %97, %98 : vector<576x1xf32>
    %c0_30 = arith.constant 0 : index
    %c0_31 = arith.constant 0 : index
    %100 = vector.load %arg3[%c0_30, %c0_31] : memref<576x64xf32, #tpu.memory_space<vmem>>, vector<576x64xf32>
    %cst_32 = arith.constant dense<0.000000e+00> : vector<576x256xf32>
    %101 = tpu.matmul %100, %91, %cst_32 {dimension_numbers = #tpu.dot_dimension_numbers<[1], [0], [0], [1], [0, 0, 1, 1], [], []>} : vector<576x64xf32>, vector<64x256xf32>, vector<576x256xf32> -> vector<576x256xf32>
    %102 = vector.broadcast %99 : vector<576x1xf32> to vector<576x256xf32>
    %103 = arith.addf %101, %102 : vector<576x256xf32>
    %c0_33 = arith.constant 0 : index
    %c0_34 = arith.constant 0 : index
    %c0_35 = arith.constant 0 : index
    %104 = vector.load %arg6[%c0_33, %c0_34, %c0_35] : memref<1x576x256xf32, #tpu.memory_space<vmem>>, vector<1x576x256xf32>
    %105 = vector.shape_cast %104 : vector<1x576x256xf32> to vector<576x256xf32>
    %106 = vector.shape_cast %103 : vector<576x256xf32> to vector<1x576x256xf32>
    tpu.vector_store %arg6[%c0_33, %c0_34, %c0_35], %106 {strides = array<i32>} : memref<1x576x256xf32, #tpu.memory_space<vmem>>, vector<1x576x256xf32>,
    return
  }
  func.func @transform_0(%arg0: i32) -> (i32, i32, i32) {
    %c0_i32 = arith.constant 0 : i32
    %c0_i32_0 = arith.constant 0 : i32
    %c0_i32_1 = arith.constant 0 : i32
    return %arg0, %c0_i32, %c0_i32_0 : i32, i32, i32
  }
  func.func @transform_1(%arg0: i32) -> (i32, i32) {
    %c0_i32 = arith.constant 0 : i32
    %c0_i32_0 = arith.constant 0 : i32
    %c0_i32_1 = arith.constant 0 : i32
    return %c0_i32, %c0_i32_0 : i32, i32
  }
  func.func @transform_2(%arg0: i32) -> (i32, i32) {
    %c0_i32 = arith.constant 0 : i32
    %c0_i32_0 = arith.constant 0 : i32
    %c0_i32_1 = arith.constant 0 : i32
    return %c0_i32, %c0_i32_0 : i32, i32
  }
  func.func @transform_3(%arg0: i32) -> (i32, i32) {
    %c0_i32 = arith.constant 0 : i32
    %c0_i32_0 = arith.constant 0 : i32
    %c0_i32_1 = arith.constant 0 : i32
    return %c0_i32, %c0_i32_0 : i32, i32
  }
  func.func @transform_4(%arg0: i32) -> (i32, i32) {
    %c0_i32 = arith.constant 0 : i32
    %c0_i32_0 = arith.constant 0 : i32
    %c0_i32_1 = arith.constant 0 : i32
    return %c0_i32, %c0_i32_0 : i32, i32
  }
  func.func @transform_5(%arg0: i32) -> (i32, i32, i32) {
    %c0_i32 = arith.constant 0 : i32
    %c0_i32_0 = arith.constant 0 : i32
    %c0_i32_1 = arith.constant 0 : i32
    return %arg0, %c0_i32, %c0_i32_0 : i32, i32, i32
  }
}

</mosaic_0001>

<bundles_post_ra>
// kernel: afg_forward.1
= control target key start
LH: loop header
LB: loop body
LE: loop exit
PB: predicated region body
PF: predicated region fallthrough
CT: control target
= control target key end

     0   :  { %s4073_s18 = smov 0   ;;  %s7032_s0 = inlined_call_operand.vmem [shape: f32[2,64,256], index: 0, kind: input, shape index: {}]   ;;  %s7033_s1 = inlined_call_operand.vmem [shape: f32[64,9], index: 1, kind: input, shape index: {}]   ;;  %s7034_s2 = inlined_call_operand.vmem [shape: f32[576,64], index: 2, kind: input, shape index: {}]   ;;  %s7035_s3 = inlined_call_operand.vmem [shape: f32[576,64], index: 3, kind: input, shape index: {}]   ;;  %s7036_s4 = inlined_call_operand.vmem [shape: f32[576,1], index: 4, kind: input, shape index: {}]   ;;  %s7037_s5 = inlined_call_operand.vmem [shape: f32[2,576,256], index: 5, kind: output, shape index: {}]  }
   0x1 LB: > { %s3552_s19 = sadd.s32 4294967295, %s4023_s18   ;;  %p3556_p0 = scmp.ge.s32.totalorder %s4023_s18, 1  ;;  %s4023_s18 = sphi %s4073_s18, %s15_s18  }
   0x2   : > { %p187_p1 = scmp.lt.s32.totalorder %s4023_s18, 3 }
   0x4   : > { %p188_p2 = pnand %p3556_p0, %p187_p1 }
   0x6   : > { %191 = sbr.rel (%p188_p2) target bundleno = 1184 (0x4a0), region = 40 }
   0xd   : > { %v4084_v0 = vld [vmem:[%s7033_s1 + $0x10] sm:$0xff]  ;;  %v4089_v1 = vld [vmem:[%s7033_s1] sm:$0xff]  ;;  %v4025_v2 = vmov 4   ;;  %p215_p3 = scmp.lt.s32.totalorder %s3552_s19, 1  ;;  %v4096_v3 = vld [vmem:[%s7033_s1 + $0x18] sm:$0xff]  ;;  %s4026_s15 = smov 17   ;;  %v241_v43 = vlaneseq }
   0xe   : > { %3979 = vset.pattern.permute.xlu1 %v4025_v2  ;;  %3978 = vset.pattern.permute.xlu0 %v4025_v2  ;;  %v4101_v4 = vld [vmem:[%s7033_s1 + $0x8] sm:$0xff]  ;;  %v4115_v6 = vld [vmem:[%s7033_s1 + $0x20] sm:$0xff]  ;;  %v4123_v7 = vld [vmem:[%s7033_s1 + $0x38] sm:$0xff]  ;;  %v7038_v13 = vmov 0   ;;  %v4028_v14 = vmov 1   ;;  %s4029_s16 = smov 16  }
   0xf   : > { %274 = vperm.xlu1 %3979, %v4084_v0   ;;  %264 = vperm.xlu0 %3978, %v4089_v1   ;;  %s7439_s19 = smov (!%p215_p3, %s3552_s19), 1  ;;  %v4110_v5 = vld [vmem:[%s7033_s1 + $0x28] sm:$0xff]  ;;  %v4128_v8 = vld [vmem:[%s7033_s1 + $0x30] sm:$0xff]  ;;  %s4030_s17 = smov 15   ;;  %v4031_v27 = vmov 2   ;;  %v4033_v36 = vmov 3  }
  0x10   : > { %s3706_s7 = sshll.u32 %s7439_s19, 7  ;;  %s4032_s20 = smov 1   ;;  %v4327_v46 = vand.u32 127, %v241_v43  ;;  %vm1566_vm12 = vcmask 523264  }
  0x11   : > { %s4133_s14 = scalar_lea.vmem %s7032_s0, %s3706_s7  ;;  %s4034_s21 = smov 127  }
  0x12   : > { %v4138_v9 = vld [vmem:[%s4133_s14 + $0x10] sm:$0xff]  ;;  %v4141_v10 = vld [vmem:[%s4133_s14] sm:$0xff]  ;;  %v4179_v19 = vld [vmem:[%s4133_s14 + $0x18] sm:$0xff]  ;;  %v7040_v49 = vand.u32 15, %v4327_v46  ;;  %vm246_vm0 = vcmp.ge.s32.totalorder %v4327_v46, 16  ;;  %vm350_vm2 = vcmp.lt.s32.totalorder %v4327_v46, 17 }
  0x13   : > { %279 = vperm.xlu1 %3979, %v4096_v3   ;;  %269 = vperm.xlu0 %3978, %v4101_v4   ;;  %v4148_v11 = vld [vmem:[%s4133_s14 + $0x30] sm:$0xff]  ;;  %v4151_v12 = vld [vmem:[%s4133_s14 + $0x20] sm:$0xff]  ;;  %v4182_v20 = vld [vmem:[%s4133_s14 + $0x8] sm:$0xff]  ;;  %vm485_vm5 = vcmp.lt.s32.totalorder %v4327_v46, 16  ;;  %s4036_s22 = smov 113   ;;  %vm618_vm7 = vcmp.lt.s32.totalorder %v4327_v46, 15 }
  0x14   : > { %v4159_v15 = vld [vmem:[%s4133_s14 + $0x50] sm:$0xff]  ;;  %v4162_v16 = vld [vmem:[%s4133_s14 + $0x40] sm:$0xff]  ;;  %v4189_v21 = vld [vmem:[%s4133_s14 + $0x38] sm:$0xff]  ;;  %vm4348_vm1 = vcmp.ge.s32.totalorder %v7040_v49, 1  ;;  %s4039_s23 = smov 112   ;;  %vm7159_vm10 = vcmp.lt.s32.totalorder %v4327_v46, 1 }
  0x15   : > { %v4169_v17 = vld [vmem:[%s4133_s14 + $0x70] sm:$0xff]  ;;  %v4172_v18 = vld [vmem:[%s4133_s14 + $0x60] sm:$0xff]  ;;  %v4192_v22 = vld [vmem:[%s4133_s14 + $0x28] sm:$0xff]  ;;  %s4041_s24 = smov 111   ;;  %vm7158_vm11 = vcmp.lt.s32.totalorder %v4327_v46, 127  ;;  %vm7160_vm13 = vcmp.lt.s32.totalorder %v4327_v46, 113 }
  0x16   : > { %v4199_v23 = vld [vmem:[%s4133_s14 + $0x58] sm:$0xff]  ;;  %v4202_v24 = vld [vmem:[%s4133_s14 + $0x48] sm:$0xff]  ;;  %vm4372_vm3 = vmand %vm246_vm0, %vm4348_vm1  ;;  %vm1154_vm14 = vcmp.lt.s32.totalorder %v4327_v46, 112  ;;  %s3951_s27 = smul.u32 1152, %s7439_s19 }
  0x17   : > { %289 = vperm.xlu1 %3979, %v4110_v5   ;;  %284 = vperm.xlu0 %3978, %v4115_v6   ;;  %v4209_v25 = vld [vmem:[%s4133_s14 + $0x78] sm:$0xff]  ;;  %v4212_v26 = vld [vmem:[%s4133_s14 + $0x68] sm:$0xff] }
  0x18   : > { %s6733_s30 = scalar_lea.vmem %s7037_s5, %s3951_s27 }
  0x1b   : > { %299 = vperm.xlu1 %3979, %v4123_v7   ;;  %294 = vperm.xlu0 %3978, %v4128_v8  }
  0x1f   : > { %320 = vrot.lane.b32.xlu1 %v4138_v9, %s4026_s15  ;;  %318 = vrot.lane.b32.xlu0 %v4141_v10, %s4026_s15 }
  0x20   : > { %3980 = vset.pattern.permute.xlu1 %v7038_v13  ;;  %3982 = vset.pattern.permute.xlu0 %v4028_v14  ;;  %v4035_v13 = vmov 5  }
  0x23   : > { %324 = vrot.lane.b32.xlu1 %v4148_v11, %s4026_s15  ;;  %322 = vrot.lane.b32.xlu0 %v4151_v12, %s4026_s15 }
  0x27   : > { %328 = vrot.lane.b32.xlu1 %v4159_v15, %s4026_s15  ;;  %326 = vrot.lane.b32.xlu0 %v4162_v16, %s4026_s15 }
  0x2b   : > { %332 = vrot.lane.b32.xlu1 %v4169_v17, %s4026_s15  ;;  %330 = vrot.lane.b32.xlu0 %v4172_v18, %s4026_s15 }
  0x2f   : > { %336 = vrot.lane.b32.xlu1 %v4179_v19, %s4026_s15  ;;  %334 = vrot.lane.b32.xlu0 %v4182_v20, %s4026_s15 }
  0x33   : > { %340 = vrot.lane.b32.xlu1 %v4189_v21, %s4026_s15  ;;  %338 = vrot.lane.b32.xlu0 %v4192_v22, %s4026_s15 }
  0x37   : > { %344 = vrot.lane.b32.xlu1 %v4199_v23, %s4026_s15  ;;  %342 = vrot.lane.b32.xlu0 %v4202_v24, %s4026_s15 }
  0x3b   : > { %348 = vrot.lane.b32.xlu1 %v4209_v25, %s4026_s15  ;;  %346 = vrot.lane.b32.xlu0 %v4212_v26, %s4026_s15 }
  0x3f   : > { %394 = vperm.xlu1 %3980, %v4101_v4   ;;  %455 = vrot.lane.b32.xlu0 %v4138_v9, %s4029_s16 }
  0x43   : > { %398 = vperm.xlu1 %3980, %v4084_v0   ;;  %459 = vrot.lane.b32.xlu0 %v4148_v11, %s4029_s16 }
  0x47   : > { %406 = vperm.xlu1 %3980, %v4115_v6   ;;  %463 = vrot.lane.b32.xlu0 %v4159_v15, %s4029_s16 }
  0x4b   : > { %414 = vperm.xlu1 %3980, %v4128_v8   ;;  %467 = vrot.lane.b32.xlu0 %v4169_v17, %s4029_s16 }
  0x4f   : > { %453 = vrot.lane.b32.xlu1 %v4141_v10, %s4029_s16  ;;  %471 = vrot.lane.b32.xlu0 %v4179_v19, %s4029_s16 }
  0x50   : > { %3981 = vset.pattern.permute.xlu1 %v4028_v14 }
  0x53   : > { %457 = vrot.lane.b32.xlu1 %v4151_v12, %s4029_s16  ;;  %475 = vrot.lane.b32.xlu0 %v4189_v21, %s4029_s16 }
  0x57   : > { %461 = vrot.lane.b32.xlu1 %v4162_v16, %s4029_s16  ;;  %479 = vrot.lane.b32.xlu0 %v4199_v23, %s4029_s16 }
  0x5b   : > { %465 = vrot.lane.b32.xlu1 %v4172_v18, %s4029_s16  ;;  %483 = vrot.lane.b32.xlu0 %v4209_v25, %s4029_s16 }
  0x5f   : > { %469 = vrot.lane.b32.xlu1 %v4182_v20, %s4029_s16  ;;  %527 = vperm.xlu0 %3982, %v4101_v4  }
  0x63   : > { %473 = vrot.lane.b32.xlu1 %v4192_v22, %s4029_s16  ;;  %539 = vperm.xlu0 %3982, %v4115_v6  }
  0x67   : > { %477 = vrot.lane.b32.xlu1 %v4202_v24, %s4029_s16  ;;  %547 = vperm.xlu0 %3982, %v4128_v8  }
  0x6b   : > { %481 = vrot.lane.b32.xlu1 %v4212_v26, %s4029_s16  ;;  %586 = vrot.lane.b32.xlu0 %v4141_v10, %s4030_s17 }
  0x6c   : > { %3983 = vset.pattern.permute.xlu0 %v4031_v27 }
  0x6f   : > { %523 = vperm.xlu1 %3981, %v4089_v1   ;;  %590 = vrot.lane.b32.xlu0 %v4151_v12, %s4030_s17 }
  0x73   : > { %531 = vperm.xlu1 %3981, %v4084_v0   ;;  %594 = vrot.lane.b32.xlu0 %v4162_v16, %s4030_s17 }
  0x77   : > { %535 = vperm.xlu1 %3981, %v4096_v3   ;;  %598 = vrot.lane.b32.xlu0 %v4172_v18, %s4030_s17 }
  0x7b   : > { %543 = vperm.xlu1 %3981, %v4110_v5   ;;  %602 = vrot.lane.b32.xlu0 %v4182_v20, %s4030_s17 }
  0x7f   : > { %551 = vperm.xlu1 %3981, %v4123_v7   ;;  %606 = vrot.lane.b32.xlu0 %v4192_v22, %s4030_s17 }
  0x83   : > { %588 = vrot.lane.b32.xlu1 %v4138_v9, %s4030_s17  ;;  %610 = vrot.lane.b32.xlu0 %v4202_v24, %s4030_s17 }
  0x84   : > { %3984 = vset.pattern.permute.xlu1 %v4031_v27 }
  0x87   : > { %592 = vrot.lane.b32.xlu1 %v4148_v11, %s4030_s17  ;;  %614 = vrot.lane.b32.xlu0 %v4212_v26, %s4030_s17 }
  0x8b   : > { %596 = vrot.lane.b32.xlu1 %v4159_v15, %s4030_s17  ;;  %658 = vperm.xlu0 %3983, %v4089_v1  }
  0x8e   : > { %v4269_v28 = vpop.permute.xlu1 %274  ;;  %v4271_v29 = vpop.permute.xlu0 %264 }
  0x8f   : > { %7161 = vst [vmem:[#allocation2_spill] sm:$0xff] %v4269_v28  ;;  %600 = vrot.lane.b32.xlu1 %v4169_v17, %s4030_s17  ;;  %670 = vperm.xlu0 %3983, %v4096_v3  }
  0x92   : > { %v4276_v30 = vpop.permute.xlu1 %279  ;;  %v4278_v31 = vpop.permute.xlu0 %269 }
  0x93   : > { %7162 = vst [vmem:[#allocation3_spill] sm:$0xff] %v4276_v30  ;;  %604 = vrot.lane.b32.xlu1 %v4179_v19, %s4030_s17  ;;  %678 = vperm.xlu0 %3983, %v4110_v5  }
  0x96   : > { %v4283_v32 = vpop.permute.xlu1 %289  ;;  %v4285_v33 = vpop.permute.xlu0 %284 }
  0x97   : > { %608 = vrot.lane.b32.xlu1 %v4189_v21, %s4030_s17  ;;  %686 = vperm.xlu0 %3983, %v4123_v7  }
  0x9a   : > { %v4290_v34 = vpop.permute.xlu1 %299  ;;  %v4292_v35 = vpop.permute.xlu0 %294 }
  0x9b   : > { %7163 = vst [vmem:[#allocation4_spill] sm:$0xff] %v4290_v34  ;;  %612 = vrot.lane.b32.xlu1 %v4199_v23, %s4030_s17  ;;  %723 = vrot.lane.b32.xlu0 %v4138_v9, %s4032_s20 }
  0x9c   : > { %3986 = vset.pattern.permute.xlu0 %v4033_v36 }
  0x9e   : > { %v4298_v37 = vpop.permute.xlu1 %320  ;;  %v4300_v38 = vpop.permute.xlu0 %318 }
  0x9f   : > { %616 = vrot.lane.b32.xlu1 %v4209_v25, %s4030_s17  ;;  %727 = vrot.lane.b32.xlu0 %v4148_v11, %s4032_s20 }
  0xa2   : > { %v4306_v39 = vpop.permute.xlu1 %324  ;;  %v4308_v40 = vpop.permute.xlu0 %322 }
  0xa3   : > { %7164 = vst [vmem:[#allocation5_spill] sm:$0xff] %v4306_v39  ;;  %7165 = vst [vmem:[#allocation6_spill] sm:$0xff] %v4308_v40  ;;  %662 = vperm.xlu1 %3984, %v4101_v4   ;;  %731 = vrot.lane.b32.xlu0 %v4159_v15, %s4032_s20 }
  0xa6   : > { %v4313_v41 = vpop.permute.xlu1 %328  ;;  %v4315_v42 = vpop.permute.xlu0 %326 }
  0xa7   : > { %666 = vperm.xlu1 %3984, %v4084_v0   ;;  %735 = vrot.lane.b32.xlu0 %v4169_v17, %s4032_s20 }
  0xaa   : > { %v4320_v44 = vpop.permute.xlu1 %332  ;;  %v4322_v45 = vpop.permute.xlu0 %330 }
  0xab   : > { %7166 = vst [vmem:[#allocation7_spill] sm:$0xff] %v4320_v44  ;;  %674 = vperm.xlu1 %3984, %v4115_v6   ;;  %739 = vrot.lane.b32.xlu0 %v4179_v19, %s4032_s20 }
  0xae   : > { %v4329_v47 = vpop.permute.xlu1 %336  ;;  %v4331_v48 = vpop.permute.xlu0 %334 }
  0xaf   : > { %682 = vperm.xlu1 %3984, %v4128_v8   ;;  %743 = vrot.lane.b32.xlu0 %v4189_v21, %s4032_s20 }
  0xb2   : > { %v4337_v50 = vpop.permute.xlu1 %340  ;;  %v4339_v51 = vpop.permute.xlu0 %338 }
  0xb3   : > { %7167 = vst [vmem:[#allocation8_spill] sm:$0xff] %v4337_v50  ;;  %7168 = vst [vmem:[#allocation9_spill] sm:$0xff] %v4339_v51  ;;  %721 = vrot.lane.b32.xlu1 %v4141_v10, %s4032_s20  ;;  %747 = vrot.lane.b32.xlu0 %v4199_v23, %s4032_s20  ;;  %v4451_v51 = vadd.s32 128, %v4327_v46 }
  0xb4   : > { %3985 = vset.pattern.permute.xlu1 %v4033_v36 }
  0xb5   : > { %7186 = vst [vmem:[#allocation23_spill] sm:$0xff] %v4451_v51 }
  0xb6   : > { %v4353_v53 = vpop.permute.xlu1 %344  ;;  %v343_v54 = vpop.permute.xlu0 %342 }
  0xb7   : > { %v4359_v55 = vsel %vm350_vm2, %v4353_v53, %v4313_v41  ;;  %v4364_v56 = vsel %vm350_vm2, %v343_v54, %v4315_v42  ;;  %725 = vrot.lane.b32.xlu1 %v4151_v12, %s4032_s20  ;;  %751 = vrot.lane.b32.xlu0 %v4209_v25, %s4032_s20 }
  0xb8   : > { %7171 = vst [vmem:[#allocation10_spill] sm:$0xff] %v4359_v55  ;;  %v381_v58 = vsel %vm4372_vm3, %v4364_v56, 0.0 }
  0xba   : > { %v4384_v60 = vpop.permute.xlu1 %348  ;;  %v347_v61 = vpop.permute.xlu0 %346 }
  0xbb   : > { %7174 = vst [vmem:[#allocation11_spill] sm:$0xff] %v4384_v60  ;;  %v4390_v62 = vsel %vm350_vm2, %v4384_v60, %v4320_v44  ;;  %v4395_v63 = vsel %vm350_vm2, %v347_v61, %v4322_v45  ;;  %729 = vrot.lane.b32.xlu1 %v4162_v16, %s4032_s20  ;;  %795 = vperm.xlu0 %3986, %v4101_v4  }
  0xbc   : > { %7175 = vst [vmem:[#allocation12_spill] sm:$0xff] %v4390_v62  ;;  %v355_v62 = vsel %vm350_vm2, %v4315_v42, %v343_v54  ;;  %v357_v42 = vsel %vm350_vm2, %v4322_v45, %v347_v61  ;;  %v314_v44 = vmul.f32 %v4292_v35, %v4172_v18 }
  0xbe   : > { %v4406_v27 = vpop.permute.xlu1 %394  ;;  %v4408_v36 = vpop.permute.xlu0 %455 }
  0xbf   : > { %7176 = vst [vmem:[#allocation13_spill] sm:$0xff] %v4406_v27  ;;  %7177 = vst [vmem:[#allocation14_spill] sm:$0xff] %v4408_v36  ;;  %733 = vrot.lane.b32.xlu1 %v4172_v18, %s4032_s20  ;;  %807 = vperm.xlu0 %3986, %v4115_v6  }
  0xc2   : > { %v4413_v43 = vpop.permute.xlu1 %398  ;;  %v4415_v56 = vpop.permute.xlu0 %459 }
  0xc3   : > { %7178 = vst [vmem:[#allocation15_spill] sm:$0xff] %v4413_v43  ;;  %7179 = vst [vmem:[#allocation16_spill] sm:$0xff] %v4415_v56  ;;  %737 = vrot.lane.b32.xlu1 %v4182_v20, %s4032_s20  ;;  %815 = vperm.xlu0 %3986, %v4128_v8  }
  0xc6   : > { %v407_v59 = vpop.permute.xlu1 %406  ;;  %v4420_v14 = vpop.permute.xlu0 %463 }
  0xc7   : > { %741 = vrot.lane.b32.xlu1 %v4192_v22, %s4032_s20  ;;  %854 = vrot.lane.b32.xlu0 %v4141_v10, %s4034_s21 }
  0xc8   : > { %3987 = vset.pattern.permute.xlu0 %v4035_v13 }
  0xca   : > { %v415_v49 = vpop.permute.xlu1 %414  ;;  %v4426_v2 = vpop.permute.xlu0 %467 }
  0xcb   : > { %7180 = vst [vmem:[#allocation17_spill] sm:$0xff] %v4426_v2  ;;  %745 = vrot.lane.b32.xlu1 %v4202_v24, %s4032_s20  ;;  %858 = vrot.lane.b32.xlu0 %v4151_v12, %s4034_s21 }
  0xce   : > { %v4432_v56 = vpop.permute.xlu1 %453  ;;  %v4434_v30 = vpop.permute.xlu0 %471 }
  0xcf   : > { %7181 = vst [vmem:[#allocation18_spill] sm:$0xff] %v4432_v56  ;;  %7182 = vst [vmem:[#allocation19_spill] sm:$0xff] %v4434_v30  ;;  %749 = vrot.lane.b32.xlu1 %v4212_v26, %s4032_s20  ;;  %862 = vrot.lane.b32.xlu0 %v4162_v16, %s4034_s21 }
  0xd2   : > { %v4440_v28 = vpop.permute.xlu1 %457  ;;  %v4442_v43 = vpop.permute.xlu0 %475 }
  0xd3   : > { %7183 = vst [vmem:[#allocation20_spill] sm:$0xff] %v4440_v28  ;;  %7184 = vst [vmem:[#allocation21_spill] sm:$0xff] %v4442_v43  ;;  %791 = vperm.xlu1 %3985, %v4089_v1   ;;  %866 = vrot.lane.b32.xlu0 %v4172_v18, %s4034_s21  ;;  %v7057_v43 = vand.u32 15, %v4451_v51 }
  0xd5   : > { %vm4471_vm4 = vcmp.ge.s32.totalorder %v7057_v43, 1  ;;  %v311_v43 = vmul.f32 %v4285_v33, %v4202_v24 }
  0xd6   : > { %v462_v50 = vpop.permute.xlu1 %461  ;;  %v4447_v39 = vpop.permute.xlu0 %479  ;;  %v382_v36 = vsel %vm4471_vm4, %v355_v62, 0.0  ;;  %v429_v62 = vmul.f32 %v407_v59, %v381_v58  ;;  %v386_v2 = vsel %vm4471_vm4, %v357_v42, 0.0 }
  0xd7   : > { %7185 = vst [vmem:[#allocation22_spill] sm:$0xff] %v4447_v39  ;;  %799 = vperm.xlu1 %3985, %v4084_v0   ;;  %870 = vrot.lane.b32.xlu0 %v4182_v20, %s4034_s21  ;;  %v434_v58 = vmul.f32 %v415_v49, %v386_v2 }
  0xda   : > { %v466_v40 = vpop.permute.xlu1 %465  ;;  %v4455_v28 = vpop.permute.xlu0 %483 }
  0xdb   : > { %7187 = vst [vmem:[#allocation24_spill] sm:$0xff] %v4455_v28  ;;  %803 = vperm.xlu1 %3985, %v4096_v3   ;;  %874 = vrot.lane.b32.xlu0 %v4192_v22, %s4034_s21  ;;  %v310_v28 = vmul.f32 %v4285_v33, %v4162_v16 }
  0xdd   : > { %v445_v60 = vadd.f32 %v429_v62, %v310_v28 }
  0xde   : > { %v4464_v55 = vpop.permute.xlu1 %469  ;;  %v4466_v56 = vpop.permute.xlu0 %527 }
  0xdf   : > { %7188 = vst [vmem:[#allocation25_spill] sm:$0xff] %v4464_v55  ;;  %7189 = vst [vmem:[#allocation26_spill] sm:$0xff] %v4466_v56  ;;  %811 = vperm.xlu1 %3985, %v4110_v5   ;;  %878 = vrot.lane.b32.xlu0 %v4202_v24, %s4034_s21  ;;  %v430_v55 = vmul.f32 %v407_v59, %v382_v36 }
  0xe1   : > { %v446_v33 = vadd.f32 %v430_v55, %v311_v43 }
  0xe2   : > { %v4482_v54 = vpop.permute.xlu1 %473  ;;  %v540_v56 = vpop.permute.xlu0 %539 }
  0xe3   : > { %7192 = vst [vmem:[#allocation27_spill] sm:$0xff] %v4482_v54  ;;  %819 = vperm.xlu1 %3985, %v4123_v7   ;;  %882 = vrot.lane.b32.xlu0 %v4212_v26, %s4034_s21  ;;  %v315_v54 = vmul.f32 %v4292_v35, %v4212_v26 }
  0xe5   : > { %v450_v35 = vadd.f32 %v434_v58, %v315_v54 }
  0xe6   : > { %v478_v45 = vpop.permute.xlu1 %477  ;;  %v548_v61 = vpop.permute.xlu0 %547 }
  0xe7   : > { %v490_v36 = vsel %vm485_vm5, %v462_v50, %v478_v45  ;;  %v498_v27 = vsel %vm485_vm5, %v478_v45, %v462_v50  ;;  %856 = vrot.lane.b32.xlu1 %v4138_v9, %s4034_s21  ;;  %924 = vperm.xlu0 %3987, %v4089_v1   ;;  %v7193_v50 = vsel %vm4372_vm3, %v4395_v63, 0.0 }
  0xe8   : > { %v514_v59 = vsel %vm246_vm0, %v498_v27, 0.0  ;;  %v563_v42 = vmul.f32 %v540_v56, %v490_v36  ;;  %3988 = vset.pattern.permute.xlu1 %v4035_v13  ;;  %v433_v45 = vmul.f32 %v415_v49, %v7193_v50  ;;  %v7203_v50 = vand.u32 15, %v4327_v46 }
  0xe9   : > { %v562_v34 = vmul.f32 %v540_v56, %v514_v59 }
  0xea   : > { %v4511_v39 = vadd.f32 %v563_v42, %v446_v33  ;;  %v482_v55 = vpop.permute.xlu1 %481  ;;  %v4513_v2 = vpop.permute.xlu0 %586  ;;  %v449_v43 = vadd.f32 %v433_v45, %v314_v44  ;;  %vm4564_vm6 = vcmp.le.s32.totalorder %v7203_v50, 14  ;;  %v1472_v45 = vld [vmem:[%s7035_s3 + $0x190] sm:$0xff] }
  0xeb   : > { %7194 = vst [vmem:[#allocation28_spill] sm:$0xff] %v4513_v2  ;;  %v492_v27 = vsel %vm485_vm5, %v466_v40, %v482_v55  ;;  %v500_v13 = vsel %vm485_vm5, %v482_v55, %v466_v40  ;;  %860 = vrot.lane.b32.xlu1 %v4148_v11, %s4034_s21  ;;  %v4521_v28 = vadd.f32 %v562_v34, %v445_v60  ;;  %vm4579_vm8 = vmand %vm246_vm0, %vm4564_vm6 }
  0xec   : > { %v518_v49 = vsel %vm246_vm0, %v500_v13, 0.0  ;;  %v567_v63 = vmul.f32 %v548_v61, %v492_v27  ;;  %936 = vperm.xlu0 %3987, %v4096_v3  }
  0xed   : > { %v566_v56 = vmul.f32 %v548_v61, %v518_v49 }
  0xee   : > { %v4526_v62 = vadd.f32 %v567_v63, %v450_v35  ;;  %v4528_v36 = vpop.permute.xlu1 %523  ;;  %v4530_v33 = vpop.permute.xlu0 %590  ;;  %v7207_v35 = vmov 0 }
  0xef   : > { %7195 = vst [vmem:[#allocation29_spill] sm:$0xff] %v4528_v36  ;;  %7196 = vst [vmem:[#allocation30_spill] sm:$0xff] %v4530_v33  ;;  %864 = vrot.lane.b32.xlu1 %v4159_v15, %s4034_s21  ;;  %v4534_v34 = vadd.f32 %v566_v56, %v449_v43  ;;  %v7208_v35 = vsel %vm4579_vm8, 4294967295, %v7207_v35 }
  0xf0   : > { %944 = vperm.xlu0 %3987, %v4110_v5   ;;  %7209 = vst [vmem:[#allocation38_spill] sm:$0xff] %v7208_v35  ;;  %v7100_v35 = vmov 6  }
  0xf2   : > { %v4537_v40 = vpop.permute.xlu1 %531  ;;  %v595_v60 = vpop.permute.xlu0 %594 }
  0xf3   : > { %7197 = vst [vmem:[#allocation31_spill] sm:$0xff] %v4537_v40  ;;  %868 = vrot.lane.b32.xlu1 %v4169_v17, %s4034_s21 }
  0xf4   : > { %952 = vperm.xlu0 %3987, %v4123_v7  }
  0xf6   : > { %v4542_v44 = vpop.permute.xlu1 %535  ;;  %v599_v54 = vpop.permute.xlu0 %598 }
  0xf7   : > { %7198 = vst [vmem:[#allocation32_spill] sm:$0xff] %v4542_v44  ;;  %872 = vrot.lane.b32.xlu1 %v4179_v19, %s4034_s21 }
  0xf8   : > { %989 = vrot.lane.b32.xlu0 %v4138_v9, %s4036_s22 }
  0xf9   : > { %3993 = vset.pattern.permute.xlu0 %v7100_v35 }
  0xfa   : > { %v4548_v61 = vpop.permute.xlu1 %543  ;;  %v4550_v58 = vpop.permute.xlu0 %602 }
  0xfb   : > { %7199 = vst [vmem:[#allocation33_spill] sm:$0xff] %v4548_v61  ;;  %7200 = vst [vmem:[#allocation34_spill] sm:$0xff] %v4550_v58  ;;  %876 = vrot.lane.b32.xlu1 %v4189_v21, %s4034_s21  ;;  %v7079_v58 = vmov 7   ;;  %v7226_v61 = vand.u32 15, %v4451_v51 }
  0xfc   : > { %993 = vrot.lane.b32.xlu0 %v4148_v11, %s4036_s22 }
  0xfd   : > { %vm4658_vm9 = vcmp.le.s32.totalorder %v7226_v61, 14 }
  0xfe   : > { %v4556_v59 = vpop.permute.xlu1 %551  ;;  %v4558_v42 = vpop.permute.xlu0 %606 }
  0xff   : > { %7201 = vst [vmem:[#allocation35_spill] sm:$0xff] %v4556_v59  ;;  %7202 = vst [vmem:[#allocation36_spill] sm:$0xff] %v4558_v42  ;;  %880 = vrot.lane.b32.xlu1 %v4199_v23, %s4034_s21 }
 0x102   : > { %v4569_v55 = vpop.permute.xlu1 %588  ;;  %v611_v27 = vpop.permute.xlu0 %610 }
 0x103   : > { %7206 = vst [vmem:[#allocation37_spill] sm:$0xff] %v4569_v55  ;;  %v631_v13 = vsel %vm618_vm7, %v611_v27, %v595_v60  ;;  %884 = vrot.lane.b32.xlu1 %v4209_v25, %s4034_s21  ;;  %v1399_v55 = vadd.f32 %v4189_v21, %v4148_v11 }
 0x104   : > { %v649_v49 = vsel %vm4579_vm8, %v631_v13, 0.0 }
 0x106   : > { %v4585_v63 = vpop.permute.xlu1 %592  ;;  %v615_v43 = vpop.permute.xlu0 %614 }
 0x107   : > { %7210 = vst [vmem:[#allocation39_spill] sm:$0xff] %v4585_v63  ;;  %v633_v56 = vsel %vm618_vm7, %v615_v43, %v599_v54  ;;  %928 = vperm.xlu1 %3988, %v4101_v4  }
 0x108   : > { %v653_v50 = vsel %vm4579_vm8, %v633_v56, 0.0 }
 0x10a   : > { %v4592_v44 = vpop.permute.xlu1 %596  ;;  %v4594_v42 = vpop.permute.xlu0 %658 }
 0x10b   : > { %7211 = vst [vmem:[#allocation40_spill] sm:$0xff] %v4594_v42  ;;  %932 = vperm.xlu1 %3988, %v4084_v0   ;;  %v1390_v42 = vadd.f32 %v4182_v20, %v4141_v10 }
 0x10e   : > { %v4597_v33 = vpop.permute.xlu1 %600  ;;  %v4599_v13 = vpop.permute.xlu0 %670 }
 0x10f   : > { %7212 = vst [vmem:[#allocation41_spill] sm:$0xff] %v4597_v33  ;;  %7213 = vst [vmem:[#allocation42_spill] sm:$0xff] %v4599_v13  ;;  %940 = vperm.xlu1 %3988, %v4115_v6  }
 0x112   : > { %v4602_v63 = vpop.permute.xlu1 %604  ;;  %v4604_v40 = vpop.permute.xlu0 %678 }
 0x113   : > { %7214 = vst [vmem:[#allocation43_spill] sm:$0xff] %v4602_v63  ;;  %7215 = vst [vmem:[#allocation44_spill] sm:$0xff] %v4604_v40  ;;  %948 = vperm.xlu1 %3988, %v4128_v8  }
 0x116   : > { %v4607_v2 = vpop.permute.xlu1 %608  ;;  %v4609_v56 = vpop.permute.xlu0 %686 }
 0x117   : > { %7216 = vst [vmem:[#allocation45_spill] sm:$0xff] %v4607_v2  ;;  %7217 = vst [vmem:[#allocation46_spill] sm:$0xff] %v4609_v56  ;;  %987 = vrot.lane.b32.xlu1 %v4141_v10, %s4036_s22 }
 0x118   : > { %3989 = vset.pattern.permute.xlu1 %v7079_v58 }
 0x11a   : > { %v4616_v13 = vpop.permute.xlu1 %612  ;;  %v4624_v2 = vpop.permute.xlu0 %723 }
 0x11b   : > { %v4622_v36 = vsel %vm618_vm7, %v4616_v13, %v4592_v44  ;;  %7219 = vst [vmem:[#allocation48_spill] sm:$0xff] %v4624_v2  ;;  %1391 = vadd.xlane.f32.xlu0 %v1390_v42  ;;  %991 = vrot.lane.b32.xlu1 %v4151_v12, %s4036_s22 }
 0x11c   : > { %7218 = vst [vmem:[#allocation47_spill] sm:$0xff] %v4622_v36  ;;  %v623_v36 = vsel %vm618_vm7, %v595_v60, %v611_v27 }
 0x11d   : > { %v650_v42 = vsel %vm4658_vm9, %v623_v36, 0.0 }
 0x11e   : > { %v4633_v63 = vpop.permute.xlu1 %616  ;;  %v4641_v2 = vpop.permute.xlu0 %727 }
 0x11f   : > { %7220 = vst [vmem:[#allocation49_spill] sm:$0xff] %v4633_v63  ;;  %v4639_v56 = vsel %vm618_vm7, %v4633_v63, %v4597_v33  ;;  %7222 = vst [vmem:[#allocation51_spill] sm:$0xff] %v4641_v2  ;;  %1400 = vadd.xlane.f32.xlu0 %v1399_v55  ;;  %995 = vrot.lane.b32.xlu1 %v4162_v16, %s4036_s22  ;;  %v1437_v55 = vld [vmem:[%s7035_s3 + $0x78] sm:$0xff] }
 0x120   : > { %7221 = vst [vmem:[#allocation50_spill] sm:$0xff] %v4639_v56 }
 0x122   : > { %v4648_v40 = vpop.permute.xlu1 %662  ;;  %v4650_v58 = vpop.permute.xlu0 %731 }
 0x123   : > { %7223 = vst [vmem:[#allocation52_spill] sm:$0xff] %v4648_v40  ;;  %7224 = vst [vmem:[#allocation53_spill] sm:$0xff] %v4650_v58  ;;  %v625_v40 = vsel %vm618_vm7, %v599_v54, %v615_v43 }
 0x124   : > { %v654_v61 = vsel %vm4658_vm9, %v625_v40, 0.0 }
 0x126   : > { %v4654_v59 = vpop.permute.xlu1 %666  ;;  %v4662_v2 = vpop.permute.xlu0 %735 }
 0x127   : > { %7225 = vst [vmem:[#allocation54_spill] sm:$0xff] %v4654_v59  ;;  %7229 = vst [vmem:[#allocation55_spill] sm:$0xff] %v4662_v2 }
 0x12a   : > { %v675_v56 = vpop.permute.xlu1 %674  ;;  %v4669_v59 = vpop.permute.xlu0 %739 }
 0x12b   : > { %v697_v60 = vmul.f32 %v675_v56, %v649_v49  ;;  %v698_v27 = vmul.f32 %v675_v56, %v650_v42  ;;  %7230 = vst [vmem:[#allocation56_spill] sm:$0xff] %v4669_v59 }
 0x12d   : > { %v713_v51 = vadd.f32 %v697_v60, %v4521_v28  ;;  %v714_v2 = vadd.f32 %v698_v27, %v4511_v39 }
 0x12e   : > { %v683_v58 = vpop.permute.xlu1 %682  ;;  %v4677_v63 = vpop.permute.xlu0 %743 }
 0x12f   : > { %v701_v36 = vmul.f32 %v683_v58, %v653_v50  ;;  %v702_v33 = vmul.f32 %v683_v58, %v654_v61  ;;  %7231 = vst [vmem:[#allocation57_spill] sm:$0xff] %v4677_v63  ;;  %v1396_v50 = vadd.f32 %v4192_v22, %v4151_v12 }
 0x131   : > { %v717_v54 = vadd.f32 %v701_v36, %v4534_v34  ;;  %v718_v43 = vadd.f32 %v702_v33, %v4526_v62  ;;  %v1393_v62 = vadd.f32 %v4179_v19, %v4138_v9 }
 0x132   : > { %v4679_v49 = vpop.permute.xlu1 %721  ;;  %v4685_v28 = vpop.permute.xlu0 %747 }
 0x133   : > { %7232 = vst [vmem:[#allocation58_spill] sm:$0xff] %v4679_v49 }
 0x135   : > { %1124 = vrot.lane.b32.xlu0 %v4138_v9, %s4039_s23 }
 0x136   : > { %v4683_v40 = vpop.permute.xlu1 %725  ;;  %v4689_v58 = vpop.permute.xlu0 %751 }
 0x137   : > { %7233 = vst [vmem:[#allocation59_spill] sm:$0xff] %v4683_v40 }
 0x139   : > { %1140 = vrot.lane.b32.xlu0 %v4179_v19, %s4039_s23 }
 0x13a   : > { %v730_v39 = vpop.permute.xlu1 %729  ;;  %v4697_v56 = vpop.permute.xlu0 %795 }
 0x13b   : > { %7235 = vst [vmem:[#allocation61_spill] sm:$0xff] %v4697_v56 }
 0x13e   : > { %v734_v34 = vpop.permute.xlu1 %733  ;;  %v808_v60 = vpop.permute.xlu0 %807 }
 0x142   : > { %v4693_v33 = vpop.permute.xlu1 %737 }
 0x143   : > { %7234 = vst [vmem:[#allocation60_spill] sm:$0xff] %v4693_v33  ;;  %1394 = vadd.xlane.f32.xlu1 %v1393_v62 }
 0x146   : > { %v4699_v42 = vpop.permute.xlu1 %741 }
 0x147   : > { %7236 = vst [vmem:[#allocation62_spill] sm:$0xff] %v4699_v42  ;;  %1397 = vadd.xlane.f32.xlu1 %v1396_v50  ;;  %v816_v50 = vpop.permute.xlu0 %815 }
 0x14a   : > { %v746_v27 = vpop.permute.xlu1 %745 }
 0x14b   : > { %v758_v61 = vsel %vm7159_vm10, %v730_v39, %v746_v27  ;;  %v766_v36 = vsel %vm7159_vm10, %v746_v27, %v730_v39 }
 0x14c   : > { %v782_v62 = vsel %vm4348_vm1, %v766_v36, 0.0  ;;  %v783_v35 = vsel %vm4471_vm4, %v758_v61, 0.0 }
 0x14d   : > { %v830_v63 = vmul.f32 %v808_v60, %v782_v62  ;;  %v831_v40 = vmul.f32 %v808_v60, %v783_v35 }
 0x14e   : > { %v750_v42 = vpop.permute.xlu1 %749 }
 0x14f   : > { %v846_v56 = vadd.f32 %v830_v63, %v713_v51  ;;  %v847_v33 = vadd.f32 %v831_v40, %v714_v2  ;;  %v760_v49 = vsel %vm7159_vm10, %v734_v34, %v750_v42  ;;  %v768_v59 = vsel %vm7159_vm10, %v750_v42, %v734_v34 }
 0x150   : > { %v786_v39 = vsel %vm4348_vm1, %v768_v59, 0.0  ;;  %v787_v27 = vsel %vm4471_vm4, %v760_v49, 0.0  ;;  %v1405_v51 = vadd.f32 %v4199_v23, %v4159_v15  ;;  %v4732_v49 = vpop.permute.xlu0 %854  ;;  %v7108_v42 = vmov 8  }
 0x151   : > { %v834_v36 = vmul.f32 %v816_v50, %v786_v39  ;;  %v835_v61 = vmul.f32 %v816_v50, %v787_v27  ;;  %7241 = vst [vmem:[#allocation67_spill] sm:$0xff] %v4732_v49 }
 0x152   : > { %v4718_v62 = vpop.permute.xlu1 %791 }
 0x153   : > { %7237 = vst [vmem:[#allocation63_spill] sm:$0xff] %v4718_v62  ;;  %v850_v35 = vadd.f32 %v834_v36, %v717_v54  ;;  %v851_v60 = vadd.f32 %v835_v61, %v718_v43 }
 0x154   : > { %v4740_v40 = vpop.permute.xlu0 %858 }
 0x155   : > { %7244 = vst [vmem:[#allocation70_spill] sm:$0xff] %v4740_v40 }
 0x156   : > { %v4722_v2 = vpop.permute.xlu1 %799 }
 0x157   : > { %7238 = vst [vmem:[#allocation64_spill] sm:$0xff] %v4722_v2 }
 0x158   : > { %1406 = vadd.xlane.f32.xlu0 %v1405_v51  ;;  %1192 = vperm.xlu1 %3989, %v4089_v1   ;;  %v863_v50 = vpop.permute.xlu0 %862 }
 0x15a   : > { %v4725_v63 = vpop.permute.xlu1 %803 }
 0x15b   : > { %7239 = vst [vmem:[#allocation65_spill] sm:$0xff] %v4725_v63 }
 0x15c   : > { %1196 = vperm.xlu1 %3989, %v4101_v4   ;;  %v867_v36 = vpop.permute.xlu0 %866 }
 0x15e   : > { %v4728_v59 = vpop.permute.xlu1 %811 }
 0x15f   : > { %7240 = vst [vmem:[#allocation66_spill] sm:$0xff] %v4728_v59 }
 0x160   : > { %1003 = vrot.lane.b32.xlu1 %v4182_v20, %s4036_s22  ;;  %v4762_v51 = vpop.permute.xlu0 %870 }
 0x161   : > { %7248 = vst [vmem:[#allocation74_spill] sm:$0xff] %v4762_v51 }
 0x162   : > { %v4734_v54 = vpop.permute.xlu1 %819 }
 0x163   : > { %7242 = vst [vmem:[#allocation68_spill] sm:$0xff] %v4734_v54 }
 0x164   : > { %1005 = vrot.lane.b32.xlu1 %v4179_v19, %s4036_s22 }
 0x166   : > { %v4738_v43 = vpop.permute.xlu1 %856 }
 0x167   : > { %7243 = vst [vmem:[#allocation69_spill] sm:$0xff] %v4738_v43 }
 0x168   : > { %1204 = vperm.xlu1 %3989, %v4096_v3  }
 0x16a   : > { %v4743_v34 = vpop.permute.xlu1 %860 }
 0x16b   : > { %7245 = vst [vmem:[#allocation71_spill] sm:$0xff] %v4743_v34  ;;  %v4768_v34 = vpop.permute.xlu0 %874 }
 0x16c   : > { %1122 = vrot.lane.b32.xlu1 %v4141_v10, %s4039_s23  ;;  %7250 = vst [vmem:[#allocation76_spill] sm:$0xff] %v4768_v34 }
 0x16d   : > { %3990 = vset.pattern.permute.xlu1 %v7108_v42 }
 0x16e   : > { %1271 = vrot.lane.b32.xlu0 %v4182_v20, %s4041_s24  ;;  %v4750_v39 = vpop.permute.xlu1 %864 }
 0x16f   : > { %v879_v40 = vpop.permute.xlu0 %878 }
 0x170   : > { %1138 = vrot.lane.b32.xlu1 %v4182_v20, %s4039_s23  ;;  %v891_v2 = vsel %vm7158_vm11, %v863_v50, %v879_v40  ;;  %v899_v62 = vsel %vm7158_vm11, %v879_v40, %v863_v50 }
 0x171   : > { %v915_v51 = vsel %vm4564_vm6, %v891_v2, 0.0  ;;  %v916_v34 = vsel %vm4658_vm9, %v899_v62, 0.0  ;;  %v1402_v2 = vadd.f32 %v4202_v24, %v4162_v16 }
 0x172   : > { %1128 = vrot.lane.b32.xlu0 %v4148_v11, %s4039_s23  ;;  %v4756_v27 = vpop.permute.xlu1 %868 }
 0x173   : > { %7246 = vst [vmem:[#allocation72_spill] sm:$0xff] %v4756_v27  ;;  %v1411_v27 = vadd.f32 %v4209_v25, %v4169_v17 }
 0x176   : > { %1144 = vrot.lane.b32.xlu0 %v4189_v21, %s4039_s23  ;;  %v4760_v61 = vpop.permute.xlu1 %872 }
 0x177   : > { %7247 = vst [vmem:[#allocation73_spill] sm:$0xff] %v4760_v61 }
 0x17a   : > { %v4764_v42 = vpop.permute.xlu1 %876 }
 0x17b   : > { %7249 = vst [vmem:[#allocation75_spill] sm:$0xff] %v4764_v42  ;;  %v883_v42 = vpop.permute.xlu0 %882 }
 0x17c   : > { %v901_v43 = vsel %vm7158_vm11, %v883_v42, %v867_v36 }
 0x17d   : > { %v920_v50 = vsel %vm4658_vm9, %v901_v43, 0.0 }
 0x17e   : > { %v4766_v63 = vpop.permute.xlu1 %880 }
 0x182   : > { %v4770_v20 = vpop.permute.xlu1 %884 }
 0x186   : > { %v4772_v11 = vpop.permute.xlu1 %928 }
 0x187   : > { %7251 = vst [vmem:[#allocation77_spill] sm:$0xff] %v4772_v11  ;;  %v893_v11 = vsel %vm7158_vm11, %v867_v36, %v883_v42 }
 0x188   : > { %v919_v40 = vsel %vm4564_vm6, %v893_v11, 0.0  ;;  %v7263_v11 = vmov 8  }
 0x18a   : > { %v4779_v49 = vpop.permute.xlu1 %932 }
 0x18b   : > { %7252 = vst [vmem:[#allocation78_spill] sm:$0xff] %v4779_v49 }
 0x18e   : > { %v941_v61 = vpop.permute.xlu1 %940 }
 0x18f   : > { %v963_v54 = vmul.f32 %v941_v61, %v915_v51  ;;  %v964_v59 = vmul.f32 %v941_v61, %v916_v34 }
 0x191   : > { %v4795_v49 = vadd.f32 %v963_v54, %v846_v56  ;;  %v4797_v62 = vadd.f32 %v964_v59, %v847_v33  ;;  %v4807_v56 = vpop.permute.xlu0 %924 }
 0x192   : > { %v949_v42 = vpop.permute.xlu1 %948 }
 0x193   : > { %7253 = vst [vmem:[#allocation79_spill] sm:$0xff] %v4795_v49  ;;  %7254 = vst [vmem:[#allocation80_spill] sm:$0xff] %v4797_v62  ;;  %v967_v36 = vmul.f32 %v949_v42, %v919_v40  ;;  %v968_v51 = vmul.f32 %v949_v42, %v920_v50  ;;  %v360_v62 = vsel %vm350_vm2, %v4329_v47, %v4298_v37 }
 0x194   : > { %1403 = vadd.xlane.f32.xlu1 %v1402_v2 }
 0x195   : > { %v4801_v34 = vadd.f32 %v967_v36, %v850_v35  ;;  %v4803_v61 = vadd.f32 %v968_v51, %v851_v60  ;;  %1412 = vadd.xlane.f32.xlu0 %v1411_v27  ;;  %v4812_v17 = vpop.permute.xlu0 %936  ;;  %v7258_v35 = vmov 7  }
 0x196   : > { %7257 = vst [vmem:[#allocation83_spill] sm:$0xff] %v4812_v17  ;;  %v4830_v59 = vpop.permute.xlu1 %987 }
 0x197   : > { %7255 = vst [vmem:[#allocation81_spill] sm:$0xff] %v4801_v34  ;;  %7256 = vst [vmem:[#allocation82_spill] sm:$0xff] %v4803_v61 }
 0x199   : > { %v4818_v33 = vpop.permute.xlu0 %944 }
 0x19a   : > { %v4841_v43 = vpop.permute.xlu1 %991 }
 0x19b   : > { %7260 = vst [vmem:[#allocation85_spill] sm:$0xff] %v4841_v43  ;;  %v7297_v43 = vld [vmem:[#allocation17_spill] sm:$0xff] }
 0x19d   : > { %v4825_v60 = vpop.permute.xlu0 %952 }
 0x1a1   : > { %v4833_v54 = vpop.permute.xlu0 %989 }
 0x1a2   : > { %7259 = vst [vmem:[#allocation84_spill] sm:$0xff] %v4833_v54  ;;  %v7314_v54 = vld [vmem:[#allocation55_spill] sm:$0xff] }
 0x1a5   : > { %1327 = vperm.xlu1 %3990, %v4089_v1   ;;  %v4843_v27 = vpop.permute.xlu0 %993 }
 0x1a6   : > { %7261 = vst [vmem:[#allocation86_spill] sm:$0xff] %v4843_v27 }
 0x1a9   : > { %1331 = vperm.xlu1 %3990, %v4101_v4  }
 0x1ab   : > { %1059 = vperm.xlu0 %3993, %v4089_v1  }
 0x1ad   : > { %1335 = vperm.xlu1 %3990, %v4084_v0  }
 0x1af   : > { %1071 = vperm.xlu0 %3993, %v4096_v3  }
 0x1b1   : > { %1339 = vperm.xlu1 %3990, %v4096_v3  }
 0x1b3   : > { %1075 = vperm.xlu0 %3993, %v4115_v6  }
 0x1b5   : > { %1007 = vrot.lane.b32.xlu1 %v4192_v22, %s4036_s22 }
 0x1b6   : > { %3991 = vset.pattern.permute.xlu1 %v7258_v35 }
 0x1b7   : > { %1083 = vperm.xlu0 %3993, %v4128_v8  }
 0x1b9   : > { %1009 = vrot.lane.b32.xlu1 %v4189_v21, %s4036_s22 }
 0x1bb   : > { %3994 = vset.pattern.permute.xlu0 %v7258_v35 }
 0x1bc   : > { %1200 = vperm.xlu0 %3994, %v4084_v0  }
 0x1bd   : > { %1255 = vrot.lane.b32.xlu1 %v4141_v10, %s4041_s24  ;;  %v4847_v10 = vpop.permute.xlu1 %995 }
 0x1be   : > { %7262 = vst [vmem:[#allocation87_spill] sm:$0xff] %v4847_v10  ;;  %v4009_v10 = vld [vmem:[%s4133_s14 + $0x8] sm:$0xff] }
 0x1c0   : > { %1208 = vperm.xlu0 %3994, %v4115_v6  }
 0x1c1   : > { %1257 = vrot.lane.b32.xlu1 %v4138_v9, %s4041_s24  ;;  %v1392_v9 = vpop.xlane.xlu0 %1391 }
 0x1c2   : > { %v1414_v40 = vmul.f32 0.00390625, %v1392_v9 }
 0x1c4   : > { %1275 = vrot.lane.b32.xlu0 %v4192_v22, %s4041_s24 }
 0x1c5   : > { %1273 = vrot.lane.b32.xlu1 %v4179_v19, %s4041_s24  ;;  %v7264_v19 = vmov 6   ;;  %v1401_v2 = vpop.xlane.xlu0 %1400 }
 0x1c6   : > { %v1417_v42 = vmul.f32 0.00390625, %v1401_v2  ;;  %v4001_v2 = vld [vmem:[%s7033_s1 + $0x28] sm:$0xff] }
 0x1c8   : > { %1216 = vperm.xlu0 %3994, %v4128_v8  }
 0x1c9   : > { %1212 = vperm.xlu1 %3991, %v4110_v5  }
 0x1cc   : > { %1132 = vrot.lane.b32.xlu0 %v4159_v15, %s4039_s23 }
 0x1cd   : > { %1126 = vrot.lane.b32.xlu1 %v4151_v12, %s4039_s23  ;;  %3998 = vset.pattern.permute.xlu0 %v7263_v11 }
 0x1ce   : > { %3992 = vset.pattern.permute.xlu1 %v7264_v19  ;;  %v7265_v19 = vmov 0  }
 0x1d0   : > { %1148 = vrot.lane.b32.xlu0 %v4199_v23, %s4039_s23  ;;  %v1395_v8 = vpop.xlane.xlu1 %1394 }
 0x1d1   : > { %v1415_v50 = vmul.f32 0.00390625, %v1395_v8  ;;  %1142 = vrot.lane.b32.xlu1 %v4192_v22, %s4039_s23  ;;  %v1408_v22 = vadd.f32 %v4212_v26, %v4172_v18 }
 0x1d3   : > { %v3911_v36 = vpack.c.bf16 %v1415_v50, %v1414_v40 }
 0x1d4   : > { %1355 = vperm.xlu0 %3998, %v4123_v7   ;;  %v1398_v51 = vpop.xlane.xlu1 %1397 }
 0x1d5   : > { %v1416_v61 = vmul.f32 0.00390625, %v1398_v51  ;;  %3912 = vmatprep.subr.bf16.mxu0 %v3911_v36 }
 0x1d6   : > { %3914 = vmatpush3.bf16.msra.mxu0 %v3911_v36 }
 0x1d7   : > { %v3915_v34 = vpack.c.bf16 %v1417_v42, %v1416_v61 }
 0x1d8   : > { %3999 = vset.pattern.permute.xlu0 %v7265_v19 }
 0x1d9   : > { %390 = vperm.xlu0 %3999, %v4089_v1   ;;  %3916 = vmatprep.subr.bf16.mxu0 %v3915_v34  ;;  %v4875_v1 = vpop.permute.xlu1 %1192 }
 0x1da   : > { %3918 = vmatpush3.bf16.msra.mxu0 %v3915_v34  ;;  %7266 = vst [vmem:[#allocation88_spill] sm:$0xff] %v4875_v1  ;;  %v4885_v34 = vpop.permute.xlu0 %1124  ;;  %v7313_v1 = vld [vmem:[#allocation44_spill] sm:$0xff] }
 0x1dd   : > { %402 = vperm.xlu0 %3999, %v4096_v3   ;;  %v4881_v3 = vpop.permute.xlu1 %1196 }
 0x1de   : > { %7267 = vst [vmem:[#allocation89_spill] sm:$0xff] %v4881_v3  ;;  %v4890_v9 = vpop.permute.xlu0 %1140 }
 0x1e1   : > { %410 = vperm.xlu0 %3999, %v4110_v5   ;;  %v4887_v61 = vpop.permute.xlu1 %1003 }
 0x1e5   : > { %418 = vperm.xlu0 %3999, %v4123_v7   ;;  %v4893_v40 = vpop.permute.xlu1 %1005 }
 0x1e6   : > { %7268 = vst [vmem:[#allocation90_spill] sm:$0xff] %v4893_v40 }
 0x1e9   : > { %1015 = vrot.lane.b32.xlu0 %v4212_v26, %s4036_s22  ;;  %v4900_v8 = vpop.permute.xlu1 %1204 }
 0x1ea   : > { %7269 = vst [vmem:[#allocation91_spill] sm:$0xff] %v4900_v8  ;;  %v4012_v8 = vld [vmem:[%s4133_s14 + $0x58] sm:$0xff] }
 0x1ed   : > { %1263 = vrot.lane.b32.xlu0 %v4162_v16, %s4041_s24 }
 0x1f1   : > { %1279 = vrot.lane.b32.xlu0 %v4202_v24, %s4041_s24 }
 0x1f5   : > { %1409 = vadd.xlane.f32.xlu1 %v1408_v22  ;;  %1134 = vrot.lane.b32.xlu0 %v4172_v18, %s4039_s23 }
 0x1f9   : > { %1150 = vrot.lane.b32.xlu0 %v4212_v26, %s4039_s23 }
 0x1fd   : > { %1267 = vrot.lane.b32.xlu0 %v4172_v18, %s4041_s24  ;;  %v1422_v18 = vld [vmem:[%s7035_s3] sm:$0xff] }
 0x1fe   : > { %3803 = vmatprep.mubr.msk.f32.mxu0 %vm1566_vm12, %v1422_v18 }
 0x201   : > { %1283 = vrot.lane.b32.xlu0 %v4212_v26, %s4041_s24  ;;  %v1407_v26 = vpop.xlane.xlu0 %1406 }
 0x206   : > { %1063 = vperm.xlu1 %3992, %v4101_v4   ;;  %v4903_v4 = vpop.permute.xlu0 %1271 }
 0x207   : > { %7270 = vst [vmem:[#allocation92_spill] sm:$0xff] %v4903_v4 }
 0x20a   : > { %1067 = vperm.xlu1 %3992, %v4084_v0   ;;  %v4906_v0 = vpop.permute.xlu1 %1122  ;;  %v4909_v50 = vpop.permute.xlu0 %1128 }
 0x20b   : > { %7271 = vst [vmem:[#allocation93_spill] sm:$0xff] %v4909_v50 }
 0x20e   : > { %1079 = vperm.xlu1 %3992, %v4110_v5   ;;  %v4914_v5 = vpop.permute.xlu1 %1138  ;;  %v4918_v42 = vpop.permute.xlu0 %1144 }
 0x20f   : > { %7272 = vst [vmem:[#allocation94_spill] sm:$0xff] %v4918_v42 }
 0x212   : > { %1087 = vperm.xlu1 %3992, %v4123_v7   ;;  %v1419_v7 = vmul.f32 0.00390625, %v1407_v26 }
 0x216   : > { %3995 = vset.pattern.permute.xlu1 %v7263_v11 }
 0x217   : > { %1343 = vperm.xlu1 %3995, %v4115_v6  }
 0x21b   : > { %1347 = vperm.xlu1 %3995, %v4001_v2   ;;  %v4003_v2 = vld [vmem:[%s7033_s1 + $0x38] sm:$0xff] }
 0x21f   : > { %997 = vrot.lane.b32.xlu1 %v4159_v15, %s4036_s22 }
 0x220   : > { %3996 = vset.pattern.permute.xlu1 %v7258_v35  ;;  %v4934_v35 = vld [vmem:[%s4133_s14 + $0x30] sm:$0xff] }
 0x221   : > { %v1404_v36 = vpop.xlane.xlu1 %1403  ;;  %7276 = vst [vmem:[#allocation98_spill] sm:$0xff] %v4934_v35 }
 0x222   : > { %v1418_v6 = vmul.f32 0.00390625, %v1404_v36  ;;  %v4923_v22 = vpop.xlane.xlu0 %1412 }
 0x223   : > { %1011 = vrot.lane.b32.xlu1 %v4202_v24, %s4036_s22  ;;  %7273 = vst [vmem:[#allocation95_spill] sm:$0xff] %v4923_v22 }
 0x224   : > { %v3919_v51 = vpack.c.bf16 %v1419_v7, %v1418_v6 }
 0x225   : > { %v4951_v7 = vpop.permute.xlu1 %1327 }
 0x226   : > { %3920 = vmatprep.subr.bf16.mxu0 %v3919_v51  ;;  %7280 = vst [vmem:[#allocation102_spill] sm:$0xff] %v4951_v7 }
 0x227   : > { %1013 = vrot.lane.b32.xlu1 %v4199_v23, %s4036_s22  ;;  %3922 = vmatpush3.bf16.msra.mxu0 %v3919_v51  ;;  %v4004_v51 = vld [vmem:[%s7033_s1 + $0x30] sm:$0xff] }
 0x22a   : > { %v4927_v18 = vpop.permute.xlu0 %1059 }
 0x22b   : > { %7274 = vst [vmem:[#allocation96_spill] sm:$0xff] %v4927_v18  ;;  %1259 = vrot.lane.b32.xlu1 %v4151_v12, %s4041_s24 }
 0x22e   : > { %v4931_v15 = vpop.permute.xlu0 %1071 }
 0x22f   : > { %7275 = vst [vmem:[#allocation97_spill] sm:$0xff] %v4931_v15  ;;  %1261 = vrot.lane.b32.xlu1 %v4934_v35, %s4041_s24  ;;  %v7302_v35 = vld [vmem:[#allocation49_spill] sm:$0xff] }
 0x232   : > { %v4938_v26 = vpop.permute.xlu0 %1075 }
 0x233   : > { %7277 = vst [vmem:[#allocation99_spill] sm:$0xff] %v4938_v26  ;;  %1277 = vrot.lane.b32.xlu1 %v4189_v21, %s4041_s24  ;;  %v4958_v21 = vpop.permute.xlu1 %1331 }
 0x234   : > { %7282 = vst [vmem:[#allocation104_spill] sm:$0xff] %v4958_v21  ;;  %v7303_v21 = vld [vmem:[#allocation41_spill] sm:$0xff] }
 0x236   : > { %v4942_v23 = vpop.permute.xlu0 %1083 }
 0x237   : > { %7278 = vst [vmem:[#allocation100_spill] sm:$0xff] %v4942_v23  ;;  %1220 = vperm.xlu1 %3996, %v4003_v2   ;;  %v4005_v2 = vld [vmem:[%s4133_s14 + $0x60] sm:$0xff]  ;;  %v4975_v23 = vld [vmem:[%s4133_s14 + $0x70] sm:$0xff] }
 0x23b   : > { %v4947_v12 = vpop.permute.xlu0 %1200  ;;  %1130 = vrot.lane.b32.xlu1 %v4162_v16, %s4039_s23 }
 0x23c   : > { %7279 = vst [vmem:[#allocation101_spill] sm:$0xff] %v4947_v12  ;;  %3997 = vset.pattern.permute.xlu1 %v7263_v11  ;;  %v4969_v11 = vpop.permute.xlu1 %1335 }
 0x23d   : > { %7285 = vst [vmem:[#allocation107_spill] sm:$0xff] %v4969_v11  ;;  %v4011_v11 = vld [vmem:[%s4133_s14 + $0x18] sm:$0xff] }
 0x23e   : > { %v5007_v12 = vmul.f32 %v4011_v11, %v4278_v31  ;;  %v5029_v11 = vsel %vm350_vm2, %v4300_v38, %v4331_v48 }
 0x23f   : > { %v4954_v36 = vpop.permute.xlu0 %1208  ;;  %1146 = vrot.lane.b32.xlu1 %v4202_v24, %s4039_s23 }
 0x240   : > { %7281 = vst [vmem:[#allocation103_spill] sm:$0xff] %v4954_v36  ;;  %v4008_v36 = vld [vmem:[%s4133_s14] sm:$0xff] }
 0x241   : > { %v4997_v26 = vmul.f32 %v4008_v36, %v4271_v29  ;;  %v313_v36 = vmul.f32 %v4012_v8, %v4283_v32 }
 0x243   : > { %v4960_v6 = vpop.permute.xlu0 %1275  ;;  %1351 = vperm.xlu1 %3997, %v4004_v51   ;;  %v4979_v51 = vpop.permute.xlu1 %1339 }
 0x244   : > { %7283 = vst [vmem:[#allocation105_spill] sm:$0xff] %v4960_v6  ;;  %7287 = vst [vmem:[#allocation109_spill] sm:$0xff] %v4979_v51  ;;  %v5001_v51 = vmul.f32 %v4009_v10, %v4271_v29  ;;  %v352_v29 = vsel %vm350_vm2, %v4298_v37, %v4329_v47  ;;  %v5021_v10 = vsel %vm350_vm2, %v4331_v48, %v4300_v38  ;;  %v375_v37 = vsel %vm4372_vm3, %v360_v62, 0.0  ;;  %v7291_v47 = vld [vmem:[#allocation22_spill] sm:$0xff]  ;;  %v5046_v6 = vld [vmem:[%s4133_s14 + $0x78] sm:$0xff] }
 0x245   : > { %v7293_v48 = vld [vmem:[#allocation11_spill] sm:$0xff]  ;;  %v7295_v62 = vld [vmem:[#allocation13_spill] sm:$0xff]  ;;  %v376_v27 = vsel %vm4471_vm4, %v352_v29, 0.0 }
 0x246   : > { %v423_v42 = vmul.f32 %v7295_v62, %v375_v37  ;;  %v7299_v37 = vld [vmem:[#allocation14_spill] sm:$0xff] }
 0x247   : > { %v4965_v16 = vpop.permute.xlu0 %1216  ;;  %999 = vrot.lane.b32.xlu1 %v4005_v2, %s4036_s22  ;;  %v4989_v49 = vpop.permute.xlu1 %1007 }
 0x248   : > { %7284 = vst [vmem:[#allocation106_spill] sm:$0xff] %v4965_v16  ;;  %4000 = vset.pattern.permute.xlu1 %v7265_v19  ;;  %v4007_v19 = vld [vmem:[%s4133_s14 + $0x50] sm:$0xff]  ;;  %7290 = vst [vmem:[#allocation112_spill] sm:$0xff] %v4989_v49 }
 0x249   : > { %v312_v15 = vmul.f32 %v4007_v19, %v4283_v32  ;;  %v356_v32 = vsel %vm350_vm2, %v4313_v41, %v4353_v53  ;;  %v7294_v41 = vld [vmem:[#allocation7_spill] sm:$0xff]  ;;  %v7298_v49 = vld [vmem:[#allocation24_spill] sm:$0xff] }
 0x24a   : > { %v358_v53 = vsel %vm350_vm2, %v7294_v41, %v7293_v48  ;;  %v501_v17 = vsel %vm485_vm5, %v7298_v49, %v7297_v43  ;;  %v7300_v41 = vld [vmem:[#allocation19_spill] sm:$0xff]  ;;  %v5088_v48 = vmul.f32 %v7295_v62, %v376_v27  ;;  %v493_v27 = vsel %vm485_vm5, %v7297_v43, %v7298_v49  ;;  %v7307_v62 = vld [vmem:[#allocation53_spill] sm:$0xff] }
 0x24b   : > { %v4972_v24 = vpop.permute.xlu0 %1132  ;;  %1001 = vrot.lane.b32.xlu1 %v4975_v23, %s4036_s22  ;;  %v5057_v50 = vpop.permute.xlu1 %1009  ;;  %v495_v29 = vsel %vm485_vm5, %v7300_v41, %v7299_v37 }
 0x24c   : > { %7286 = vst [vmem:[#allocation108_spill] sm:$0xff] %v4972_v24  ;;  %7296 = vst [vmem:[#allocation22_spill] sm:$0xff] %v5057_v50  ;;  %v491_v24 = vsel %vm485_vm5, %v4420_v14, %v7291_v47  ;;  %v5124_v49 = vsel %vm246_vm0, %v495_v29, 0.0  ;;  %v7309_v29 = vld [vmem:[#allocation35_spill] sm:$0xff] }
 0x24f   : > { %v4981_v16 = vpop.permute.xlu0 %1148  ;;  %1017 = vrot.lane.b32.xlu1 %v4209_v25, %s4036_s22  ;;  %v4010_v25 = vld [vmem:[%s4133_s14 + $0x10] sm:$0xff] }
 0x250   : > { %7288 = vst [vmem:[#allocation110_spill] sm:$0xff] %v4981_v16  ;;  %v388_v16 = vsel %vm4471_vm4, %v358_v53, 0.0 }
 0x253   : > { %v4985_v2 = vpop.permute.xlu0 %1355  ;;  %1265 = vrot.lane.b32.xlu1 %v4007_v19, %s4041_s24  ;;  %v7292_v19 = vld [vmem:[#allocation4_spill] sm:$0xff] }
 0x254   : > { %7289 = vst [vmem:[#allocation111_spill] sm:$0xff] %v4985_v2  ;;  %v304_v2 = vmul.f32 %v4010_v25, %v4278_v31  ;;  %v5043_v25 = vmul.f32 %v4975_v23, %v7292_v19  ;;  %v5050_v38 = vmul.f32 %v5046_v6, %v7292_v19  ;;  %v624_v19 = vsel %vm618_vm7, %v4592_v44, %v4616_v13 }
 0x255   : > { %v384_v13 = vsel %vm4471_vm4, %v356_v32, 0.0  ;;  %v520_v32 = vsel %vm246_vm0, %v501_v17, 0.0  ;;  %v7306_v17 = vld [vmem:[#allocation33_spill] sm:$0xff] }
 0x256   : > { %v568_v7 = vmul.f32 %v7309_v29, %v520_v32  ;;  %v769_v32 = vsel %vm7159_vm10, %v4689_v58, %v7314_v54 }
 0x257   : > { %1281 = vrot.lane.b32.xlu1 %v4012_v8, %s4041_s24  ;;  %v499_v8 = vsel %vm485_vm5, %v7291_v47, %v4420_v14  ;;  %v652_v14 = vsel %vm4658_vm9, %v624_v19, 0.0  ;;  %v565_v47 = vmul.f32 %v7306_v17, %v491_v24  ;;  %v759_v19 = vsel %vm7159_vm10, %v7307_v62, %v4685_v28 }
 0x258   : > { %v5023_v31 = vpop.permute.xlu0 %390  ;;  %v516_v50 = vsel %vm246_vm0, %v499_v8, 0.0  ;;  %v626_v8 = vsel %vm618_vm7, %v7303_v21, %v7302_v35  ;;  %v5114_v35 = vsel %vm485_vm5, %v7299_v37, %v7300_v41  ;;  %v7304_v21 = vld [vmem:[#allocation18_spill] sm:$0xff]  ;;  %v767_v37 = vsel %vm7159_vm10, %v4685_v28, %v7307_v62  ;;  %v5140_v41 = vpop.permute.xlu1 %1255 }
 0x259   : > { %v564_v43 = vmul.f32 %v7306_v17, %v516_v50  ;;  %v656_v53 = vsel %vm4658_vm9, %v626_v8, 0.0  ;;  %7308 = vst [vmem:[#allocation11_spill] sm:$0xff] %v5140_v41  ;;  %v569_v24 = vmul.f32 %v7309_v29, %v493_v27  ;;  %v7311_v8 = vld [vmem:[#allocation47_spill] sm:$0xff]  ;;  %v700_v18 = vmul.f32 %v7313_v1, %v652_v14  ;;  %v7315_v27 = vld [vmem:[#allocation10_spill] sm:$0xff] }
 0x25a   : > { %v7312_v3 = vsel %vm4579_vm8, %v7311_v8, 0.0  ;;  %v761_v28 = vsel %vm7159_vm10, %v7314_v54, %v4689_v58  ;;  %v7316_v62 = vsel %vm4372_vm3, %v7315_v27, 0.0  ;;  %v7319_v14 = vld [vmem:[#allocation46_spill] sm:$0xff]  ;;  %v784_v22 = vsel %vm4348_vm1, %v767_v37, 0.0 }
 0x25b   : > { %1136 = vrot.lane.b32.xlu1 %v4975_v23, %s4039_s23  ;;  %v699_v4 = vmul.f32 %v7313_v1, %v7312_v3  ;;  %v7317_v3 = vld [vmem:[#allocation50_spill] sm:$0xff]  ;;  %v704_v40 = vmul.f32 %v7319_v14, %v656_v53  ;;  %v785_v58 = vsel %vm4471_vm4, %v759_v19, 0.0  ;;  %v892_v54 = vsel %vm7158_vm11, %v4750_v39, %v4766_v63 }
 0x25c   : > { %v5083_v44 = vpop.permute.xlu0 %402  ;;  %v7318_v1 = vsel %vm4579_vm8, %v7317_v3, 0.0  ;;  %v788_v37 = vsel %vm4348_vm1, %v769_v32, 0.0  ;;  %v789_v19 = vsel %vm4471_vm4, %v761_v28, 0.0  ;;  %v917_v32 = vsel %vm4564_vm6, %v892_v54, 0.0 }
 0x25d   : > { %7301 = vst [vmem:[#allocation4_spill] sm:$0xff] %v5083_v44  ;;  %v5100_v44 = vadd.f32 %v423_v42, %v304_v2  ;;  %v7305_v42 = vld [vmem:[#allocation25_spill] sm:$0xff]  ;;  %v703_v41 = vmul.f32 %v7319_v14, %v7318_v1  ;;  %v7322_v14 = vld [vmem:[#allocation72_spill] sm:$0xff] }
 0x25e   : > { %v5120_v2 = vsel %vm485_vm5, %v7305_v42, %v7304_v21 }
 0x25f   : > { %1152 = vrot.lane.b32.xlu1 %v5046_v6, %s4039_s23 }
 0x260   : > { %v411_v50 = vpop.permute.xlu0 %410 }
 0x261   : > { %v431_v29 = vmul.f32 %v411_v50, %v7316_v62  ;;  %v432_v8 = vmul.f32 %v411_v50, %v384_v13  ;;  %v900_v13 = vsel %vm7158_vm11, %v4766_v63, %v4750_v39  ;;  %v894_v63 = vsel %vm7158_vm11, %v7322_v14, %v4770_v20 }
 0x262   : > { %v902_v39 = vsel %vm7158_vm11, %v4770_v20, %v7322_v14 }
 0x263   : > { %1269 = vrot.lane.b32.xlu1 %v4975_v23, %s4041_s24  ;;  %v447_v53 = vadd.f32 %v431_v29, %v312_v15  ;;  %v448_v50 = vadd.f32 %v432_v8, %v313_v36  ;;  %v7320_v23 = vld [vmem:[#allocation12_spill] sm:$0xff]  ;;  %v5198_v15 = vpop.permute.xlu1 %1257  ;;  %v922_v54 = vsel %vm4658_vm9, %v902_v39, 0.0  ;;  %v440_v39 = vadd.f32 %v5088_v48, %v5007_v12 }
 0x264   : > { %v419_v27 = vpop.permute.xlu0 %418  ;;  %v7321_v62 = vsel %vm4372_vm3, %v7320_v23, 0.0  ;;  %v970_v14 = vmul.f32 %v4825_v60, %v922_v54 }
 0x265   : > { %v435_v3 = vmul.f32 %v419_v27, %v7321_v62  ;;  %v436_v1 = vmul.f32 %v419_v27, %v388_v16  ;;  %v580_v36 = vadd.f32 %v564_v43, %v447_v53  ;;  %v581_v28 = vadd.f32 %v565_v47, %v448_v50  ;;  %v7323_v27 = vld [vmem:[#allocation66_spill] sm:$0xff] }
 0x266   : > { %v918_v16 = vsel %vm4658_vm9, %v900_v13, 0.0  ;;  %v832_v23 = vmul.f32 %v7323_v27, %v784_v22  ;;  %v833_v20 = vmul.f32 %v7323_v27, %v785_v58  ;;  %v921_v47 = vsel %vm4564_vm6, %v894_v63, 0.0 }
 0x267   : > { %v451_v29 = vadd.f32 %v435_v3, %v5043_v25  ;;  %v452_v8 = vadd.f32 %v436_v1, %v5050_v38  ;;  %1285 = vrot.lane.b32.xlu1 %v5046_v6, %s4041_s24  ;;  %v715_v62 = vadd.f32 %v699_v4, %v580_v36  ;;  %v716_v43 = vadd.f32 %v700_v18, %v581_v28  ;;  %v7324_v3 = vld [vmem:[#allocation68_spill] sm:$0xff]  ;;  %v5220_v63 = vpop.permute.xlu1 %1273 }
 0x268   : > { %v965_v25 = vmul.f32 %v4818_v33, %v917_v32  ;;  %v966_v38 = vmul.f32 %v4818_v33, %v918_v16  ;;  %v836_v22 = vmul.f32 %v7324_v3, %v788_v37  ;;  %v837_v58 = vmul.f32 %v7324_v3, %v789_v19  ;;  %v7329_v16 = vld [vmem:[#allocation37_spill] sm:$0xff] }
 0x269   : > { %v584_v13 = vadd.f32 %v568_v7, %v451_v29  ;;  %v585_v53 = vadd.f32 %v569_v24, %v452_v8  ;;  %v848_v50 = vadd.f32 %v832_v23, %v715_v62  ;;  %v849_v6 = vadd.f32 %v833_v20, %v716_v43  ;;  %v7332_v8 = vld [vmem:[#allocation28_spill] sm:$0xff] }
 0x26a   : > { %v969_v1 = vmul.f32 %v4825_v60, %v921_v47  ;;  %v7325_v33 = vsel %vm4372_vm3, %v5021_v10, 0.0  ;;  %v486_v36 = vsel %vm485_vm5, %v7304_v21, %v7305_v42  ;;  %v7327_v10 = vld [vmem:[#allocation26_spill] sm:$0xff]  ;;  %v506_v32 = vsel %vm246_vm0, %v5120_v2, 0.0  ;;  %v7333_v20 = vld [vmem:[#allocation48_spill] sm:$0xff] }
 0x26b   : > { %v719_v4 = vadd.f32 %v703_v41, %v584_v13  ;;  %v720_v18 = vadd.f32 %v704_v40, %v585_v53  ;;  %v5222_v7 = vadd.f32 %v965_v25, %v848_v50  ;;  %v5224_v24 = vadd.f32 %v966_v38, %v849_v6  ;;  %v7331_v2 = vld [vmem:[#allocation34_spill] sm:$0xff]  ;;  %v7334_v62 = vld [vmem:[#allocation56_spill] sm:$0xff]  ;;  %v5285_v38 = vpop.permute.xlu1 %1212 }
 0x26c   : > { %v421_v37 = vmul.f32 %v5023_v31, %v7325_v33  ;;  %v7326_v40 = vsel %vm4471_vm4, %v5029_v11, 0.0  ;;  %v556_v28 = vmul.f32 %v7327_v10, %v5124_v49  ;;  %v7328_v11 = vld [vmem:[#allocation43_spill] sm:$0xff]  ;;  %v557_v42 = vmul.f32 %v7327_v10, %v5114_v35  ;;  %v7330_v49 = vld [vmem:[#allocation29_spill] sm:$0xff]  ;;  %v7335_v6 = vld [vmem:[#allocation52_spill] sm:$0xff] }
 0x26d   : > { %v422_v41 = vmul.f32 %v5023_v31, %v7326_v40  ;;  %v852_v19 = vadd.f32 %v836_v22, %v719_v4  ;;  %v853_v60 = vadd.f32 %v837_v58, %v720_v18  ;;  %v620_v31 = vsel %vm618_vm7, %v7329_v16, %v7328_v11  ;;  %v7337_v33 = vld [vmem:[#allocation60_spill] sm:$0xff] }
 0x26e   : > { %v628_v12 = vsel %vm618_vm7, %v7328_v11, %v7329_v16  ;;  %v554_v29 = vmul.f32 %v7330_v49, %v506_v32  ;;  %v619_v27 = vsel %vm618_vm7, %v7332_v8, %v7331_v2  ;;  %v627_v23 = vsel %vm618_vm7, %v7331_v2, %v7332_v8  ;;  %v7340_v32 = vld [vmem:[#allocation69_spill] sm:$0xff]  ;;  %v7343_v2 = vld [vmem:[#allocation67_spill] sm:$0xff] }
 0x26f   : > { %v5255_v48 = vadd.f32 %v969_v1, %v852_v19  ;;  %v5257_v21 = vadd.f32 %v970_v14, %v853_v60  ;;  %v763_v43 = vsel %vm7159_vm10, %v7334_v62, %v7333_v20  ;;  %v437_v47 = vadd.f32 %v421_v37, %v4997_v26  ;;  %v7336_v14 = vld [vmem:[#allocation58_spill] sm:$0xff]  ;;  %v7338_v19 = vld [vmem:[#allocation40_spill] sm:$0xff] }
 0x270   : > { %v438_v35 = vadd.f32 %v422_v41, %v5001_v51  ;;  %v555_v54 = vmul.f32 %v7330_v49, %v486_v36  ;;  %v643_v13 = vsel %vm4579_vm8, %v628_v12, 0.0  ;;  %v644_v53 = vsel %vm4658_vm9, %v620_v31, 0.0  ;;  %v7341_v31 = vld [vmem:[#allocation61_spill] sm:$0xff] }
 0x271   : > { %v755_v25 = vsel %vm7159_vm10, %v7333_v20, %v7334_v62  ;;  %v4042_v50 = vmov 0.0   ;;  %v641_v26 = vsel %vm4579_vm8, %v627_v23, 0.0  ;;  %v642_v51 = vsel %vm4658_vm9, %v619_v27, 0.0  ;;  %v5325_v27 = vpop.permute.xlu1 %1126 }
 0x272   : > { %3028 = vmatprep.mubr.f32.mxu1 %v4042_v50  ;;  %v691_v3 = vmul.f32 %v7335_v6, %v643_v13  ;;  %v692_v22 = vmul.f32 %v7335_v6, %v644_v53  ;;  %v572_v58 = vadd.f32 %v556_v28, %v5100_v44  ;;  %v573_v4 = vadd.f32 %v557_v42, %v440_v39  ;;  %v7339_v28 = vld [vmem:[#allocation73_spill] sm:$0xff] }
 0x273   : > { %v776_v18 = vsel %vm4348_vm1, %v763_v43, 0.0  ;;  %v777_v1 = vsel %vm4471_vm4, %v755_v25, 0.0  ;;  %v762_v37 = vsel %vm7159_vm10, %v7337_v33, %v7336_v14  ;;  %v570_v40 = vadd.f32 %v554_v29, %v437_v47  ;;  %v7342_v29 = vld [vmem:[#allocation74_spill] sm:$0xff]  ;;  %v7344_v47 = vld [vmem:[#allocation63_spill] sm:$0xff] }
 0x274   : > { %v571_v41 = vadd.f32 %v555_v54, %v438_v35  ;;  %v689_v60 = vmul.f32 %v7338_v19, %v641_v26  ;;  %v690_v36 = vmul.f32 %v7338_v19, %v642_v51  ;;  %v754_v44 = vsel %vm7159_vm10, %v7336_v14, %v7337_v33  ;;  %v7345_v26 = vld [vmem:[#allocation77_spill] sm:$0xff]  ;;  %v7346_v14 = vld [vmem:[#allocation23_spill] sm:$0xff] }
 0x275   : > { %v707_v39 = vadd.f32 %v691_v3, %v572_v58  ;;  %v708_v10 = vadd.f32 %v692_v22, %v573_v4  ;;  %v888_v11 = vsel %vm7158_vm11, %v7340_v32, %v7339_v28  ;;  %v896_v16 = vsel %vm7158_vm11, %v7339_v28, %v7340_v32 }
 0x276   : > { %v824_v12 = vmul.f32 %v7341_v31, %v776_v18  ;;  %v825_v42 = vmul.f32 %v7341_v31, %v777_v1  ;;  %v774_v49 = vsel %vm4348_vm1, %v762_v37, 0.0  ;;  %v887_v8 = vsel %vm7158_vm11, %v7343_v2, %v7342_v29  ;;  %v5353_v37 = vpop.permute.xlu1 %1142 }
 0x277   : > { %v775_v23 = vsel %vm4471_vm4, %v754_v44, 0.0  ;;  %v895_v20 = vsel %vm7158_vm11, %v7342_v29, %v7343_v2  ;;  %v705_v62 = vadd.f32 %v689_v60, %v570_v40  ;;  %v706_v43 = vadd.f32 %v690_v36, %v571_v41  ;;  %v7352_v29 = vld [vmem:[#allocation96_spill] sm:$0xff] }
 0x278   : > { %v822_v35 = vmul.f32 %v7344_v47, %v774_v49  ;;  %v823_v54 = vmul.f32 %v7344_v47, %v775_v23  ;;  %v909_v13 = vsel %vm4564_vm6, %v888_v11, 0.0  ;;  %v910_v53 = vsel %vm4658_vm9, %v896_v16, 0.0  ;;  %v7350_v11 = vld [vmem:[#allocation90_spill] sm:$0xff]  ;;  %v7351_v16 = vld [vmem:[#allocation84_spill] sm:$0xff] }
 0x279   : > { %v907_v25 = vsel %vm4564_vm6, %v887_v8, 0.0  ;;  %v957_v51 = vmul.f32 %v7345_v26, %v909_v13  ;;  %v958_v6 = vmul.f32 %v7345_v26, %v910_v53  ;;  %v840_v3 = vadd.f32 %v824_v12, %v707_v39  ;;  %v7357_v26 = vld [vmem:[#allocation88_spill] sm:$0xff] }
 0x27a   : > { %v908_v22 = vsel %vm4658_vm9, %v895_v20, 0.0  ;;  %v841_v58 = vadd.f32 %v825_v42, %v708_v10  ;;  %v838_v4 = vadd.f32 %v822_v35, %v705_v62  ;;  %v839_v18 = vadd.f32 %v823_v54, %v706_v43  ;;  %v7356_v62 = vld [vmem:[#allocation11_spill] sm:$0xff] }
 0x27b   : > { %v955_v1 = vmul.f32 %v4807_v56, %v907_v25  ;;  %vm249_vm15 = vcmp.lt.s32.totalorder %v7346_v14, 240  ;;  %v1020_v33 = vsel %vm7160_vm13, %v4830_v59, %v4887_v61  ;;  %v956_v40 = vmul.f32 %v4807_v56, %v908_v22 }
 0x27c   : > { %v973_v41 = vadd.f32 %v957_v51, %v840_v3  ;;  %v974_v19 = vadd.f32 %v958_v6, %v841_v58  ;;  %v1028_v60 = vsel %vm7160_vm13, %v4887_v61, %v4830_v59  ;;  %vm5364_vm11 = vmand %vm249_vm15, %vm4471_vm4  ;;  %v1156_v56 = vsel %vm1154_vm14, %v4885_v34, %v4890_v9  ;;  %v7349_v61 = vld [vmem:[#allocation95_spill] sm:$0xff] }
 0x27d   : > { %v1164_v44 = vsel %vm1154_vm14, %v4890_v9, %v4885_v34  ;;  %v1163_v59 = vsel %vm1154_vm14, %v4914_v5, %v4906_v0  ;;  %vm1287_vm10 = vcmp.lt.s32.totalorder %v4327_v46, 111  ;;  %v1421_v39 = vmul.f32 0.00390625, %v7349_v61 }
 0x27e   : > { %v1042_v10 = vsel %vm4348_vm1, %v1020_v33, 0.0  ;;  %v971_v28 = vadd.f32 %v955_v1, %v838_v4  ;;  %v972_v32 = vadd.f32 %v956_v40, %v839_v18  ;;  %v1021_v31 = vsel %vm7160_vm13, %v7351_v16, %v7350_v11  ;;  %v7358_v1 = vld [vmem:[#allocation89_spill] sm:$0xff] }
 0x27f   : > { %v1029_v34 = vsel %vm7160_vm13, %v7350_v11, %v7351_v16  ;;  %v1155_v9 = vsel %vm1154_vm14, %v4906_v0, %v4914_v5  ;;  %v1043_v12 = vsel %vm5364_vm11, %v1028_v60, 0.0  ;;  %v1176_v49 = vsel %vm249_vm15, %v1163_v59, 0.0  ;;  %vm5408_vm13 = vmand %vm249_vm15, %vm4658_vm9  ;;  %v7355_v5 = vld [vmem:[#allocation92_spill] sm:$0xff]  ;;  %v1423_v59 = vld [vmem:[%s7035_s3 + $0x8] sm:$0xff] }
 0x280   : > { %v1090_v2 = vmul.f32 %v7352_v29, %v1042_v10  ;;  %v1091_v8 = vmul.f32 %v7352_v29, %v1043_v12  ;;  %v1178_v20 = vsel %vm249_vm15, %v1164_v44, 0.0  ;;  %v1288_v43 = vsel %vm1287_vm10, %v7356_v62, %v7355_v5  ;;  %v1424_v10 = vld [vmem:[%s7035_s3 + $0x10] sm:$0xff] }
 0x281   : > { %v1296_v47 = vsel %vm1287_vm10, %v7355_v5, %v7356_v62  ;;  %v1289_v35 = vsel %vm1287_vm10, %v5198_v15, %v5220_v63  ;;  %v1297_v54 = vsel %vm1287_vm10, %v5220_v63, %v5198_v15  ;;  %v1223_v51 = vmul.f32 %v7357_v26, %v1155_v9 }
 0x282   : > { %v1410_v42 = vpop.xlane.xlu1 %1409  ;;  %v1107_v53 = vadd.f32 %v1091_v8, %v972_v32  ;;  %v1106_v25 = vadd.f32 %v1090_v2, %v971_v28  ;;  %v1224_v6 = vmul.f32 %v7357_v26, %v1176_v49  ;;  %v1044_v22 = vsel %vm4348_vm1, %v1021_v31, 0.0  ;;  %v7359_v32 = vld [vmem:[#allocation102_spill] sm:$0xff]  ;;  %v1425_v2 = vld [vmem:[%s7035_s3 + $0x18] sm:$0xff] }
 0x283   : > { %v1420_v23 = vmul.f32 0.00390625, %v1410_v42  ;;  %v1045_v58 = vsel %vm5364_vm11, %v1029_v34, 0.0  ;;  %v1310_v4 = vsel %vm4564_vm6, %v1288_v43, 0.0  ;;  %v1311_v15 = vsel %vm5408_vm13, %v1296_v47, 0.0  ;;  %v7360_v34 = vld [vmem:[#allocation104_spill] sm:$0xff] }
 0x284   : > { %v1225_v33 = vmul.f32 %v7358_v1, %v1156_v56  ;;  %v1226_v40 = vmul.f32 %v7358_v1, %v1178_v20  ;;  %v1312_v60 = vsel %vm4564_vm6, %v1289_v35, 0.0  ;;  %v1313_v44 = vsel %vm5408_vm13, %v1297_v54, 0.0  ;;  %v1426_v20 = vld [vmem:[%s7035_s3 + $0x20] sm:$0xff] }
 0x285   : > { %v3923_v13 = vpack.c.bf16 %v1421_v39, %v1420_v23  ;;  %v1240_v56 = vadd.f32 %v1224_v6, %v1107_v53  ;;  %v1239_v28 = vadd.f32 %v1223_v51, %v1106_v25  ;;  %v1358_v11 = vmul.f32 %v7359_v32, %v1310_v4  ;;  %v1427_v53 = vld [vmem:[%s7035_s3 + $0x28] sm:$0xff]  ;;  %v1428_v25 = vld [vmem:[%s7035_s3 + $0x30] sm:$0xff]  ;;  %v4014_v1 = vld [vmem:[%s4133_s14 + $0x20] sm:$0xff] }
 0x286   : > { %v1064_v3 = vpop.permute.xlu1 %1063  ;;  %v1359_v16 = vmul.f32 %v7359_v32, %v1311_v15  ;;  %v1360_v9 = vmul.f32 %v7360_v34, %v1312_v60  ;;  %v1361_v12 = vmul.f32 %v7360_v34, %v1313_v44  ;;  %v7363_v51 = vld [vmem:[#allocation20_spill] sm:$0xff]  ;;  %v7364_v6 = vld [vmem:[#allocation27_spill] sm:$0xff] }
 0x287   : > { %v1092_v63 = vmul.f32 %v1064_v3, %v1044_v22  ;;  %v1093_v18 = vmul.f32 %v1064_v3, %v1045_v58  ;;  %3924 = vmatprep.subr.bf16.mxu0 %v3923_v13  ;;  %v1374_v5 = vadd.f32 %v1358_v11, %v1239_v28  ;;  %v496_v3 = vsel %vm485_vm5, %v7364_v6, %v7363_v51  ;;  %v7365_v58 = vld [vmem:[#allocation5_spill] sm:$0xff]  ;;  %v7366_v4 = vld [vmem:[#allocation8_spill] sm:$0xff]  ;;  %v4015_v60 = vld [vmem:[%s4133_s14 + $0x28] sm:$0xff] }
 0x288   : > { %3926 = vmatpush3.bf16.msra.mxu0 %v3923_v13  ;;  %v1375_v8 = vadd.f32 %v1359_v16, %v1240_v56  ;;  %v362_v15 = vsel %vm350_vm2, %v7366_v4, %v7365_v58  ;;  %v7371_v32 = vld [vmem:[#allocation16_spill] sm:$0xff]  ;;  %v7372_v11 = vld [vmem:[#allocation21_spill] sm:$0xff]  ;;  %v510_v34 = vsel %vm246_vm0, %v496_v3, 0.0 }
 0x289   : > { %v1108_v61 = vadd.f32 %v1092_v63, %v973_v41  ;;  %v1109_v39 = vadd.f32 %v1093_v18, %v974_v19  ;;  %v7361_v41 = vld [vmem:[#allocation6_spill] sm:$0xff]  ;;  %v7362_v19 = vld [vmem:[#allocation9_spill] sm:$0xff]  ;;  %v7367_v63 = vld [vmem:[#allocation15_spill] sm:$0xff]  ;;  %v497_v16 = vsel %vm485_vm5, %v7372_v11, %v7371_v32  ;;  %v489_v57 = vsel %vm485_vm5, %v7371_v32, %v7372_v11 }
 0x28a   : > { %v5452_v31 = vpop.permute.xlu1 %1067  ;;  %v361_v29 = vsel %vm350_vm2, %v7362_v19, %v7361_v41  ;;  %v353_v47 = vsel %vm350_vm2, %v7361_v41, %v7362_v19  ;;  %v7374_v41 = vld [vmem:[#allocation30_spill] sm:$0xff]  ;;  %v7375_v19 = vld [vmem:[#allocation36_spill] sm:$0xff]  ;;  %v7378_v3 = vld [vmem:[#allocation45_spill] sm:$0xff] }
 0x28b   : > { %v1241_v42 = vadd.f32 %v1225_v33, %v1108_v61  ;;  %v1242_v49 = vadd.f32 %v1226_v40, %v1109_v39  ;;  %3804 = vmatmul.mubr.msk.f32.vlgmr.msra.gmra.mrb[0].mxu0 %vm1566_vm12, %v1423_v59  ;;  %v377_v13 = vsel %vm4372_vm3, %v361_v29, 0.0  ;;  %v378_v26 = vsel %vm4471_vm4, %v353_v47, 0.0  ;;  %v7368_v33 = vld [vmem:[#allocation2_spill] sm:$0xff]  ;;  %v1429_v61 = vld [vmem:[%s7035_s3 + $0x38] sm:$0xff]  ;;  %v7369_v39 = vld [vmem:[#allocation3_spill] sm:$0xff] }
 0x28c   : > { %3806 = vmatprep.mubr.msk.f32.mxu0 %vm1566_vm12, %v1424_v10  ;;  %v425_v18 = vmul.f32 %v7367_v63, %v377_v13  ;;  %v306_v40 = vmul.f32 %v4014_v1, %v7368_v33  ;;  %v307_v44 = vmul.f32 %v4015_v60, %v7368_v33  ;;  %v354_v59 = vsel %vm350_vm2, %v7365_v58, %v7366_v4  ;;  %v7370_v10 = vld [vmem:[#allocation98_spill] sm:$0xff]  ;;  %v7380_v33 = vld [vmem:[#allocation59_spill] sm:$0xff] }
 0x28d   : > { %v1377_v23 = vadd.f32 %v1361_v12, %v1242_v49  ;;  %v1376_v62 = vadd.f32 %v1360_v9, %v1241_v42  ;;  %v308_v56 = vmul.f32 %v7370_v10, %v7369_v39  ;;  %v426_v28 = vmul.f32 %v7367_v63, %v378_v26  ;;  %v1430_v9 = vld [vmem:[%s7035_s3 + $0x40] sm:$0xff]  ;;  %v7373_v42 = vld [vmem:[#allocation31_spill] sm:$0xff] }
 0x28e   : > { %v5468_v43 = vpop.permute.xlu1 %1079  ;;  %v488_v12 = vsel %vm485_vm5, %v7363_v51, %v7364_v6  ;;  %v558_v49 = vmul.f32 %v7373_v42, %v510_v34  ;;  %v629_v29 = vsel %vm618_vm7, %v7375_v19, %v7374_v41  ;;  %v512_v47 = vsel %vm246_vm0, %v497_v16, 0.0  ;;  %v7377_v6 = vld [vmem:[#allocation39_spill] sm:$0xff]  ;;  %v7379_v1 = vld [vmem:[#allocation62_spill] sm:$0xff] }
 0x28f   : > { %3807 = vmatmul.mubr.msk.f32.gmra.mrb[2].mxu0 %vm1566_vm12, %v1425_v2  ;;  %v3927_v35 = vpack.c.bf16 %v1377_v23, %v1375_v8  ;;  %v3929_v54 = vpack.c.bf16 %v1376_v62, %v1374_v5  ;;  %v379_v2 = vsel %vm4372_vm3, %v362_v15, 0.0  ;;  %v441_v23 = vadd.f32 %v425_v18, %v306_v40  ;;  %v1432_v15 = vld [vmem:[%s7035_s3 + $0x50] sm:$0xff]  ;;  %v7384_v11 = vld [vmem:[#allocation54_spill] sm:$0xff] }
 0x290   : > { %3809 = vmatprep.mubr.msk.f32.mxu0 %vm1566_vm12, %v1426_v20  ;;  %v559_v20 = vmul.f32 %v7373_v42, %v488_v12  ;;  %v621_v5 = vsel %vm618_vm7, %v7374_v41, %v7375_v19  ;;  %v380_v62 = vsel %vm4471_vm4, %v354_v59, 0.0  ;;  %v442_v51 = vadd.f32 %v426_v28, %v307_v44  ;;  %v1433_v12 = vld [vmem:[%s7035_s3 + $0x58] sm:$0xff] }
 0x291   : > { %3928 = vmatprep.subr.bf16.mxu0 %v3927_v35  ;;  %3943 = vmatprep.subr.bf16.mxu1 %v3927_v35  ;;  %v7376_v35 = vld [vmem:[#allocation4_spill] sm:$0xff]  ;;  %v630_v58 = vsel %vm618_vm7, %v7378_v3, %v7377_v6  ;;  %v645_v4 = vsel %vm4579_vm8, %v629_v29, 0.0  ;;  %v574_v63 = vadd.f32 %v558_v49, %v441_v23  ;;  %v646_v18 = vsel %vm4658_vm9, %v621_v5, 0.0  ;;  %v7385_v49 = vld [vmem:[#allocation51_spill] sm:$0xff]  ;;  %v7386_v41 = vld [vmem:[#allocation57_spill] sm:$0xff] }
 0x292   : > { %v5490_v22 = vpop.permute.xlu1 %1087  ;;  %3930 = vmatpush1.bf16.msra.mxu0 %v3929_v54  ;;  %3947 = vmatpush1.bf16.msra.mxu1 %v3929_v54  ;;  %v427_v54 = vmul.f32 %v7376_v35, %v379_v2  ;;  %v428_v13 = vmul.f32 %v7376_v35, %v380_v62  ;;  %vm7381_vm0 = vcmp.lt.s32.totalorder %v4327_v46, 1  ;;  %v575_v59 = vadd.f32 %v559_v20, %v442_v51  ;;  %v1434_v29 = vld [vmem:[%s7035_s3 + $0x60] sm:$0xff]  ;;  %v7389_v20 = vld [vmem:[#allocation64_spill] sm:$0xff] }
 0x293   : > { %3810 = vmatmul.mubr.msk.f32.gmra.mrb[4].mxu0 %vm1566_vm12, %v1427_v53  ;;  %v1431_v53 = vld [vmem:[%s7035_s3 + $0x48] sm:$0xff]  ;;  %v756_v40 = vsel %vm7381_vm0, %v7380_v33, %v7379_v1  ;;  %vm7382_vm2 = vmmov %vm7381_vm0  ;;  %v622_v28 = vsel %vm618_vm7, %v7377_v6, %v7378_v3  ;;  %v647_v32 = vsel %vm4579_vm8, %v630_v58, 0.0  ;;  %v693_v16 = vmul.f32 %v7384_v11, %v645_v4  ;;  %v7391_v35 = vld [vmem:[#allocation70_spill] sm:$0xff] }
 0x294   : > { %3812 = vmatprep.mubr.msk.f32.mxu0 %vm1566_vm12, %v1428_v25  ;;  %v4016_v25 = vld [vmem:[%s4133_s14 + $0x38] sm:$0xff]  ;;  %v764_v60 = vsel %vm7382_vm2, %v7379_v1, %v7380_v33  ;;  %v443_v34 = vadd.f32 %v427_v54, %v308_v56  ;;  %v694_v42 = vmul.f32 %v7384_v11, %v646_v18  ;;  %vm7387_vm3 = vmmov %vm7381_vm0  ;;  %v779_v56 = vsel %vm4471_vm4, %v756_v40, 0.0  ;;  %v7398_v6 = vld [vmem:[#allocation42_spill] sm:$0xff] }
 0x295   : > { %v309_v26 = vmul.f32 %v4016_v25, %v7369_v39  ;;  %v765_v19 = vsel %vm7387_vm3, %v7386_v41, %v7385_v49  ;;  %v778_v17 = vsel %vm4348_vm1, %v764_v60, 0.0  ;;  %v648_v2 = vsel %vm4658_vm9, %v622_v28, 0.0  ;;  %vm7388_vm5 = vmmov %vm7381_vm0  ;;  %v7395_v25 = vld [vmem:[#allocation71_spill] sm:$0xff]  ;;  %v7399_v11 = vld [vmem:[#allocation65_spill] sm:$0xff] }
 0x296   : > { %v5533_v8 = vpop.permute.xlu1 %1343  ;;  %v757_v23 = vsel %vm7388_vm5, %v7385_v49, %v7386_v41  ;;  %v826_v5 = vmul.f32 %v7389_v20, %v778_v17  ;;  %v827_v62 = vmul.f32 %v7389_v20, %v779_v56  ;;  %vm7392_vm7 = vcmp.lt.s32.totalorder %v4327_v46, 127  ;;  %v1435_v18 = vld [vmem:[%s7035_s3 + $0x68] sm:$0xff]  ;;  %v1438_v20 = vld [vmem:[%s7035_s3 + $0x80] sm:$0xff] }
 0x297   : > { %3813 = vmatmul.mubr.msk.f32.gmra.mrb[6].mxu0 %vm1566_vm12, %v1429_v61  ;;  %v7383_v61 = vld [vmem:[#allocation32_spill] sm:$0xff]  ;;  %vm7393_vm8 = vmmov %vm7392_vm7  ;;  %v695_v3 = vmul.f32 %v7398_v6, %v647_v32  ;;  %v780_v58 = vsel %vm4348_vm1, %v765_v19, 0.0  ;;  %v696_v1 = vmul.f32 %v7398_v6, %v648_v2  ;;  %v709_v33 = vadd.f32 %v693_v16, %v574_v63  ;;  %v7402_v19 = vld [vmem:[#allocation83_spill] sm:$0xff] }
 0x298   : > { %3815 = vmatprep.mubr.msk.f32.mxu0 %vm1566_vm12, %v1430_v9  ;;  %v560_v39 = vmul.f32 %v7383_v61, %v512_v47  ;;  %v561_v10 = vmul.f32 %v7383_v61, %v489_v57  ;;  %v444_v9 = vadd.f32 %v428_v13, %v309_v26  ;;  %v7390_v47 = vld [vmem:[#allocation76_spill] sm:$0xff]  ;;  %vm7396_vm0 = vmmov %vm7392_vm7  ;;  %v710_v40 = vadd.f32 %v694_v42, %v575_v59 }
 0x299   : > { %v889_v54 = vsel %vm7392_vm7, %v7391_v35, %v7390_v47  ;;  %v897_v13 = vsel %vm7393_vm8, %v7390_v47, %v7391_v35  ;;  %vm7397_vm2 = vmmov %vm7396_vm0  ;;  %v781_v60 = vsel %vm4471_vm4, %v757_v23, 0.0  ;;  %v1436_v61 = vld [vmem:[%s7035_s3 + $0x70] sm:$0xff]  ;;  %v842_v30 = vadd.f32 %v826_v5, %v709_v33  ;;  %v1439_v33 = vld [vmem:[%s7035_s3 + $0x88] sm:$0xff] }
 0x29a   : > { %v5576_v44 = vpop.permute.xlu1 %1347  ;;  %v576_v4 = vadd.f32 %v560_v39, %v443_v34  ;;  %v911_v28 = vsel %vm4564_vm6, %v889_v54, 0.0  ;;  %v912_v63 = vsel %vm4658_vm9, %v897_v13, 0.0  ;;  %v843_v32 = vadd.f32 %v827_v62, %v710_v40  ;;  %v7404_v5 = vld [vmem:[#allocation112_spill] sm:$0xff]  ;;  %v7405_v62 = vld [vmem:[#allocation85_spill] sm:$0xff]  ;;  %v7408_v54 = vld [vmem:[#allocation22_spill] sm:$0xff] }
 0x29b   : > { %3816 = vmatmul.mubr.msk.f32.gmra.mrb[8].mxu0 %vm1566_vm12, %v1431_v53  ;;  %v7394_v53 = vld [vmem:[#allocation75_spill] sm:$0xff]  ;;  %v828_v16 = vmul.f32 %v7399_v11, %v780_v58  ;;  %v829_v34 = vmul.f32 %v7399_v11, %v781_v60  ;;  %vm7406_vm4 = vcmp.lt.s32.totalorder %v4327_v46, 113  ;;  %v7409_v13 = vld [vmem:[#allocation86_spill] sm:$0xff]  ;;  %v7414_v40 = vld [vmem:[#allocation93_spill] sm:$0xff] }
 0x29c   : > { %3818 = vmatprep.mubr.msk.f32.mxu0 %vm1566_vm12, %v1432_v15  ;;  %v890_v26 = vsel %vm7396_vm0, %v7395_v25, %v7394_v53  ;;  %v898_v51 = vsel %vm7397_vm2, %v7394_v53, %v7395_v25  ;;  %v577_v15 = vadd.f32 %v561_v10, %v444_v9  ;;  %v7400_v9 = vld [vmem:[#allocation108_spill] sm:$0xff]  ;;  %v711_v49 = vadd.f32 %v695_v3, %v576_v4  ;;  %vm7410_vm3 = vmmov %vm7406_vm4  ;;  %v7415_v60 = vld [vmem:[#allocation94_spill] sm:$0xff] }
 0x29d   : > { %v913_v39 = vsel %vm4564_vm6, %v890_v26, 0.0  ;;  %v914_v10 = vsel %vm4658_vm9, %v898_v51, 0.0  ;;  %v1022_v47 = vsel %vm7406_vm4, %v7405_v62, %v7404_v5  ;;  %vm7407_vm9 = vmmov %vm7406_vm4  ;;  %v1023_v53 = vsel %vm7410_vm3, %v7409_v13, %v7408_v54 }
 0x29e   : > { %v998_v57 = vpop.permute.xlu1 %997  ;;  %v712_v41 = vadd.f32 %v696_v1, %v577_v15  ;;  %v961_v17 = vmul.f32 %v7402_v19, %v913_v39  ;;  %v962_v56 = vmul.f32 %v7402_v19, %v914_v10  ;;  %v1030_v35 = vsel %vm7407_vm9, %v7404_v5, %v7405_v62  ;;  %vm7411_vm5 = vmmov %vm7410_vm3 }
 0x29f   : > { %3819 = vmatmul.mubr.msk.f32.gmra.mrb[10].mxu0 %vm1566_vm12, %v1433_v12  ;;  %v7401_v12 = vld [vmem:[#allocation110_spill] sm:$0xff]  ;;  %v1031_v25 = vsel %vm7411_vm5, %v7408_v54, %v7409_v13  ;;  %vm7412_vm7 = vmmov %vm7410_vm3  ;;  %v844_v4 = vadd.f32 %v828_v16, %v711_v49 }
 0x2a0   : > { %3821 = vmatprep.mubr.msk.f32.mxu0 %vm1566_vm12, %v1434_v29  ;;  %v1168_v42 = vsel %vm1154_vm14, %v7401_v12, %v7400_v9  ;;  %v7403_v29 = vld [vmem:[#allocation78_spill] sm:$0xff]  ;;  %v1160_v51 = vsel %vm1154_vm14, %v7400_v9, %v7401_v12  ;;  %vm7413_vm8 = vmmov %vm7410_vm3  ;;  %v845_v15 = vadd.f32 %v829_v34, %v712_v41  ;;  %v1049_v11 = vsel %vm5364_vm11, %v1031_v25, 0.0 }
 0x2a1   : > { %v959_v2 = vmul.f32 %v7403_v29, %v911_v28  ;;  %v960_v23 = vmul.f32 %v7403_v29, %v912_v63  ;;  %v1186_v6 = vsel %vm249_vm15, %v1168_v42, 0.0  ;;  %v1440_v28 = vld [vmem:[%s7035_s3 + $0x90] sm:$0xff]  ;;  %v1048_v63 = vsel %vm4348_vm1, %v1023_v53, 0.0  ;;  %vm7423_vm0 = vmmov %vm7410_vm3 }
 0x2a2   : > { %v5650_v59 = vpop.permute.xlu1 %1011  ;;  %v1233_v16 = vmul.f32 %v5285_v38, %v1160_v51  ;;  %v1047_v34 = vsel %vm5364_vm11, %v1030_v35, 0.0  ;;  %v1234_v12 = vmul.f32 %v5285_v38, %v1186_v6  ;;  %v977_v41 = vadd.f32 %v961_v17, %v844_v4  ;;  %v1441_v38 = vld [vmem:[%s7035_s3 + $0x98] sm:$0xff]  ;;  %v1442_v17 = vld [vmem:[%s7035_s3 + $0xa0] sm:$0xff]  ;;  %v1443_v51 = vld [vmem:[%s7035_s3 + $0xa8] sm:$0xff] }
 0x2a3   : > { %3822 = vmatmul.mubr.msk.f32.gmra.mrb[12].mxu0 %vm1566_vm12, %v1435_v18  ;;  %v1095_v29 = vmul.f32 %v5452_v31, %v1047_v34  ;;  %v975_v5 = vadd.f32 %v959_v2, %v842_v30  ;;  %v976_v62 = vadd.f32 %v960_v23, %v843_v32  ;;  %v1158_v53 = vsel %vm1154_vm14, %v7414_v40, %v7415_v60  ;;  %vm7424_vm2 = vmmov %vm7423_vm0 }
 0x2a4   : > { %3824 = vmatprep.mubr.msk.f32.mxu0 %vm1566_vm12, %v1436_v61  ;;  %v1046_v61 = vsel %vm4348_vm1, %v1022_v47, 0.0  ;;  %v7417_v47 = vld [vmem:[#allocation97_spill] sm:$0xff]  ;;  %vm7429_vm4 = vmmov %vm7423_vm0 }
 0x2a5   : > { %v1094_v19 = vmul.f32 %v5452_v31, %v1046_v61  ;;  %v1096_v35 = vmul.f32 %v7417_v47, %v1048_v63  ;;  %v1097_v54 = vmul.f32 %v7417_v47, %v1049_v11  ;;  %v1449_v47 = vld [vmem:[%s7035_s3 + $0xd8] sm:$0xff]  ;;  %vm7430_vm9 = vmmov %vm7423_vm0 }
 0x2a6   : > { %v1014_v26 = vpop.permute.xlu1 %1013  ;;  %vm7431_vm3 = vmmov %vm7423_vm0 }
 0x2a7   : > { %v1025_v3 = vsel %vm7412_vm7, %v998_v57, %v1014_v26  ;;  %v1033_v58 = vsel %vm7413_vm8, %v1014_v26, %v998_v57  ;;  %3825 = vmatmul.mubr.msk.f32.gmra.mrb[14].mxu0 %vm1566_vm12, %v1437_v55  ;;  %v1166_v57 = vsel %vm1154_vm14, %v7415_v60, %v7414_v40  ;;  %v978_v55 = vadd.f32 %v962_v56, %v845_v15  ;;  %v7420_v60 = vld [vmem:[#allocation107_spill] sm:$0xff]  ;;  %vm7432_vm5 = vmmov %vm7423_vm0 }
 0x2a8   : > { %v1052_v18 = vsel %vm4348_vm1, %v1025_v3, 0.0  ;;  %v1053_v1 = vsel %vm5364_vm11, %v1033_v58, 0.0  ;;  %3827 = vmatprep.mubr.msk.f32.mxu0 %vm1566_vm12, %v1438_v20  ;;  %v7416_v20 = vld [vmem:[#allocation105_spill] sm:$0xff]  ;;  %v1182_v25 = vsel %vm249_vm15, %v1166_v57, 0.0  ;;  %v1157_v26 = vsel %vm1154_vm14, %v5325_v27, %v5353_v37  ;;  %v1444_v3 = vld [vmem:[%s7035_s3 + $0xb0] sm:$0xff]  ;;  %v7418_v58 = vld [vmem:[#allocation91_spill] sm:$0xff] }
 0x2a9   : > { %v1100_v39 = vmul.f32 %v5468_v43, %v1052_v18  ;;  %v1101_v10 = vmul.f32 %v5468_v43, %v1053_v1  ;;  %v1165_v43 = vsel %vm1154_vm14, %v5353_v37, %v5325_v27  ;;  %v1112_v23 = vadd.f32 %v1096_v35, %v977_v41  ;;  %v7419_v18 = vld [vmem:[#allocation101_spill] sm:$0xff]  ;;  %v1446_v41 = vld [vmem:[%s7035_s3 + $0xc0] sm:$0xff] }
 0x2aa   : > { %v1260_v9 = vpop.permute.xlu1 %1259  ;;  %v1180_v30 = vsel %vm249_vm15, %v1165_v43, 0.0  ;;  %v1113_v6 = vadd.f32 %v1097_v54, %v978_v55  ;;  %v1110_v27 = vadd.f32 %v1094_v19, %v975_v5  ;;  %v1111_v37 = vadd.f32 %v1095_v29, %v976_v62  ;;  %v7421_v43 = vld [vmem:[#allocation109_spill] sm:$0xff]  ;;  %v1448_v62 = vld [vmem:[%s7035_s3 + $0xd0] sm:$0xff]  ;;  %v1450_v35 = vld [vmem:[%s7035_s3 + $0xe0] sm:$0xff]  ;;  %v5818_v54 = vpop.permute.xlu0 %1015 }
 0x2ab   : > { %v1116_v42 = vadd.f32 %v1100_v39, %v5222_v7  ;;  %v1117_v49 = vadd.f32 %v1101_v10, %v5224_v24  ;;  %3828 = vmatmul.mubr.msk.f32.gmra.mrb[16].mxu0 %vm1566_vm12, %v1439_v33  ;;  %v1290_v7 = vsel %vm1287_vm10, %v1260_v9, %v7416_v20  ;;  %v1298_v24 = vsel %vm1287_vm10, %v7416_v20, %v1260_v9 }
 0x2ac   : > { %3830 = vmatprep.mubr.msk.f32.mxu0 %vm1566_vm12, %v1440_v28  ;;  %v1314_v32 = vsel %vm4564_vm6, %v1290_v7, 0.0  ;;  %v1315_v2 = vsel %vm5408_vm13, %v1298_v24, 0.0  ;;  %v1229_v4 = vmul.f32 %v7418_v58, %v1158_v53  ;;  %v1230_v15 = vmul.f32 %v7418_v58, %v1182_v25  ;;  %v1447_v7 = vld [vmem:[%s7035_s3 + $0xc8] sm:$0xff]  ;;  %v1452_v25 = vld [vmem:[%s7035_s3 + $0xf0] sm:$0xff] }
 0x2ad   : > { %v5746_v56 = vadd.f32 %v1233_v16, %v1116_v42  ;;  %v5748_v31 = vadd.f32 %v1234_v12, %v1117_v49  ;;  %v1227_v1 = vmul.f32 %v7419_v18, %v1157_v26  ;;  %v1228_v33 = vmul.f32 %v7419_v18, %v1180_v30  ;;  %v1445_v16 = vld [vmem:[%s7035_s3 + $0xb8] sm:$0xff]  ;;  %v1451_v53 = vld [vmem:[%s7035_s3 + $0xe8] sm:$0xff] }
 0x2ae   : > { %v1262_v13 = vpop.permute.xlu1 %1261  ;;  %v1362_v57 = vmul.f32 %v7420_v60, %v1314_v32  ;;  %v1363_v61 = vmul.f32 %v7420_v60, %v1315_v2  ;;  %v1245_v28 = vadd.f32 %v1229_v4, %v1112_v23  ;;  %v1246_v34 = vadd.f32 %v1230_v15, %v1113_v6  ;;  %v1264_v30 = vpop.permute.xlu0 %1263  ;;  %v1453_v32 = vld [vmem:[%s7035_s3 + $0xf8] sm:$0xff]  ;;  %v1454_v2 = vld [vmem:[%s7035_s3 + $0x100] sm:$0xff]  ;;  %v1456_v6 = vld [vmem:[%s7035_s3 + $0x110] sm:$0xff] }
 0x2af   : > { %3831 = vmatmul.mubr.msk.f32.gmra.mrb[18].mxu0 %vm1566_vm12, %v1441_v38  ;;  %v1243_v9 = vadd.f32 %v1227_v1, %v1110_v27  ;;  %v1244_v12 = vadd.f32 %v1228_v33, %v1111_v37  ;;  %v7422_v37 = vld [vmem:[#allocation87_spill] sm:$0xff]  ;;  %v1457_v18 = vld [vmem:[%s7035_s3 + $0x118] sm:$0xff] }
 0x2b0   : > { %3833 = vmatprep.mubr.msk.f32.mxu0 %vm1566_vm12, %v1442_v17  ;;  %v1032_v58 = vsel %vm7424_vm2, %v5650_v59, %v7422_v37 }
 0x2b1   : > { %v1378_v19 = vadd.f32 %v1362_v57, %v1243_v9  ;;  %v1379_v38 = vadd.f32 %v1363_v61, %v1244_v12  ;;  %v1051_v33 = vsel %vm5364_vm11, %v1032_v58, 0.0  ;;  %v7426_v9 = vld [vmem:[#allocation103_spill] sm:$0xff] }
 0x2b2   : > { %v1278_v40 = vpop.permute.xlu1 %1277  ;;  %v1280_v27 = vpop.permute.xlu0 %1279 }
 0x2b3   : > { %v1291_v39 = vsel %vm1287_vm10, %v1262_v13, %v1278_v40  ;;  %v1299_v10 = vsel %vm1287_vm10, %v1278_v40, %v1262_v13  ;;  %3834 = vmatmul.mubr.msk.f32.gmra.mrb[20].mxu0 %vm1566_vm12, %v1443_v51  ;;  %v1455_v51 = vld [vmem:[%s7035_s3 + $0x108] sm:$0xff] }
 0x2b4   : > { %v1316_v63 = vsel %vm4564_vm6, %v1291_v39, 0.0  ;;  %v1317_v11 = vsel %vm5408_vm13, %v1299_v10, 0.0  ;;  %3836 = vmatprep.mubr.msk.f32.mxu0 %vm1566_vm12, %v1444_v3  ;;  %v1024_v3 = vsel %vm7423_vm0, %v7422_v37, %v5650_v59  ;;  %v1458_v59 = vld [vmem:[%s7035_s3 + $0x120] sm:$0xff]  ;;  %v7425_v39 = vld [vmem:[#allocation99_spill] sm:$0xff] }
 0x2b5   : > { %v1364_v42 = vmul.f32 %v7421_v43, %v1316_v63  ;;  %v1365_v49 = vmul.f32 %v7421_v43, %v1317_v11  ;;  %v1050_v1 = vsel %vm4348_vm1, %v1024_v3, 0.0  ;;  %v1459_v63 = vld [vmem:[%s7035_s3 + $0x128] sm:$0xff]  ;;  %v1292_v11 = vsel %vm1287_vm10, %v1264_v30, %v1280_v27 }
 0x2b6   : > { %v5800_v55 = vpop.permute.xlu1 %1220  ;;  %v5868_v40 = vpop.permute.xlu0 %1134  ;;  %v1098_v10 = vmul.f32 %v7425_v39, %v1050_v1 }
 0x2b7   : > { %v1380_v29 = vadd.f32 %v1364_v42, %v1245_v28  ;;  %3837 = vmatmul.mubr.msk.f32.gmra.mrb[22].mxu0 %vm1566_vm12, %v1445_v16  ;;  %v1381_v20 = vadd.f32 %v1365_v49, %v1246_v34  ;;  %v1099_v28 = vmul.f32 %v7425_v39, %v1051_v33  ;;  %v1300_v16 = vsel %vm1287_vm10, %v1280_v27, %v1264_v30  ;;  %v1460_v34 = vld [vmem:[%s7035_s3 + $0x130] sm:$0xff] }
 0x2b8   : > { %3839 = vmatprep.mubr.msk.f32.mxu0 %vm1566_vm12, %v1446_v41  ;;  %v1318_v49 = vsel %vm4564_vm6, %v1292_v11, 0.0  ;;  %v1319_v41 = vsel %vm5408_vm13, %v1300_v16, 0.0  ;;  %v1466_v16 = vld [vmem:[%s7035_s3 + $0x160] sm:$0xff] }
 0x2b9   : > { %v3931_v24 = vpack.c.bf16 %v1381_v20, %v1379_v38  ;;  %v3933_v17 = vpack.c.bf16 %v1380_v29, %v1378_v19  ;;  %v7427_v29 = vld [vmem:[#allocation80_spill] sm:$0xff]  ;;  %v7428_v20 = vld [vmem:[#allocation79_spill] sm:$0xff] }
 0x2ba   : > { %v1131_v5 = vpop.permute.xlu1 %1130  ;;  %v1151_v19 = vpop.permute.xlu0 %1150  ;;  %v1115_v38 = vadd.f32 %v1099_v28, %v7427_v29  ;;  %v7435_v29 = vld [vmem:[#allocation82_spill] sm:$0xff] }
 0x2bb   : > { %3840 = vmatmul.mubr.msk.f32.gmra.mrb[24].mxu0 %vm1566_vm12, %v1447_v7  ;;  %3932 = vmatprep.subr.bf16.mxu0 %v3931_v24  ;;  %v1114_v7 = vadd.f32 %v1098_v10, %v7428_v20  ;;  %v7433_v10 = vld [vmem:[#allocation100_spill] sm:$0xff] }
 0x2bc   : > { %3944 = vmatprep.subr.bf16.mxu1 %v3931_v24  ;;  %3934 = vmatpush1.bf16.msra.mxu0 %v3933_v17  ;;  %v1461_v24 = vld [vmem:[%s7035_s3 + $0x138] sm:$0xff] }
 0x2bd   : > { %3948 = vmatpush1.bf16.msra.mxu1 %v3933_v17  ;;  %3842 = vmatprep.mubr.msk.f32.mxu0 %vm1566_vm12, %v1448_v62  ;;  %v1462_v17 = vld [vmem:[%s7035_s3 + $0x140] sm:$0xff] }
 0x2be   : > { %v1147_v13 = vpop.permute.xlu1 %1146  ;;  %v1268_v30 = vpop.permute.xlu0 %1267 }
 0x2bf   : > { %3843 = vmatmul.mubr.msk.f32.gmra.mrb[26].mxu0 %vm1566_vm12, %v1449_v47  ;;  %v1167_v15 = vsel %vm1154_vm14, %v1147_v13, %v1131_v5  ;;  %v1159_v57 = vsel %vm1154_vm14, %v1131_v5, %v1147_v13  ;;  %v1367_v13 = vmul.f32 %v5533_v8, %v1319_v41 }
 0x2c0   : > { %3845 = vmatprep.mubr.msk.f32.mxu0 %vm1566_vm12, %v1450_v35  ;;  %v1184_v61 = vsel %vm249_vm15, %v1167_v15, 0.0  ;;  %v1231_v12 = vmul.f32 %v7426_v9, %v1159_v57  ;;  %v1366_v35 = vmul.f32 %v5533_v8, %v1318_v49  ;;  %v7434_v49 = vld [vmem:[#allocation81_spill] sm:$0xff] }
 0x2c1   : > { %v1232_v43 = vmul.f32 %v7426_v9, %v1184_v61  ;;  %v1467_v9 = vld [vmem:[%s7035_s3 + $0x168] sm:$0xff] }
 0x2c2   : > { %v5828_v26 = vpop.permute.xlu1 %1351  ;;  %v1247_v5 = vadd.f32 %v1231_v12, %v1114_v7  ;;  %v1161_v12 = vsel %vm1154_vm14, %v5868_v40, %v1151_v19 }
 0x2c3   : > { %3846 = vmatmul.mubr.msk.f32.gmra.mrb[28].mxu0 %vm1566_vm12, %v1451_v53  ;;  %v1248_v62 = vadd.f32 %v1232_v43, %v1115_v38 }
 0x2c4   : > { %3848 = vmatprep.mubr.msk.f32.mxu0 %vm1566_vm12, %v1452_v25 }
 0x2c5   : > { %v1383_v58 = vadd.f32 %v1367_v13, %v1248_v62 }
 0x2c6   : > { %v1000_v23 = vpop.permute.xlu1 %999 }
 0x2c7   : > { %3849 = vmatmul.mubr.msk.f32.gmra.mrb[30].mxu0 %vm1566_vm12, %v1453_v32  ;;  %v1026_v32 = vsel %vm7429_vm4, %v1000_v23, %v5818_v54 }
 0x2c8   : > { %3851 = vmatprep.mubr.msk.f32.mxu0 %vm1566_vm12, %v1454_v2  ;;  %v1034_v2 = vsel %vm7430_vm9, %v5818_v54, %v1000_v23  ;;  %v1464_v54 = vld [vmem:[%s7035_s3 + $0x150] sm:$0xff]  ;;  %v1382_v23 = vadd.f32 %v1366_v35, %v1247_v5  ;;  %v1054_v15 = vsel %vm4348_vm1, %v1026_v32, 0.0 }
 0x2c9   : > { %v1102_v28 = vmul.f32 %v7433_v10, %v1054_v15 }
 0x2ca   : > { %v1002_v4 = vpop.permute.xlu1 %1001 }
 0x2cb   : > { %3852 = vmatmul.mubr.msk.f32.gmra.mrb[32].mxu0 %vm1566_vm12, %v1455_v51  ;;  %v1118_v41 = vadd.f32 %v1102_v28, %v7434_v49  ;;  %v1479_v28 = vld [vmem:[%s7035_s3 + $0x1c8] sm:$0xff]  ;;  %v2232_v49 = vld [vmem:[%s7034_s2 + $0xc0] sm:$0xff] }
 0x2cc   : > { %3854 = vmatprep.mubr.msk.f32.mxu0 %vm1566_vm12, %v1456_v6  ;;  %v1463_v6 = vld [vmem:[%s7035_s3 + $0x148] sm:$0xff] }
 0x2ce   : > { %v1018_v60 = vpop.permute.xlu1 %1017 }
 0x2cf   : > { %3855 = vmatmul.mubr.msk.f32.gmra.mrb[34].mxu0 %vm1566_vm12, %v1457_v18  ;;  %v1055_v18 = vsel %vm5364_vm11, %v1034_v2, 0.0  ;;  %v1035_v57 = vsel %vm7432_vm5, %v1018_v60, %v1002_v4 }
 0x2d0   : > { %3857 = vmatprep.mubr.msk.f32.mxu0 %vm1566_vm12, %v1458_v59  ;;  %v1027_v59 = vsel %vm7431_vm3, %v1002_v4, %v1018_v60  ;;  %v1057_v60 = vsel %vm5364_vm11, %v1035_v57, 0.0  ;;  %v1475_v57 = vld [vmem:[%s7035_s3 + $0x1a8] sm:$0xff] }
 0x2d1   : > { %v1056_v4 = vsel %vm4348_vm1, %v1027_v59, 0.0  ;;  %v1474_v59 = vld [vmem:[%s7035_s3 + $0x1a0] sm:$0xff] }
 0x2d2   : > { %v1266_v42 = vpop.permute.xlu1 %1265  ;;  %v1104_v7 = vmul.f32 %v5490_v22, %v1056_v4  ;;  %v1482_v4 = vld [vmem:[%s7035_s3 + $0x1e0] sm:$0xff] }
 0x2d3   : > { %3858 = vmatmul.mubr.msk.f32.gmra.mrb[36].mxu0 %vm1566_vm12, %v1459_v63  ;;  %v1103_v63 = vmul.f32 %v7433_v10, %v1055_v18  ;;  %v1478_v10 = vld [vmem:[%s7035_s3 + $0x1c0] sm:$0xff] }
 0x2d4   : > { %3860 = vmatprep.mubr.msk.f32.mxu0 %vm1566_vm12, %v1460_v34  ;;  %v1120_v2 = vadd.f32 %v1104_v7, %v5255_v48  ;;  %v1492_v7 = vld [vmem:[%s7035_s3 + $0x230] sm:$0xff] }
 0x2d6   : > { %v1282_v47 = vpop.permute.xlu1 %1281 }
 0x2d7   : > { %v1293_v53 = vsel %vm1287_vm10, %v1266_v42, %v1282_v47  ;;  %v1301_v25 = vsel %vm1287_vm10, %v1282_v47, %v1266_v42  ;;  %3861 = vmatmul.mubr.msk.f32.gmra.mrb[38].mxu0 %vm1566_vm12, %v1461_v24  ;;  %v1468_v42 = vld [vmem:[%s7035_s3 + $0x170] sm:$0xff]  ;;  %v1105_v24 = vmul.f32 %v5490_v22, %v1057_v60  ;;  %v1469_v47 = vld [vmem:[%s7035_s3 + $0x178] sm:$0xff]  ;;  %v1483_v60 = vld [vmem:[%s7035_s3 + $0x1e8] sm:$0xff] }
 0x2d8   : > { %v1320_v8 = vsel %vm4564_vm6, %v1293_v53, 0.0  ;;  %v1321_v51 = vsel %vm5408_vm13, %v1301_v25, 0.0  ;;  %3863 = vmatprep.mubr.msk.f32.mxu0 %vm1566_vm12, %v1462_v17  ;;  %v7436_v17 = vld [vmem:[#allocation106_spill] sm:$0xff] }
 0x2d9   : > { %v1368_v27 = vmul.f32 %v5576_v44, %v1320_v8  ;;  %v1369_v37 = vmul.f32 %v5576_v44, %v1321_v51  ;;  %v1465_v44 = vld [vmem:[%s7035_s3 + $0x158] sm:$0xff]  ;;  %v1235_v5 = vmul.f32 %v7436_v17, %v1161_v12  ;;  %v1470_v53 = vld [vmem:[%s7035_s3 + $0x180] sm:$0xff]  ;;  %v1121_v8 = vadd.f32 %v1105_v24, %v5257_v21  ;;  %v1471_v21 = vld [vmem:[%s7035_s3 + $0x188] sm:$0xff] }
 0x2da   : > { %v1137_v3 = vpop.permute.xlu1 %1136  ;;  %v1484_v12 = vld [vmem:[%s7035_s3 + $0x1f0] sm:$0xff]  ;;  %v1493_v24 = vld [vmem:[%s7035_s3 + $0x238] sm:$0xff] }
 0x2db   : > { %v1384_v1 = vadd.f32 %v1368_v27, %v5746_v56  ;;  %v1385_v33 = vadd.f32 %v1369_v37, %v5748_v31  ;;  %3864 = vmatmul.mubr.msk.f32.gmra.mrb[40].mxu0 %vm1566_vm12, %v1463_v6  ;;  %v1169_v56 = vsel %vm1154_vm14, %v1151_v19, %v5868_v40  ;;  %v1284_v31 = vpop.permute.xlu0 %1283  ;;  %v1119_v40 = vadd.f32 %v1103_v63, %v7435_v29  ;;  %v2228_v63 = vld [vmem:[%s7034_s2 + $0xa0] sm:$0xff]  ;;  %v1489_v29 = vld [vmem:[%s7035_s3 + $0x218] sm:$0xff] }
 0x2dc   : > { %3866 = vmatprep.mubr.msk.f32.mxu0 %vm1566_vm12, %v1464_v54  ;;  %v1188_v43 = vsel %vm249_vm15, %v1169_v56, 0.0  ;;  %v1294_v52 = vsel %vm1287_vm10, %v1268_v30, %v1284_v31  ;;  %v1302_v36 = vsel %vm1287_vm10, %v1284_v31, %v1268_v30  ;;  %v1251_v25 = vadd.f32 %v1235_v5, %v1118_v41  ;;  %v1477_v56 = vld [vmem:[%s7035_s3 + $0x1b8] sm:$0xff]  ;;  %v1488_v41 = vld [vmem:[%s7035_s3 + $0x210] sm:$0xff]  ;;  %v2208_v5 = vld [vmem:[%s7034_s2] sm:$0xff] }
 0x2dd   : > { %v3935_v61 = vpack.c.bf16 %v1385_v33, %v1383_v58  ;;  %v3937_v39 = vpack.c.bf16 %v1384_v1, %v1382_v23  ;;  %v1236_v62 = vmul.f32 %v7436_v17, %v1188_v43  ;;  %v1322_v14 = vsel %vm4564_vm6, %v1294_v52, 0.0  ;;  %v7437_v23 = vld [vmem:[#allocation111_spill] sm:$0xff]  ;;  %v1473_v1 = vld [vmem:[%s7035_s3 + $0x198] sm:$0xff] }
 0x2de   : > { %v1153_v11 = vpop.permute.xlu1 %1152  ;;  %v1323_v35 = vsel %vm5408_vm13, %v1302_v36, 0.0  ;;  %v2227_v31 = vld [vmem:[%s7034_s2 + $0x98] sm:$0xff]  ;;  %v1486_v36 = vld [vmem:[%s7035_s3 + $0x200] sm:$0xff] }
 0x2df   : > { %v1170_v34 = vsel %vm1154_vm14, %v1153_v11, %v1137_v3  ;;  %3867 = vmatmul.mubr.msk.f32.gmra.mrb[42].mxu0 %vm1566_vm12, %v1465_v44  ;;  %3936 = vmatprep.subr.bf16.mxu0 %v3935_v61  ;;  %v1162_v19 = vsel %vm1154_vm14, %v1137_v3, %v1153_v11  ;;  %v1252_v30 = vadd.f32 %v1236_v62, %v1119_v40  ;;  %v1480_v11 = vld [vmem:[%s7035_s3 + $0x1d0] sm:$0xff]  ;;  %v1485_v43 = vld [vmem:[%s7035_s3 + $0x1f8] sm:$0xff]  ;;  %v2233_v40 = vld [vmem:[%s7034_s2 + $0xc8] sm:$0xff] }
 0x2e0   : > { %3945 = vmatprep.subr.bf16.mxu1 %v3935_v61  ;;  %3938 = vmatpush1.bf16.msra.mxu0 %v3937_v39  ;;  %v1190_v38 = vsel %vm249_vm15, %v1170_v34, 0.0  ;;  %v1237_v22 = vmul.f32 %v5800_v55, %v1162_v19  ;;  %v1371_v27 = vmul.f32 %v5828_v26, %v1323_v35  ;;  %v2226_v61 = vld [vmem:[%s7034_s2 + $0x90] sm:$0xff]  ;;  %v2229_v34 = vld [vmem:[%s7034_s2 + $0xa8] sm:$0xff]  ;;  %v2231_v52 = vld [vmem:[%s7034_s2 + $0xb8] sm:$0xff] }
 0x2e1   : > { %3949 = vmatpush1.bf16.msra.mxu1 %v3937_v39  ;;  %3869 = vmatprep.mubr.msk.f32.mxu0 %vm1566_vm12, %v1466_v16  ;;  %v1238_v13 = vmul.f32 %v5800_v55, %v1190_v38  ;;  %v1370_v55 = vmul.f32 %v5828_v26, %v1322_v14  ;;  %v1476_v39 = vld [vmem:[%s7035_s3 + $0x1b0] sm:$0xff]  ;;  %v1481_v16 = vld [vmem:[%s7035_s3 + $0x1d8] sm:$0xff]  ;;  %v1490_v19 = vld [vmem:[%s7035_s3 + $0x220] sm:$0xff] }
 0x2e2   : > { %v1270_v20 = vpop.permute.xlu1 %1269  ;;  %v1253_v46 = vadd.f32 %v1237_v22, %v1120_v2  ;;  %v1387_v0 = vadd.f32 %v1371_v27, %v1252_v30  ;;  %v1491_v38 = vld [vmem:[%s7035_s3 + $0x228] sm:$0xff]  ;;  %v2235_v17 = vld [vmem:[%s7034_s2 + $0xd8] sm:$0xff]  ;;  %v2236_v62 = vld [vmem:[%s7034_s2 + $0xe0] sm:$0xff] }
 0x2e3   : > { %3870 = vmatmul.mubr.msk.f32.gmra.mrb[44].mxu0 %vm1566_vm12, %v1467_v9  ;;  %v1254_v54 = vadd.f32 %v1238_v13, %v1121_v8  ;;  %v1386_v18 = vadd.f32 %v1370_v55, %v1251_v25  ;;  %v2230_v9 = vld [vmem:[%s7034_s2 + $0xb0] sm:$0xff]  ;;  %v2237_v14 = vld [vmem:[%s7034_s2 + $0xe8] sm:$0xff]  ;;  %v2211_v13 = vld [vmem:[%s7034_s2 + $0x18] sm:$0xff] }
 0x2e4   : > { %3872 = vmatprep.mubr.msk.f32.mxu0 %vm1566_vm12, %v1468_v42  ;;  %v1487_v42 = vld [vmem:[%s7035_s3 + $0x208] sm:$0xff]  ;;  %v2210_v35 = vld [vmem:[%s7034_s2 + $0x10] sm:$0xff]  ;;  %v2212_v25 = vld [vmem:[%s7034_s2 + $0x20] sm:$0xff] }
 0x2e5   : > { %v2238_v22 = vld [vmem:[%s7034_s2 + $0xf0] sm:$0xff]  ;;  %v2240_v30 = vld [vmem:[%s7034_s2 + $0x100] sm:$0xff]  ;;  %v2241_v2 = vld [vmem:[%s7034_s2 + $0x108] sm:$0xff] }
 0x2e6   : > { %v1286_v32 = vpop.permute.xlu1 %1285  ;;  %v2214_v8 = vld [vmem:[%s7034_s2 + $0x30] sm:$0xff]  ;;  %v2243_v55 = vld [vmem:[%s7034_s2 + $0x118] sm:$0xff]  ;;  %v2216_v27 = vld [vmem:[%s7034_s2 + $0x40] sm:$0xff] }
 0x2e7   : > { %v1295_v51 = vsel %vm1287_vm10, %v1270_v20, %v1286_v32  ;;  %v1303_v6 = vsel %vm1287_vm10, %v1286_v32, %v1270_v20  ;;  %3873 = vmatmul.mubr.msk.f32.gmra.mrb[46].mxu0 %vm1566_vm12, %v1469_v47  ;;  %v2234_v20 = vld [vmem:[%s7034_s2 + $0xd0] sm:$0xff]  ;;  %v2209_v47 = vld [vmem:[%s7034_s2 + $0x8] sm:$0xff] }
 0x2e8   : > { %v1324_v37 = vsel %vm4564_vm6, %v1295_v51, 0.0  ;;  %v1325_v48 = vsel %vm5408_vm13, %v1303_v6, 0.0  ;;  %3875 = vmatprep.mubr.msk.f32.mxu0 %vm1566_vm12, %v1470_v53  ;;  %v2239_v53 = vld [vmem:[%s7034_s2 + $0xf8] sm:$0xff]  ;;  %v2213_v32 = vld [vmem:[%s7034_s2 + $0x28] sm:$0xff]  ;;  %v2242_v51 = vld [vmem:[%s7034_s2 + $0x110] sm:$0xff] }
 0x2e9   : > { %v1372_v3 = vmul.f32 %v7437_v23, %v1324_v37  ;;  %v1373_v58 = vmul.f32 %v7437_v23, %v1325_v48  ;;  %v2215_v6 = vld [vmem:[%s7034_s2 + $0x38] sm:$0xff]  ;;  %v2244_v37 = vld [vmem:[%s7034_s2 + $0x120] sm:$0xff]  ;;  %v2217_v48 = vld [vmem:[%s7034_s2 + $0x48] sm:$0xff] }
 0x2ea   : > { %v2219_v23 = vld [vmem:[%s7034_s2 + $0x58] sm:$0xff] }
 0x2eb   : > { %v1388_v26 = vadd.f32 %v1372_v3, %v1253_v46  ;;  %v1389_v15 = vadd.f32 %v1373_v58, %v1254_v54  ;;  %3876 = vmatmul.mubr.msk.f32.gmra.mrb[48].mxu0 %vm1566_vm12, %v1471_v21  ;;  %v2245_v21 = vld [vmem:[%s7034_s2 + $0x128] sm:$0xff]  ;;  %v2218_v46 = vld [vmem:[%s7034_s2 + $0x50] sm:$0xff]  ;;  %v2247_v3 = vld [vmem:[%s7034_s2 + $0x138] sm:$0xff] }
 0x2ec   : > { %3878 = vmatprep.mubr.msk.f32.mxu0 %vm1566_vm12, %v1472_v45  ;;  %v2246_v54 = vld [vmem:[%s7034_s2 + $0x130] sm:$0xff]  ;;  %v2220_v58 = vld [vmem:[%s7034_s2 + $0x60] sm:$0xff] }
 0x2ed   : > { %v3939_v33 = vpack.c.bf16 %v1389_v15, %v1387_v0  ;;  %v3941_v44 = vpack.c.bf16 %v1388_v26, %v1386_v18  ;;  %v2248_v45 = vld [vmem:[%s7034_s2 + $0x140] sm:$0xff]  ;;  %v2221_v26 = vld [vmem:[%s7034_s2 + $0x68] sm:$0xff]  ;;  %v2222_v0 = vld [vmem:[%s7034_s2 + $0x70] sm:$0xff] }
 0x2ee   : > { %v2249_v15 = vld [vmem:[%s7034_s2 + $0x148] sm:$0xff]  ;;  %v2250_v18 = vld [vmem:[%s7034_s2 + $0x150] sm:$0xff] }
 0x2ef   : > { %3879 = vmatmul.mubr.msk.f32.gmra.mrb[50].mxu0 %vm1566_vm12, %v1473_v1  ;;  %3940 = vmatprep.subr.bf16.mxu0 %v3939_v33  ;;  %v2223_v1 = vld [vmem:[%s7034_s2 + $0x78] sm:$0xff] }
 0x2f0   : > { %3946 = vmatprep.subr.bf16.mxu1 %v3939_v33  ;;  %3942 = vmatpush1.bf16.msra.mxu0 %v3941_v44  ;;  %v2251_v33 = vld [vmem:[%s7034_s2 + $0x158] sm:$0xff] }
 0x2f1   : > { %3950 = vmatpush1.bf16.msra.mxu1 %v3941_v44  ;;  %3881 = vmatprep.mubr.msk.f32.mxu0 %vm1566_vm12, %v1474_v59  ;;  %v2224_v44 = vld [vmem:[%s7034_s2 + $0x80] sm:$0xff] }
 0x2f2   : > { %v2252_v59 = vld [vmem:[%s7034_s2 + $0x160] sm:$0xff] }
 0x2f3   : > { %3882 = vmatmul.mubr.msk.f32.gmra.mrb[52].mxu0 %vm1566_vm12, %v1475_v57  ;;  %v1495_v57 = vld [vmem:[%s7036_s4 + $0x8] sm:$0xff] }
 0x2f4   : > { %3650 = vmatmul.mubr.msk.f32.vlgmr.msra.gmra.mrb[0].mxu1 %vm1566_vm12, %v2226_v61  ;;  %3884 = vmatprep.mubr.msk.f32.mxu0 %vm1566_vm12, %v1476_v39  ;;  %v2225_v61 = vld [vmem:[%s7034_s2 + $0x88] sm:$0xff]  ;;  %v1494_v39 = vld [vmem:[%s7036_s4] sm:$0xff] }
 0x2f5   : > { %3034 = vmatprep.mubr.f32.mxu1 %v4042_v50 }
 0x2f7   : > { %3885 = vmatmul.mubr.msk.f32.gmra.mrb[54].mxu0 %vm1566_vm12, %v1477_v56  ;;  %v2253_v56 = vld [vmem:[%s7034_s2 + $0x168] sm:$0xff] }
 0x2f8   : > { %3651 = vmatmul.mubr.msk.f32.gmra.mrb[2].mxu1 %vm1566_vm12, %v2227_v31  ;;  %3887 = vmatprep.mubr.msk.f32.mxu0 %vm1566_vm12, %v1478_v10 }
 0x2f9   : > { %3040 = vmatprep.mubr.f32.mxu1 %v4042_v50 }
 0x2fb   : > { %3888 = vmatmul.mubr.msk.f32.gmra.mrb[56].mxu0 %vm1566_vm12, %v1479_v28 }
 0x2fc   : > { %3652 = vmatmul.mubr.msk.f32.gmra.mrb[4].mxu1 %vm1566_vm12, %v2228_v63  ;;  %3890 = vmatprep.mubr.msk.f32.mxu0 %vm1566_vm12, %v1480_v11  ;;  %v1497_v11 = vld [vmem:[%s7036_s4 + $0x18] sm:$0xff] }
 0x2fd   : > { %3046 = vmatprep.mubr.f32.mxu1 %v4042_v50 }
 0x2ff   : > { %3891 = vmatmul.mubr.msk.f32.gmra.mrb[58].mxu0 %vm1566_vm12, %v1481_v16  ;;  %v1496_v16 = vld [vmem:[%s7036_s4 + $0x10] sm:$0xff] }
 0x300   : > { %3653 = vmatmul.mubr.msk.f32.gmra.mrb[6].mxu1 %vm1566_vm12, %v2229_v34  ;;  %3893 = vmatprep.mubr.msk.f32.mxu0 %vm1566_vm12, %v1482_v4  ;;  %v2254_v34 = vld [vmem:[%s7034_s2 + $0x170] sm:$0xff] }
 0x301   : > { %3052 = vmatprep.mubr.f32.mxu1 %v4042_v50 }
 0x303   : > { %3894 = vmatmul.mubr.msk.f32.gmra.mrb[60].mxu0 %vm1566_vm12, %v1483_v60 }
 0x304   : > { %3654 = vmatmul.mubr.msk.f32.gmra.mrb[8].mxu1 %vm1566_vm12, %v2230_v9  ;;  %3896 = vmatprep.mubr.msk.f32.mxu0 %vm1566_vm12, %v1484_v12 }
 0x305   : > { %3058 = vmatprep.mubr.f32.mxu1 %v4042_v50 }
 0x307   : > { %3897 = vmatmul.mubr.msk.f32.gmra.mrb[62].mxu0 %vm1566_vm12, %v1485_v43  ;;  %v1499_v43 = vld [vmem:[%s7036_s4 + $0x28] sm:$0xff] }
 0x308   : > { %3655 = vmatmul.mubr.msk.f32.gmra.mrb[10].mxu1 %vm1566_vm12, %v2231_v52  ;;  %3899 = vmatprep.mubr.msk.f32.mxu0 %vm1566_vm12, %v1486_v36  ;;  %v1498_v52 = vld [vmem:[%s7036_s4 + $0x20] sm:$0xff]  ;;  %v2255_v36 = vld [vmem:[%s7034_s2 + $0x178] sm:$0xff] }
 0x309   : > { %3064 = vmatprep.mubr.f32.mxu1 %v4042_v50 }
 0x30b   : > { %3900 = vmatmul.mubr.msk.f32.gmra.mrb[64].mxu0 %vm1566_vm12, %v1487_v42 }
 0x30c   : > { %3656 = vmatmul.mubr.msk.f32.gmra.mrb[12].mxu1 %vm1566_vm12, %v2232_v49  ;;  %3902 = vmatprep.mubr.msk.f32.mxu0 %vm1566_vm12, %v1488_v41 }
 0x30d   : > { %3070 = vmatprep.mubr.f32.mxu1 %v4042_v50 }
 0x30f   : > { %3903 = vmatmul.mubr.msk.f32.gmra.mrb[66].mxu0 %vm1566_vm12, %v1489_v29 }
 0x310   : > { %3657 = vmatmul.mubr.msk.f32.gmra.mrb[14].mxu1 %vm1566_vm12, %v2233_v40  ;;  %3905 = vmatprep.mubr.msk.f32.mxu0 %vm1566_vm12, %v1490_v19  ;;  %v1501_v40 = vld [vmem:[%s7036_s4 + $0x38] sm:$0xff]  ;;  %v1500_v19 = vld [vmem:[%s7036_s4 + $0x30] sm:$0xff] }
 0x311   : > { %3076 = vmatprep.mubr.f32.mxu1 %v4042_v50 }
 0x313   : > { %3906 = vmatmul.mubr.msk.f32.gmra.mrb[68].mxu0 %vm1566_vm12, %v1491_v38  ;;  %v2256_v38 = vld [vmem:[%s7034_s2 + $0x180] sm:$0xff] }
 0x314   : > { %3658 = vmatmul.mubr.msk.f32.gmra.mrb[16].mxu1 %vm1566_vm12, %v2234_v20  ;;  %3908 = vmatprep.mubr.msk.f32.mxu0 %vm1566_vm12, %v1492_v7 }
 0x315   : > { %3082 = vmatprep.mubr.f32.mxu1 %v4042_v50 }
 0x317   : > { %3909 = vmatmul.mubr.msk.f32.gmra.mrb[70].mxu0 %vm1566_vm12, %v1493_v24 }
 0x318   : > { %3659 = vmatmul.mubr.msk.f32.gmra.mrb[18].mxu1 %vm1566_vm12, %v2235_v17  ;;  %2920 = vmatprep.mubr.f32.mxu0 %v4042_v50 }
 0x319   : > { %3088 = vmatprep.mubr.f32.mxu1 %v4042_v50 }
 0x31b   : > { %3632 = vmatmul.mubr.msk.f32.vlgmr.msra.gmra.mrb[72].mxu0 %vm1566_vm12, %v2208_v5  ;;  %v1503_v5 = vld [vmem:[%s7036_s4 + $0x48] sm:$0xff] }
 0x31c   : > { %3660 = vmatmul.mubr.msk.f32.gmra.mrb[20].mxu1 %vm1566_vm12, %v2236_v62  ;;  %2926 = vmatprep.mubr.f32.mxu0 %v4042_v50  ;;  %v1502_v62 = vld [vmem:[%s7036_s4 + $0x40] sm:$0xff] }
 0x31d   : > { %3094 = vmatprep.mubr.f32.mxu1 %v4042_v50 }
 0x31f   : > { %3633 = vmatmul.mubr.msk.f32.gmra.mrb[74].mxu0 %vm1566_vm12, %v2209_v47  ;;  %v2257_v47 = vld [vmem:[%s7034_s2 + $0x188] sm:$0xff] }
 0x320   : > { %3661 = vmatmul.mubr.msk.f32.gmra.mrb[22].mxu1 %vm1566_vm12, %v2237_v14  ;;  %2932 = vmatprep.mubr.f32.mxu0 %v4042_v50 }
 0x321   : > { %3100 = vmatprep.mubr.f32.mxu1 %v4042_v50 }
 0x323   : > { %3634 = vmatmul.mubr.msk.f32.gmra.mrb[76].mxu0 %vm1566_vm12, %v2210_v35 }
 0x324   : > { %3662 = vmatmul.mubr.msk.f32.gmra.mrb[24].mxu1 %vm1566_vm12, %v2238_v22  ;;  %2938 = vmatprep.mubr.f32.mxu0 %v4042_v50 }
 0x325   : > { %3106 = vmatprep.mubr.f32.mxu1 %v4042_v50 }
 0x327   : > { %3635 = vmatmul.mubr.msk.f32.gmra.mrb[78].mxu0 %vm1566_vm12, %v2211_v13 }
 0x328   : > { %3663 = vmatmul.mubr.msk.f32.gmra.mrb[26].mxu1 %vm1566_vm12, %v2239_v53  ;;  %2944 = vmatprep.mubr.f32.mxu0 %v4042_v50  ;;  %v1505_v53 = vld [vmem:[%s7036_s4 + $0x58] sm:$0xff] }
 0x329   : > { %3112 = vmatprep.mubr.f32.mxu1 %v4042_v50 }
 0x32b   : > { %3636 = vmatmul.mubr.msk.f32.gmra.mrb[80].mxu0 %vm1566_vm12, %v2212_v25  ;;  %v1504_v25 = vld [vmem:[%s7036_s4 + $0x50] sm:$0xff] }
 0x32c   : > { %3664 = vmatmul.mubr.msk.f32.gmra.mrb[28].mxu1 %vm1566_vm12, %v2240_v30  ;;  %2950 = vmatprep.mubr.f32.mxu0 %v4042_v50  ;;  %v2258_v30 = vld [vmem:[%s7034_s2 + $0x190] sm:$0xff] }
 0x32d   : > { %3118 = vmatprep.mubr.f32.mxu1 %v4042_v50 }
 0x32f   : > { %3637 = vmatmul.mubr.msk.f32.gmra.mrb[82].mxu0 %vm1566_vm12, %v2213_v32 }
 0x330   : > { %3665 = vmatmul.mubr.msk.f32.gmra.mrb[30].mxu1 %vm1566_vm12, %v2241_v2  ;;  %2956 = vmatprep.mubr.f32.mxu0 %v4042_v50 }
 0x331   : > { %3124 = vmatprep.mubr.f32.mxu1 %v4042_v50 }
 0x333   : > { %3638 = vmatmul.mubr.msk.f32.gmra.mrb[84].mxu0 %vm1566_vm12, %v2214_v8 }
 0x334   : > { %3666 = vmatmul.mubr.msk.f32.gmra.mrb[32].mxu1 %vm1566_vm12, %v2242_v51  ;;  %2962 = vmatprep.mubr.f32.mxu0 %v4042_v50 }
 0x335   : > { %3130 = vmatprep.mubr.f32.mxu1 %v4042_v50 }
 0x337   : > { %3639 = vmatmul.mubr.msk.f32.gmra.mrb[86].mxu0 %vm1566_vm12, %v2215_v6  ;;  %v1507_v6 = vld [vmem:[%s7036_s4 + $0x68] sm:$0xff] }
 0x338   : > { %3667 = vmatmul.mubr.msk.f32.gmra.mrb[34].mxu1 %vm1566_vm12, %v2243_v55  ;;  %2968 = vmatprep.mubr.f32.mxu0 %v4042_v50  ;;  %v1506_v55 = vld [vmem:[%s7036_s4 + $0x60] sm:$0xff] }
 0x339   : > { %3136 = vmatprep.mubr.f32.mxu1 %v4042_v50 }
 0x33b   : > { %3640 = vmatmul.mubr.msk.f32.gmra.mrb[88].mxu0 %vm1566_vm12, %v2216_v27  ;;  %v2259_v27 = vld [vmem:[%s7034_s2 + $0x198] sm:$0xff] }
 0x33c   : > { %3668 = vmatmul.mubr.msk.f32.gmra.mrb[36].mxu1 %vm1566_vm12, %v2244_v37  ;;  %2974 = vmatprep.mubr.f32.mxu0 %v4042_v50 }
 0x33d   : > { %3142 = vmatprep.mubr.f32.mxu1 %v4042_v50 }
 0x33f   : > { %3641 = vmatmul.mubr.msk.f32.gmra.mrb[90].mxu0 %vm1566_vm12, %v2217_v48 }
 0x340   : > { %3669 = vmatmul.mubr.msk.f32.gmra.mrb[38].mxu1 %vm1566_vm12, %v2245_v21  ;;  %2980 = vmatprep.mubr.f32.mxu0 %v4042_v50 }
 0x341   : > { %3148 = vmatprep.mubr.f32.mxu1 %v4042_v50 }
 0x343   : > { %3642 = vmatmul.mubr.msk.f32.gmra.mrb[92].mxu0 %vm1566_vm12, %v2218_v46 }
 0x344   : > { %3670 = vmatmul.mubr.msk.f32.gmra.mrb[40].mxu1 %vm1566_vm12, %v2246_v54  ;;  %2986 = vmatprep.mubr.f32.mxu0 %v4042_v50  ;;  %v1509_v54 = vld [vmem:[%s7036_s4 + $0x78] sm:$0xff] }
 0x345   : > { %3154 = vmatprep.mubr.f32.mxu1 %v4042_v50 }
 0x347   : > { %3643 = vmatmul.mubr.msk.f32.gmra.mrb[94].mxu0 %vm1566_vm12, %v2219_v23  ;;  %v1508_v23 = vld [vmem:[%s7036_s4 + $0x70] sm:$0xff] }
 0x348   : > { %3671 = vmatmul.mubr.msk.f32.gmra.mrb[42].mxu1 %vm1566_vm12, %v2247_v3  ;;  %2992 = vmatprep.mubr.f32.mxu0 %v4042_v50  ;;  %v2260_v3 = vld [vmem:[%s7034_s2 + $0x1a0] sm:$0xff] }
 0x349   : > { %3160 = vmatprep.mubr.f32.mxu1 %v4042_v50 }
 0x34b   : > { %3644 = vmatmul.mubr.msk.f32.gmra.mrb[96].mxu0 %vm1566_vm12, %v2220_v58 }
 0x34c   : > { %3672 = vmatmul.mubr.msk.f32.gmra.mrb[44].mxu1 %vm1566_vm12, %v2248_v45  ;;  %2998 = vmatprep.mubr.f32.mxu0 %v4042_v50 }
 0x34d   : > { %3166 = vmatprep.mubr.f32.mxu1 %v4042_v50 }
 0x34f   : > { %3645 = vmatmul.mubr.msk.f32.gmra.mrb[98].mxu0 %vm1566_vm12, %v2221_v26 }
 0x350   : > { %3673 = vmatmul.mubr.msk.f32.gmra.mrb[46].mxu1 %vm1566_vm12, %v2249_v15  ;;  %3004 = vmatprep.mubr.f32.mxu0 %v4042_v50 }
 0x351   : > { %3172 = vmatprep.mubr.f32.mxu1 %v4042_v50 }
 0x353   : > { %3646 = vmatmul.mubr.msk.f32.gmra.mrb[100].mxu0 %vm1566_vm12, %v2222_v0  ;;  %v1511_v0 = vld [vmem:[%s7036_s4 + $0x88] sm:$0xff] }
 0x354   : > { %3674 = vmatmul.mubr.msk.f32.gmra.mrb[48].mxu1 %vm1566_vm12, %v2250_v18  ;;  %3010 = vmatprep.mubr.f32.mxu0 %v4042_v50  ;;  %v1510_v18 = vld [vmem:[%s7036_s4 + $0x80] sm:$0xff] }
 0x355   : > { %3178 = vmatprep.mubr.f32.mxu1 %v4042_v50 }
 0x357   : > { %3647 = vmatmul.mubr.msk.f32.gmra.mrb[102].mxu0 %vm1566_vm12, %v2223_v1  ;;  %v2261_v1 = vld [vmem:[%s7034_s2 + $0x1a8] sm:$0xff] }
 0x358   : > { %3675 = vmatmul.mubr.msk.f32.gmra.mrb[50].mxu1 %vm1566_vm12, %v2251_v33  ;;  %3016 = vmatprep.mubr.f32.mxu0 %v4042_v50 }
 0x359   : > { %3184 = vmatprep.mubr.f32.mxu1 %v4042_v50 }
 0x35b   : > { %3648 = vmatmul.mubr.msk.f32.gmra.mrb[104].mxu0 %vm1566_vm12, %v2224_v44 }
 0x35c   : > { %3676 = vmatmul.mubr.msk.f32.gmra.mrb[52].mxu1 %vm1566_vm12, %v2252_v59  ;;  %3022 = vmatprep.mubr.f32.mxu0 %v4042_v50 }
 0x35d   : > { %3190 = vmatprep.mubr.f32.mxu1 %v4042_v50 }
 0x35e   : > { %v3805_v31 = vpop.f32.mrb[0].mxu0 }
 0x35f   : > { %v1855_v10 = vadd.f32 %v3805_v31, %v1495_v57  ;;  %v1849_v28 = vpop.f32.mrb[1].mxu0  ;;  %3649 = vmatmul.mubr.msk.f32.gmra.mrb[106].mxu0 %vm1566_vm12, %v2225_v61  ;;  %v1513_v61 = vld [vmem:[%s7036_s4 + $0x98] sm:$0xff] }
 0x360   : > { %v1850_v63 = vadd.f32 %v1849_v28, %v1494_v39  ;;  %3677 = vmatmul.mubr.msk.f32.gmra.mrb[54].mxu1 %vm1566_vm12, %v2253_v56  ;;  %v1512_v39 = vld [vmem:[%s7036_s4 + $0x90] sm:$0xff] }
 0x361   : > { %2287 = vperm.xlu1 %4000, %v1855_v10   ;;  %3196 = vmatprep.mubr.f32.mxu1 %v4042_v50  ;;  %v2262_v56 = vld [vmem:[%s7034_s2 + $0x1b0] sm:$0xff] }
 0x362   : > { %v3808_v4 = vpop.f32.mrb[2].mxu0  ;;  %2282 = vperm.xlu0 %3999, %v1850_v63  }
 0x363   : > { %v1865_v60 = vadd.f32 %v3808_v4, %v1497_v11  ;;  %v1859_v9 = vpop.f32.mrb[3].mxu0  ;;  %v1515_v11 = vld [vmem:[%s7036_s4 + $0xa8] sm:$0xff] }
 0x364   : > { %v1860_v12 = vadd.f32 %v1859_v9, %v1496_v16  ;;  %3678 = vmatmul.mubr.msk.f32.gmra.mrb[56].mxu1 %vm1566_vm12, %v2254_v34  ;;  %v1514_v16 = vld [vmem:[%s7036_s4 + $0xa0] sm:$0xff]  ;;  %v2263_v34 = vld [vmem:[%s7034_s2 + $0x1b8] sm:$0xff] }
 0x365   : > { %3202 = vmatprep.mubr.f32.mxu1 %v4042_v50 }
 0x366   : > { %v3811_v42 = vpop.f32.mrb[4].mxu0  ;;  %2292 = vperm.xlu1 %4000, %v1860_v12   ;;  %2297 = vperm.xlu0 %3999, %v1865_v60  }
 0x367   : > { %v1875_v49 = vadd.f32 %v3811_v42, %v1499_v43  ;;  %v1869_v41 = vpop.f32.mrb[5].mxu0  ;;  %v1517_v43 = vld [vmem:[%s7036_s4 + $0xb8] sm:$0xff] }
 0x368   : > { %v1870_v29 = vadd.f32 %v1869_v41, %v1498_v52  ;;  %3679 = vmatmul.mubr.msk.f32.gmra.mrb[58].mxu1 %vm1566_vm12, %v2255_v36  ;;  %v1516_v52 = vld [vmem:[%s7036_s4 + $0xb0] sm:$0xff]  ;;  %v2264_v36 = vld [vmem:[%s7034_s2 + $0x1c0] sm:$0xff] }
 0x369   : > { %3208 = vmatprep.mubr.f32.mxu1 %v4042_v50 }
 0x36a   : > { %v3814_v20 = vpop.f32.mrb[6].mxu0  ;;  %2302 = vperm.xlu1 %4000, %v1870_v29   ;;  %2307 = vperm.xlu0 %3999, %v1875_v49  }
 0x36b   : > { %v1885_v7 = vadd.f32 %v3814_v20, %v1501_v40  ;;  %v1879_v24 = vpop.f32.mrb[7].mxu0  ;;  %v1519_v40 = vld [vmem:[%s7036_s4 + $0xc8] sm:$0xff] }
 0x36c   : > { %v1880_v17 = vadd.f32 %v1879_v24, %v1500_v19  ;;  %3680 = vmatmul.mubr.msk.f32.gmra.mrb[60].mxu1 %vm1566_vm12, %v2256_v38  ;;  %v1518_v19 = vld [vmem:[%s7036_s4 + $0xc0] sm:$0xff]  ;;  %v2265_v38 = vld [vmem:[%s7034_s2 + $0x1c8] sm:$0xff] }
 0x36d   : > { %3214 = vmatprep.mubr.f32.mxu1 %v4042_v50 }
 0x36e   : > { %v3817_v14 = vpop.f32.mrb[8].mxu0  ;;  %2312 = vperm.xlu1 %4000, %v1880_v17   ;;  %2317 = vperm.xlu0 %3999, %v1885_v7  }
 0x36f   : > { %v1895_v35 = vadd.f32 %v3817_v14, %v1503_v5  ;;  %v1889_v22 = vpop.f32.mrb[9].mxu0  ;;  %v1521_v5 = vld [vmem:[%s7036_s4 + $0xd8] sm:$0xff] }
 0x370   : > { %v1890_v13 = vadd.f32 %v1889_v22, %v1502_v62  ;;  %3681 = vmatmul.mubr.msk.f32.gmra.mrb[62].mxu1 %vm1566_vm12, %v2257_v47  ;;  %v1520_v62 = vld [vmem:[%s7036_s4 + $0xd0] sm:$0xff] }
 0x371   : > { %3220 = vmatprep.mubr.f32.mxu1 %v4042_v50  ;;  %v2266_v47 = vld [vmem:[%s7034_s2 + $0x1d0] sm:$0xff] }
 0x372   : > { %v3820_v32 = vpop.f32.mrb[10].mxu0  ;;  %2322 = vperm.xlu1 %4000, %v1890_v13   ;;  %2327 = vperm.xlu0 %3999, %v1895_v35  }
 0x373   : > { %v1905_v2 = vadd.f32 %v3820_v32, %v1505_v53  ;;  %v1899_v8 = vpop.f32.mrb[11].mxu0  ;;  %v1523_v53 = vld [vmem:[%s7036_s4 + $0xe8] sm:$0xff] }
 0x374   : > { %v1900_v51 = vadd.f32 %v1899_v8, %v1504_v25  ;;  %3682 = vmatmul.mubr.msk.f32.gmra.mrb[64].mxu1 %vm1566_vm12, %v2258_v30  ;;  %v1522_v25 = vld [vmem:[%s7036_s4 + $0xe0] sm:$0xff]  ;;  %v2267_v30 = vld [vmem:[%s7034_s2 + $0x1d8] sm:$0xff] }
 0x375   : > { %3226 = vmatprep.mubr.f32.mxu1 %v4042_v50 }
 0x376   : > { %v3823_v37 = vpop.f32.mrb[12].mxu0  ;;  %2332 = vperm.xlu1 %4000, %v1900_v51   ;;  %2337 = vperm.xlu0 %3999, %v1905_v2  }
 0x377   : > { %v1915_v48 = vadd.f32 %v3823_v37, %v1507_v6  ;;  %v1909_v21 = vpop.f32.mrb[13].mxu0  ;;  %v1525_v6 = vld [vmem:[%s7036_s4 + $0xf8] sm:$0xff] }
 0x378   : > { %v1910_v46 = vadd.f32 %v1909_v21, %v1506_v55  ;;  %3683 = vmatmul.mubr.msk.f32.gmra.mrb[66].mxu1 %vm1566_vm12, %v2259_v27  ;;  %v1524_v55 = vld [vmem:[%s7036_s4 + $0xf0] sm:$0xff]  ;;  %v2268_v27 = vld [vmem:[%s7034_s2 + $0x1e0] sm:$0xff] }
 0x379   : > { %3232 = vmatprep.mubr.f32.mxu1 %v4042_v50 }
 0x37a   : > { %v3826_v58 = vpop.f32.mrb[14].mxu0  ;;  %2342 = vperm.xlu1 %4000, %v1910_v46   ;;  %2347 = vperm.xlu0 %3999, %v1915_v48  }
 0x37b   : > { %v1925_v45 = vadd.f32 %v3826_v58, %v1509_v54  ;;  %v1919_v26 = vpop.f32.mrb[15].mxu0  ;;  %v1527_v54 = vld [vmem:[%s7036_s4 + $0x108] sm:$0xff] }
 0x37c   : > { %v1920_v15 = vadd.f32 %v1919_v26, %v1508_v23  ;;  %3684 = vmatmul.mubr.msk.f32.gmra.mrb[68].mxu1 %vm1566_vm12, %v2260_v3  ;;  %v1526_v23 = vld [vmem:[%s7036_s4 + $0x100] sm:$0xff]  ;;  %v2269_v3 = vld [vmem:[%s7034_s2 + $0x1e8] sm:$0xff] }
 0x37d   : > { %3238 = vmatprep.mubr.f32.mxu1 %v4042_v50 }
 0x37e   : > { %v3829_v33 = vpop.f32.mrb[16].mxu0  ;;  %2352 = vperm.xlu1 %4000, %v1920_v15   ;;  %2357 = vperm.xlu0 %3999, %v1925_v45  }
 0x37f   : > { %v1935_v44 = vadd.f32 %v3829_v33, %v1511_v0  ;;  %v1929_v59 = vpop.f32.mrb[17].mxu0  ;;  %v1529_v0 = vld [vmem:[%s7036_s4 + $0x118] sm:$0xff] }
 0x380   : > { %v1930_v57 = vadd.f32 %v1929_v59, %v1510_v18  ;;  %3685 = vmatmul.mubr.msk.f32.gmra.mrb[70].mxu1 %vm1566_vm12, %v2261_v1  ;;  %v1528_v18 = vld [vmem:[%s7036_s4 + $0x110] sm:$0xff] }
 0x381   : > { %3244 = vmatprep.mubr.f32.mxu1 %v4042_v50  ;;  %v2270_v1 = vld [vmem:[%s7034_s2 + $0x1f0] sm:$0xff] }
 0x382   : > { %v3832_v31 = vpop.f32.mrb[18].mxu0  ;;  %2362 = vperm.xlu1 %4000, %v1930_v57   ;;  %2367 = vperm.xlu0 %3999, %v1935_v44  }
 0x383   : > { %v1945_v10 = vadd.f32 %v3832_v31, %v1513_v61  ;;  %v1939_v28 = vpop.f32.mrb[19].mxu0  ;;  %v1531_v61 = vld [vmem:[%s7036_s4 + $0x128] sm:$0xff] }
 0x384   : > { %v1940_v63 = vadd.f32 %v1939_v28, %v1512_v39  ;;  %3686 = vmatmul.mubr.msk.f32.gmra.mrb[72].mxu1 %vm1566_vm12, %v2262_v56  ;;  %v1530_v39 = vld [vmem:[%s7036_s4 + $0x120] sm:$0xff]  ;;  %v2271_v56 = vld [vmem:[%s7034_s2 + $0x1f8] sm:$0xff] }
 0x385   : > { %3250 = vmatprep.mubr.f32.mxu1 %v4042_v50 }
 0x386   : > { %v3835_v4 = vpop.f32.mrb[20].mxu0  ;;  %2372 = vperm.xlu1 %4000, %v1940_v63   ;;  %2377 = vperm.xlu0 %3999, %v1945_v10  }
 0x387   : > { %v1955_v60 = vadd.f32 %v3835_v4, %v1515_v11  ;;  %v1949_v9 = vpop.f32.mrb[21].mxu0  ;;  %v1533_v11 = vld [vmem:[%s7036_s4 + $0x138] sm:$0xff] }
 0x388   : > { %v1950_v12 = vadd.f32 %v1949_v9, %v1514_v16  ;;  %3687 = vmatmul.mubr.msk.f32.gmra.mrb[74].mxu1 %vm1566_vm12, %v2263_v34  ;;  %v1532_v16 = vld [vmem:[%s7036_s4 + $0x130] sm:$0xff]  ;;  %v2272_v34 = vld [vmem:[%s7034_s2 + $0x200] sm:$0xff] }
 0x389   : > { %3256 = vmatprep.mubr.f32.mxu1 %v4042_v50 }
 0x38a   : > { %v3838_v42 = vpop.f32.mrb[22].mxu0  ;;  %2382 = vperm.xlu1 %4000, %v1950_v12   ;;  %2387 = vperm.xlu0 %3999, %v1955_v60  }
 0x38b   : > { %v1965_v49 = vadd.f32 %v3838_v42, %v1517_v43  ;;  %v1959_v41 = vpop.f32.mrb[23].mxu0  ;;  %v1535_v43 = vld [vmem:[%s7036_s4 + $0x148] sm:$0xff] }
 0x38c   : > { %v1960_v29 = vadd.f32 %v1959_v41, %v1516_v52  ;;  %3688 = vmatmul.mubr.msk.f32.gmra.mrb[76].mxu1 %vm1566_vm12, %v2264_v36  ;;  %v1534_v52 = vld [vmem:[%s7036_s4 + $0x140] sm:$0xff]  ;;  %v2273_v36 = vld [vmem:[%s7034_s2 + $0x208] sm:$0xff] }
 0x38d   : > { %3262 = vmatprep.mubr.f32.mxu1 %v4042_v50 }
 0x38e   : > { %v3841_v20 = vpop.f32.mrb[24].mxu0  ;;  %2392 = vperm.xlu1 %4000, %v1960_v29   ;;  %2397 = vperm.xlu0 %3999, %v1965_v49  }
 0x38f   : > { %v1975_v7 = vadd.f32 %v3841_v20, %v1519_v40  ;;  %v1969_v24 = vpop.f32.mrb[25].mxu0  ;;  %v1537_v40 = vld [vmem:[%s7036_s4 + $0x158] sm:$0xff] }
 0x390   : > { %v1970_v17 = vadd.f32 %v1969_v24, %v1518_v19  ;;  %3689 = vmatmul.mubr.msk.f32.gmra.mrb[78].mxu1 %vm1566_vm12, %v2265_v38  ;;  %v1536_v19 = vld [vmem:[%s7036_s4 + $0x150] sm:$0xff] }
 0x391   : > { %3268 = vmatprep.mubr.f32.mxu1 %v4042_v50  ;;  %v2274_v38 = vld [vmem:[%s7034_s2 + $0x210] sm:$0xff] }
 0x392   : > { %v3844_v14 = vpop.f32.mrb[26].mxu0  ;;  %2402 = vperm.xlu1 %4000, %v1970_v17   ;;  %2407 = vperm.xlu0 %3999, %v1975_v7  }
 0x393   : > { %v1985_v35 = vadd.f32 %v3844_v14, %v1521_v5  ;;  %v1979_v22 = vpop.f32.mrb[27].mxu0  ;;  %v1539_v5 = vld [vmem:[%s7036_s4 + $0x168] sm:$0xff] }
 0x394   : > { %v1980_v13 = vadd.f32 %v1979_v22, %v1520_v62  ;;  %3690 = vmatmul.mubr.msk.f32.gmra.mrb[80].mxu1 %vm1566_vm12, %v2266_v47  ;;  %v1538_v62 = vld [vmem:[%s7036_s4 + $0x160] sm:$0xff]  ;;  %v2275_v47 = vld [vmem:[%s7034_s2 + $0x218] sm:$0xff] }
 0x395   : > { %3274 = vmatprep.mubr.f32.mxu1 %v4042_v50 }
 0x396   : > { %v3847_v32 = vpop.f32.mrb[28].mxu0  ;;  %2412 = vperm.xlu1 %4000, %v1980_v13   ;;  %2417 = vperm.xlu0 %3999, %v1985_v35  }
 0x397   : > { %v1995_v2 = vadd.f32 %v3847_v32, %v1523_v53  ;;  %v1989_v8 = vpop.f32.mrb[29].mxu0  ;;  %v1541_v53 = vld [vmem:[%s7036_s4 + $0x178] sm:$0xff] }
 0x398   : > { %v1990_v51 = vadd.f32 %v1989_v8, %v1522_v25  ;;  %3691 = vmatmul.mubr.msk.f32.gmra.mrb[82].mxu1 %vm1566_vm12, %v2267_v30  ;;  %v1540_v25 = vld [vmem:[%s7036_s4 + $0x170] sm:$0xff]  ;;  %v2276_v30 = vld [vmem:[%s7034_s2 + $0x220] sm:$0xff] }
 0x399   : > { %3280 = vmatprep.mubr.f32.mxu1 %v4042_v50 }
 0x39a   : > { %v3850_v37 = vpop.f32.mrb[30].mxu0  ;;  %2422 = vperm.xlu1 %4000, %v1990_v51   ;;  %2427 = vperm.xlu0 %3999, %v1995_v2  }
 0x39b   : > { %v2005_v48 = vadd.f32 %v3850_v37, %v1525_v6  ;;  %v1999_v21 = vpop.f32.mrb[31].mxu0  ;;  %v1543_v6 = vld [vmem:[%s7036_s4 + $0x188] sm:$0xff] }
 0x39c   : > { %v2000_v46 = vadd.f32 %v1999_v21, %v1524_v55  ;;  %3692 = vmatmul.mubr.msk.f32.gmra.mrb[84].mxu1 %vm1566_vm12, %v2268_v27  ;;  %v1542_v55 = vld [vmem:[%s7036_s4 + $0x180] sm:$0xff]  ;;  %v2277_v27 = vld [vmem:[%s7034_s2 + $0x228] sm:$0xff] }
 0x39d   : > { %3286 = vmatprep.mubr.f32.mxu1 %v4042_v50 }
 0x39e   : > { %v3853_v58 = vpop.f32.mrb[32].mxu0  ;;  %2432 = vperm.xlu1 %4000, %v2000_v46   ;;  %2437 = vperm.xlu0 %3999, %v2005_v48  }
 0x39f   : > { %v2015_v45 = vadd.f32 %v3853_v58, %v1527_v54  ;;  %v2009_v26 = vpop.f32.mrb[33].mxu0  ;;  %v1545_v54 = vld [vmem:[%s7036_s4 + $0x198] sm:$0xff] }
 0x3a0   : > { %v2010_v15 = vadd.f32 %v2009_v26, %v1526_v23  ;;  %3693 = vmatmul.mubr.msk.f32.gmra.mrb[86].mxu1 %vm1566_vm12, %v2269_v3  ;;  %v1544_v23 = vld [vmem:[%s7036_s4 + $0x190] sm:$0xff] }
 0x3a1   : > { %3292 = vmatprep.mubr.f32.mxu1 %v4042_v50  ;;  %v2278_v3 = vld [vmem:[%s7034_s2 + $0x230] sm:$0xff] }
 0x3a2   : > { %v3856_v33 = vpop.f32.mrb[34].mxu0  ;;  %2442 = vperm.xlu1 %4000, %v2010_v15   ;;  %2447 = vperm.xlu0 %3999, %v2015_v45  }
 0x3a3   : > { %v2025_v44 = vadd.f32 %v3856_v33, %v1529_v0  ;;  %v2019_v59 = vpop.f32.mrb[35].mxu0  ;;  %v1547_v0 = vld [vmem:[%s7036_s4 + $0x1a8] sm:$0xff] }
 0x3a4   : > { %v2020_v57 = vadd.f32 %v2019_v59, %v1528_v18  ;;  %3694 = vmatmul.mubr.msk.f32.gmra.mrb[88].mxu1 %vm1566_vm12, %v2270_v1  ;;  %v1546_v18 = vld [vmem:[%s7036_s4 + $0x1a0] sm:$0xff]  ;;  %v2279_v1 = vld [vmem:[%s7034_s2 + $0x238] sm:$0xff] }
 0x3a5   : > { %3298 = vmatprep.mubr.f32.mxu1 %v4042_v50 }
 0x3a6   : > { %v3859_v31 = vpop.f32.mrb[36].mxu0  ;;  %2452 = vperm.xlu1 %4000, %v2020_v57   ;;  %2457 = vperm.xlu0 %3999, %v2025_v44  }
 0x3a7   : > { %v2035_v10 = vadd.f32 %v3859_v31, %v1531_v61  ;;  %v2029_v28 = vpop.f32.mrb[37].mxu0 }
 0x3a8   : > { %v2030_v63 = vadd.f32 %v2029_v28, %v1530_v39  ;;  %3695 = vmatmul.mubr.msk.f32.gmra.mrb[90].mxu1 %vm1566_vm12, %v2271_v56  ;;  %v1548_v56 = vld [vmem:[%s7036_s4 + $0x1b0] sm:$0xff] }
 0x3a9   : > { %3304 = vmatprep.mubr.f32.mxu1 %v4042_v50 }
 0x3aa   : > { %v3862_v4 = vpop.f32.mrb[38].mxu0  ;;  %2462 = vperm.xlu1 %4000, %v2030_v63   ;;  %2467 = vperm.xlu0 %3999, %v2035_v10  }
 0x3ab   : > { %v2045_v60 = vadd.f32 %v3862_v4, %v1533_v11  ;;  %v2039_v9 = vpop.f32.mrb[39].mxu0  ;;  %v1550_v4 = vld [vmem:[%s7036_s4 + $0x1c0] sm:$0xff] }
 0x3ac   : > { %v2040_v12 = vadd.f32 %v2039_v9, %v1532_v16  ;;  %3696 = vmatmul.mubr.msk.f32.gmra.mrb[92].mxu1 %vm1566_vm12, %v2272_v34  ;;  %v1551_v34 = vld [vmem:[%s7036_s4 + $0x1c8] sm:$0xff] }
 0x3ad   : > { %3310 = vmatprep.mubr.f32.mxu1 %v4042_v50 }
 0x3ae   : > { %v3865_v42 = vpop.f32.mrb[40].mxu0  ;;  %2472 = vperm.xlu1 %4000, %v2040_v12   ;;  %2477 = vperm.xlu0 %3999, %v2045_v60  }
 0x3af   : > { %v2055_v49 = vadd.f32 %v3865_v42, %v1535_v43  ;;  %v2049_v41 = vpop.f32.mrb[41].mxu0  ;;  %v1553_v42 = vld [vmem:[%s7036_s4 + $0x1d8] sm:$0xff] }
 0x3b0   : > { %v2050_v29 = vadd.f32 %v2049_v41, %v1534_v52  ;;  %3697 = vmatmul.mubr.msk.f32.gmra.mrb[94].mxu1 %vm1566_vm12, %v2273_v36 }
 0x3b1   : > { %3316 = vmatprep.mubr.f32.mxu1 %v4042_v50 }
 0x3b2   : > { %v3868_v20 = vpop.f32.mrb[42].mxu0  ;;  %2482 = vperm.xlu1 %4000, %v2050_v29   ;;  %2487 = vperm.xlu0 %3999, %v2055_v49   ;;  %v1552_v49 = vld [vmem:[%s7036_s4 + $0x1d0] sm:$0xff] }
 0x3b3   : > { %v2065_v7 = vadd.f32 %v3868_v20, %v1537_v40  ;;  %v2059_v24 = vpop.f32.mrb[43].mxu0 }
 0x3b4   : > { %v2060_v17 = vadd.f32 %v2059_v24, %v1536_v19  ;;  %3698 = vmatmul.mubr.msk.f32.gmra.mrb[96].mxu1 %vm1566_vm12, %v2274_v38  ;;  %v1554_v24 = vld [vmem:[%s7036_s4 + $0x1e0] sm:$0xff] }
 0x3b5   : > { %3322 = vmatprep.mubr.f32.mxu1 %v4042_v50 }
 0x3b6   : > { %v3871_v14 = vpop.f32.mrb[44].mxu0  ;;  %2492 = vperm.xlu1 %4000, %v2060_v17   ;;  %2497 = vperm.xlu0 %3999, %v2065_v7   ;;  %v1555_v7 = vld [vmem:[%s7036_s4 + $0x1e8] sm:$0xff] }
 0x3b7   : > { %v2075_v35 = vadd.f32 %v3871_v14, %v1539_v5  ;;  %v2069_v22 = vpop.f32.mrb[45].mxu0 }
 0x3b8   : > { %v2070_v13 = vadd.f32 %v2069_v22, %v1538_v62  ;;  %3699 = vmatmul.mubr.msk.f32.gmra.mrb[98].mxu1 %vm1566_vm12, %v2275_v47  ;;  %v1557_v22 = vld [vmem:[%s7036_s4 + $0x1f8] sm:$0xff] }
 0x3b9   : > { %3328 = vmatprep.mubr.f32.mxu1 %v4042_v50 }
 0x3ba   : > { %v3874_v32 = vpop.f32.mrb[46].mxu0  ;;  %2502 = vperm.xlu1 %4000, %v2070_v13   ;;  %2507 = vperm.xlu0 %3999, %v2075_v35   ;;  %v1556_v13 = vld [vmem:[%s7036_s4 + $0x1f0] sm:$0xff] }
 0x3bb   : > { %v2085_v2 = vadd.f32 %v3874_v32, %v1541_v53  ;;  %v2079_v8 = vpop.f32.mrb[47].mxu0 }
 0x3bc   : > { %v2080_v51 = vadd.f32 %v2079_v8, %v1540_v25  ;;  %3700 = vmatmul.mubr.msk.f32.gmra.mrb[100].mxu1 %vm1566_vm12, %v2276_v30 }
 0x3bd   : > { %3334 = vmatprep.mubr.f32.mxu1 %v4042_v50 }
 0x3be   : > { %v3877_v37 = vpop.f32.mrb[48].mxu0  ;;  %2512 = vperm.xlu1 %4000, %v2080_v51   ;;  %2517 = vperm.xlu0 %3999, %v2085_v2   ;;  %v1559_v51 = vld [vmem:[%s7036_s4 + $0x208] sm:$0xff] }
 0x3bf   : > { %v2095_v48 = vadd.f32 %v3877_v37, %v1543_v6  ;;  %v2089_v21 = vpop.f32.mrb[49].mxu0  ;;  %v1558_v6 = vld [vmem:[%s7036_s4 + $0x200] sm:$0xff] }
 0x3c0   : > { %v2090_v46 = vadd.f32 %v2089_v21, %v1542_v55  ;;  %3701 = vmatmul.mubr.msk.f32.gmra.mrb[102].mxu1 %vm1566_vm12, %v2277_v27 }
 0x3c1   : > { %3340 = vmatprep.mubr.f32.mxu1 %v4042_v50 }
 0x3c2   : > { %v3880_v58 = vpop.f32.mrb[50].mxu0  ;;  %2522 = vperm.xlu1 %4000, %v2090_v46   ;;  %2527 = vperm.xlu0 %3999, %v2095_v48  }
 0x3c3   : > { %v2105_v45 = vadd.f32 %v3880_v58, %v1545_v54  ;;  %v2099_v26 = vpop.f32.mrb[51].mxu0  ;;  %v1560_v58 = vld [vmem:[%s7036_s4 + $0x210] sm:$0xff] }
 0x3c4   : > { %v2100_v15 = vadd.f32 %v2099_v26, %v1544_v23  ;;  %3702 = vmatmul.mubr.msk.f32.gmra.mrb[104].mxu1 %vm1566_vm12, %v2278_v3  ;;  %v1561_v23 = vld [vmem:[%s7036_s4 + $0x218] sm:$0xff] }
 0x3c5   : > { %3346 = vmatprep.mubr.f32.mxu1 %v4042_v50  ;;  %v1549_v50 = vld [vmem:[%s7036_s4 + $0x1b8] sm:$0xff] }
 0x3c6   : > { %v3883_v33 = vpop.f32.mrb[52].mxu0  ;;  %2532 = vperm.xlu1 %4000, %v2100_v15   ;;  %2537 = vperm.xlu0 %3999, %v2105_v45  }
 0x3c7   : > { %v2115_v44 = vadd.f32 %v3883_v33, %v1547_v0  ;;  %v6628_v59 = vpop.f32.mrb[0].mxu1  ;;  %v2109_v57 = vpop.f32.mrb[53].mxu0  ;;  %v1563_v33 = vld [vmem:[%s7036_s4 + $0x228] sm:$0xff] }
 0x3c8   : > { %v2110_v61 = vadd.f32 %v2109_v57, %v1546_v18  ;;  %v6630_v39 = vpop.f32.mrb[1].mxu1  ;;  %3703 = vmatmul.mubr.msk.f32.gmra.mrb[106].mxu1 %vm1566_vm12, %v2279_v1 }
 0x3ca   : > { %v3886_v31 = vpop.f32.mrb[54].mxu0  ;;  %2542 = vperm.xlu1 %4000, %v2110_v61   ;;  %2547 = vperm.xlu0 %3999, %v2115_v44   ;;  %v1562_v61 = vld [vmem:[%s7036_s4 + $0x220] sm:$0xff] }
 0x3cb   : > { %v2125_v10 = vadd.f32 %v3886_v31, %v1549_v50  ;;  %v6639_v28 = vpop.f32.mrb[2].mxu1  ;;  %v2119_v63 = vpop.f32.mrb[55].mxu0 }
 0x3cc   : > { %v2120_v11 = vadd.f32 %v2119_v63, %v1548_v56  ;;  %v6641_v16 = vpop.f32.mrb[3].mxu1 }
 0x3ce   : > { %v3889_v60 = vpop.f32.mrb[56].mxu0  ;;  %2552 = vperm.xlu1 %4000, %v2120_v11   ;;  %2557 = vperm.xlu0 %3999, %v2125_v10  }
 0x3cf   : > { %v2135_v9 = vadd.f32 %v3889_v60, %v1551_v34  ;;  %v6649_v12 = vpop.f32.mrb[4].mxu1  ;;  %v2129_v43 = vpop.f32.mrb[57].mxu0  ;;  %v1565_v34 = vld [vmem:[%s7036_s4 + $0x238] sm:$0xff] }
 0x3d0   : > { %v2130_v52 = vadd.f32 %v2129_v43, %v1550_v4  ;;  %v6651_v36 = vpop.f32.mrb[5].mxu1 }
 0x3d2   : > { %v3892_v41 = vpop.f32.mrb[58].mxu0  ;;  %2562 = vperm.xlu1 %4000, %v2130_v52   ;;  %2567 = vperm.xlu0 %3999, %v2135_v9   ;;  %v1564_v9 = vld [vmem:[%s7036_s4 + $0x230] sm:$0xff] }
 0x3d3   : > { %v2145_v29 = vadd.f32 %v3892_v41, %v1553_v42  ;;  %v6659_v40 = vpop.f32.mrb[6].mxu1  ;;  %v2139_v19 = vpop.f32.mrb[59].mxu0 }
 0x3d4   : > { %v2140_v38 = vadd.f32 %v2139_v19, %v1552_v49  ;;  %v6661_v20 = vpop.f32.mrb[7].mxu1 }
 0x3d6   : > { %v3895_v17 = vpop.f32.mrb[60].mxu0  ;;  %2572 = vperm.xlu1 %4000, %v2140_v38   ;;  %2577 = vperm.xlu0 %3999, %v2145_v29  }
 0x3d7   : > { %v2155_v5 = vadd.f32 %v3895_v17, %v1555_v7  ;;  %v6669_v62 = vpop.f32.mrb[8].mxu1  ;;  %v2149_v47 = vpop.f32.mrb[61].mxu0 }
 0x3d8   : > { %v2150_v14 = vadd.f32 %v2149_v47, %v1554_v24  ;;  %v6671_v35 = vpop.f32.mrb[9].mxu1 }
 0x3da   : > { %v3898_v53 = vpop.f32.mrb[62].mxu0  ;;  %2582 = vperm.xlu1 %4000, %v2150_v14   ;;  %2587 = vperm.xlu0 %3999, %v2155_v5  }
 0x3db   : > { %v2165_v25 = vadd.f32 %v3898_v53, %v1557_v22  ;;  %v6679_v30 = vpop.f32.mrb[10].mxu1  ;;  %v2159_v32 = vpop.f32.mrb[63].mxu0 }
 0x3dc   : > { %v2160_v2 = vadd.f32 %v2159_v32, %v1556_v13  ;;  %v6681_v8 = vpop.f32.mrb[11].mxu1 }
 0x3de   : > { %v3901_v55 = vpop.f32.mrb[64].mxu0  ;;  %2592 = vperm.xlu1 %4000, %v2160_v2   ;;  %2597 = vperm.xlu0 %3999, %v2165_v25  }
 0x3df   : > { %v2175_v27 = vadd.f32 %v3901_v55, %v1559_v51  ;;  %v6689_v37 = vpop.f32.mrb[12].mxu1  ;;  %v2169_v48 = vpop.f32.mrb[65].mxu0 }
 0x3e0   : > { %v2170_v21 = vadd.f32 %v2169_v48, %v1558_v6  ;;  %v6691_v46 = vpop.f32.mrb[13].mxu1  ;;  %v2288_v54 = vpop.permute.xlu1 %2287 }
 0x3e1   : > { %v2283_v3 = vpop.permute.xlu0 %2282 }
 0x3e2   : > { %v3904_v45 = vpop.f32.mrb[66].mxu0  ;;  %2602 = vperm.xlu1 %4000, %v2170_v21   ;;  %2607 = vperm.xlu0 %3999, %v2175_v27  }
 0x3e3   : > { %v2185_v26 = vadd.f32 %v3904_v45, %v1561_v23  ;;  %v6699_v15 = vpop.f32.mrb[14].mxu1  ;;  %v2179_v0 = vpop.f32.mrb[67].mxu0 }
 0x3e4   : > { %v2180_v18 = vadd.f32 %v2179_v0, %v1560_v58  ;;  %v6701_v1 = vpop.f32.mrb[15].mxu1 }
 0x3e5   : > { %v2293_v44 = vpop.permute.xlu1 %2292  ;;  %v2298_v57 = vpop.permute.xlu0 %2297 }
 0x3e6   : > { %v3907_v50 = vpop.f32.mrb[68].mxu0  ;;  %2612 = vperm.xlu1 %4000, %v2180_v18   ;;  %2617 = vperm.xlu0 %3999, %v2185_v26  }
 0x3e7   : > { %v2195_v56 = vadd.f32 %v3907_v50, %v1563_v33  ;;  %v6709_v31 = vpop.f32.mrb[16].mxu1  ;;  %v2189_v10 = vpop.f32.mrb[69].mxu0 }
 0x3e8   : > { %v2190_v63 = vadd.f32 %v2189_v10, %v1562_v61  ;;  %v6711_v11 = vpop.f32.mrb[17].mxu1 }
 0x3e9   : > { %v2303_v4 = vpop.permute.xlu1 %2302  ;;  %v6716_v60 = vpop.permute.xlu0 %2307 }
 0x3ea   : > { %v3910_v43 = vpop.f32.mrb[70].mxu0  ;;  %2622 = vperm.xlu1 %4000, %v2190_v63   ;;  %2627 = vperm.xlu0 %3999, %v2195_v56  }
 0x3eb   : > { %v2205_v52 = vadd.f32 %v3910_v43, %v1565_v34  ;;  %v6722_v42 = vpop.f32.mrb[18].mxu1  ;;  %v2199_v49 = vpop.f32.mrb[71].mxu0 }
 0x3ec   : > { %v2200_v41 = vadd.f32 %v2199_v49, %v1564_v9  ;;  %v6724_v29 = vpop.f32.mrb[19].mxu1 }
 0x3ed   : > { %v6726_v19 = vpop.permute.xlu1 %2312  ;;  %v6728_v38 = vpop.permute.xlu0 %2317 }
 0x3ee   : > { %2632 = vperm.xlu1 %4000, %v2200_v41   ;;  %2637 = vperm.xlu0 %3999, %v2205_v52   ;;  %v2922_v7 = vpop.f32.mrb[72].mxu0 }
 0x3ef   : > { %v2923_v24 = vadd.f32 %v2922_v7, %v2283_v3  ;;  %v6735_v17 = vpop.f32.mrb[20].mxu1  ;;  %v2924_v5 = vpop.f32.mrb[73].mxu0 }
 0x3f0   : > { %v2925_v47 = vadd.f32 %v2924_v5, %v2283_v3  ;;  %v6737_v14 = vpop.f32.mrb[21].mxu1 }
 0x3f1   : > { %3353 = vst [vmem:[%s6733_s30] sm:$0xff] %v2923_v24  ;;  %v6740_v22 = vpop.permute.xlu1 %2322  ;;  %v6742_v13 = vpop.permute.xlu0 %2327 }
 0x3f2   : > { %3354 = vst [vmem:[%s6733_s30 + $0x8] sm:$0xff] %v2925_v47  ;;  %v2928_v53 = vpop.f32.mrb[74].mxu0 }
 0x3f3   : > { %v6745_v25 = vpop.f32.mrb[22].mxu1  ;;  %v2929_v32 = vadd.f32 %v2928_v53, %v2288_v54  ;;  %v2930_v2 = vpop.f32.mrb[75].mxu0 }
 0x3f4   : > { %v6747_v51 = vpop.f32.mrb[23].mxu1  ;;  %v2931_v6 = vadd.f32 %v2930_v2, %v2288_v54 }
 0x3f5   : > { %v6749_v55 = vpop.permute.xlu1 %2332  ;;  %v6751_v27 = vpop.permute.xlu0 %2337  ;;  %3355 = vst [vmem:[%s6733_s30 + $0x10] sm:$0xff] %v2929_v32 }
 0x3f6   : > { %3356 = vst [vmem:[%s6733_s30 + $0x18] sm:$0xff] %v2931_v6  ;;  %v2934_v48 = vpop.f32.mrb[76].mxu0 }
 0x3f7   : > { %v6755_v21 = vpop.f32.mrb[24].mxu1  ;;  %v2935_v23 = vadd.f32 %v2934_v48, %v2293_v44  ;;  %v2936_v3 = vpop.f32.mrb[77].mxu0 }
 0x3f8   : > { %v6757_v58 = vpop.f32.mrb[25].mxu1  ;;  %v2937_v45 = vadd.f32 %v2936_v3, %v2293_v44 }
 0x3f9   : > { %3357 = vst [vmem:[%s6733_s30 + $0x20] sm:$0xff] %v2935_v23  ;;  %v6760_v26 = vpop.permute.xlu1 %2342  ;;  %v6762_v54 = vpop.permute.xlu0 %2347 }
 0x3fa   : > { %3358 = vst [vmem:[%s6733_s30 + $0x28] sm:$0xff] %v2937_v45  ;;  %v2940_v0 = vpop.f32.mrb[78].mxu0 }
 0x3fb   : > { %v2941_v18 = vadd.f32 %v2940_v0, %v2298_v57  ;;  %v6765_v33 = vpop.f32.mrb[26].mxu1  ;;  %v2942_v61 = vpop.f32.mrb[79].mxu0 }
 0x3fc   : > { %v2943_v50 = vadd.f32 %v2942_v61, %v2298_v57  ;;  %v6767_v56 = vpop.f32.mrb[27].mxu1 }
 0x3fd   : > { %3359 = vst [vmem:[%s6733_s30 + $0x30] sm:$0xff] %v2941_v18  ;;  %v6770_v10 = vpop.permute.xlu1 %2352  ;;  %v6772_v44 = vpop.permute.xlu0 %2357 }
 0x3fe   : > { %3360 = vst [vmem:[%s6733_s30 + $0x38] sm:$0xff] %v2943_v50  ;;  %v2946_v63 = vpop.f32.mrb[80].mxu0 }
 0x3ff   : > { %v6775_v34 = vpop.f32.mrb[28].mxu1  ;;  %v2947_v9 = vadd.f32 %v2946_v63, %v2303_v4  ;;  %v2948_v43 = vpop.f32.mrb[81].mxu0 }
 0x400   : > { %v6777_v52 = vpop.f32.mrb[29].mxu1  ;;  %v2949_v49 = vadd.f32 %v2948_v43, %v2303_v4 }
 0x401   : > { %3361 = vst [vmem:[%s6733_s30 + $0x40] sm:$0xff] %v2947_v9  ;;  %v6780_v57 = vpop.permute.xlu1 %2362  ;;  %v6782_v41 = vpop.permute.xlu0 %2367 }
 0x402   : > { %3362 = vst [vmem:[%s6733_s30 + $0x48] sm:$0xff] %v2949_v49  ;;  %v2952_v7 = vpop.f32.mrb[82].mxu0 }
 0x403   : > { %v2953_v24 = vadd.f32 %v2952_v7, %v6716_v60  ;;  %v6786_v5 = vpop.f32.mrb[30].mxu1  ;;  %v2954_v47 = vpop.f32.mrb[83].mxu0 }
 0x404   : > { %v2955_v53 = vadd.f32 %v2954_v47, %v6716_v60  ;;  %v6789_v32 = vpop.f32.mrb[31].mxu1 }
 0x405   : > { %3363 = vst [vmem:[%s6733_s30 + $0x50] sm:$0xff] %v2953_v24  ;;  %v2373_v4 = vpop.permute.xlu1 %2372  ;;  %v2378_v2 = vpop.permute.xlu0 %2377 }
 0x406   : > { %3364 = vst [vmem:[%s6733_s30 + $0x58] sm:$0xff] %v2955_v53  ;;  %v3031_v6 = vadd.f32 %v6628_v59, %v2373_v4  ;;  %v3033_v48 = vadd.f32 %v6630_v39, %v2373_v4  ;;  %v3037_v23 = vadd.f32 %v6639_v28, %v2378_v2  ;;  %v3039_v3 = vadd.f32 %v6641_v16, %v2378_v2  ;;  %v2958_v45 = vpop.f32.mrb[84].mxu0 }
 0x407   : > { %v6797_v0 = vpop.f32.mrb[32].mxu1  ;;  %v2959_v60 = vadd.f32 %v2958_v45, %v6726_v19  ;;  %v2960_v18 = vpop.f32.mrb[85].mxu0 }
 0x408   : > { %3389 = vst [vmem:[%s6733_s30 + $0x120] sm:$0xff] %v3031_v6  ;;  %3390 = vst [vmem:[%s6733_s30 + $0x128] sm:$0xff] %v3033_v48  ;;  %v6804_v59 = vpop.f32.mrb[33].mxu1  ;;  %v2961_v39 = vadd.f32 %v2960_v18, %v6726_v19 }
 0x409   : > { %3391 = vst [vmem:[%s6733_s30 + $0x130] sm:$0xff] %v3037_v23  ;;  %3392 = vst [vmem:[%s6733_s30 + $0x138] sm:$0xff] %v3039_v3  ;;  %v2383_v28 = vpop.permute.xlu1 %2382  ;;  %v2388_v16 = vpop.permute.xlu0 %2387 }
 0x40a   : > { %3365 = vst [vmem:[%s6733_s30 + $0x60] sm:$0xff] %v2959_v60  ;;  %v3043_v61 = vadd.f32 %v6649_v12, %v2383_v28  ;;  %v3045_v50 = vadd.f32 %v6651_v36, %v2383_v28  ;;  %v3049_v63 = vadd.f32 %v6659_v40, %v2388_v16  ;;  %v3051_v9 = vadd.f32 %v6661_v20, %v2388_v16  ;;  %v2964_v43 = vpop.f32.mrb[86].mxu0 }
 0x40b   : > { %3366 = vst [vmem:[%s6733_s30 + $0x68] sm:$0xff] %v2961_v39  ;;  %v2965_v49 = vadd.f32 %v2964_v43, %v6728_v38  ;;  %v6814_v7 = vpop.f32.mrb[34].mxu1  ;;  %v2966_v19 = vpop.f32.mrb[87].mxu0 }
 0x40c   : > { %3393 = vst [vmem:[%s6733_s30 + $0x140] sm:$0xff] %v3043_v61  ;;  %3394 = vst [vmem:[%s6733_s30 + $0x148] sm:$0xff] %v3045_v50  ;;  %v2967_v12 = vadd.f32 %v2966_v19, %v6728_v38  ;;  %v6821_v36 = vpop.f32.mrb[35].mxu1 }
 0x40d   : > { %3395 = vst [vmem:[%s6733_s30 + $0x150] sm:$0xff] %v3049_v63  ;;  %3396 = vst [vmem:[%s6733_s30 + $0x158] sm:$0xff] %v3051_v9  ;;  %v2393_v40 = vpop.permute.xlu1 %2392  ;;  %v2398_v20 = vpop.permute.xlu0 %2397 }
 0x40e   : > { %3367 = vst [vmem:[%s6733_s30 + $0x70] sm:$0xff] %v2965_v49  ;;  %3368 = vst [vmem:[%s6733_s30 + $0x78] sm:$0xff] %v2967_v12  ;;  %v3055_v24 = vadd.f32 %v6669_v62, %v2393_v40  ;;  %v3057_v47 = vadd.f32 %v6671_v35, %v2393_v40  ;;  %v3061_v53 = vadd.f32 %v6679_v30, %v2398_v20  ;;  %v2970_v2 = vpop.f32.mrb[88].mxu0 }
 0x40f   : > { %v3063_v4 = vadd.f32 %v6681_v8, %v2398_v20  ;;  %v2971_v38 = vadd.f32 %v2970_v2, %v6740_v22  ;;  %v6830_v6 = vpop.f32.mrb[36].mxu1  ;;  %v2972_v48 = vpop.f32.mrb[89].mxu0 }
 0x410   : > { %3397 = vst [vmem:[%s6733_s30 + $0x160] sm:$0xff] %v3055_v24  ;;  %3398 = vst [vmem:[%s6733_s30 + $0x168] sm:$0xff] %v3057_v47  ;;  %v2973_v62 = vadd.f32 %v2972_v48, %v6740_v22  ;;  %v6837_v35 = vpop.f32.mrb[37].mxu1 }
 0x411   : > { %3399 = vst [vmem:[%s6733_s30 + $0x170] sm:$0xff] %v3061_v53  ;;  %3400 = vst [vmem:[%s6733_s30 + $0x178] sm:$0xff] %v3063_v4  ;;  %v2403_v30 = vpop.permute.xlu1 %2402  ;;  %v2408_v8 = vpop.permute.xlu0 %2407 }
 0x412   : > { %3369 = vst [vmem:[%s6733_s30 + $0x80] sm:$0xff] %v2971_v38  ;;  %3370 = vst [vmem:[%s6733_s30 + $0x88] sm:$0xff] %v2973_v62  ;;  %v3067_v23 = vadd.f32 %v6689_v37, %v2403_v30  ;;  %v3069_v3 = vadd.f32 %v6691_v46, %v2403_v30  ;;  %v3073_v45 = vadd.f32 %v6699_v15, %v2408_v8  ;;  %v2976_v18 = vpop.f32.mrb[90].mxu0 }
 0x413   : > { %v3075_v60 = vadd.f32 %v6701_v1, %v2408_v8  ;;  %v2977_v22 = vadd.f32 %v2976_v18, %v6742_v13  ;;  %v6846_v39 = vpop.f32.mrb[38].mxu1  ;;  %v2978_v28 = vpop.f32.mrb[91].mxu0 }
 0x414   : > { %3401 = vst [vmem:[%s6733_s30 + $0x180] sm:$0xff] %v3067_v23  ;;  %3402 = vst [vmem:[%s6733_s30 + $0x188] sm:$0xff] %v3069_v3  ;;  %v2979_v37 = vadd.f32 %v2978_v28, %v6742_v13  ;;  %v6853_v46 = vpop.f32.mrb[39].mxu1 }
 0x415   : > { %3403 = vst [vmem:[%s6733_s30 + $0x190] sm:$0xff] %v3073_v45  ;;  %3404 = vst [vmem:[%s6733_s30 + $0x198] sm:$0xff] %v3075_v60  ;;  %v2413_v15 = vpop.permute.xlu1 %2412  ;;  %v2418_v1 = vpop.permute.xlu0 %2417 }
 0x416   : > { %3371 = vst [vmem:[%s6733_s30 + $0x90] sm:$0xff] %v2977_v22  ;;  %3372 = vst [vmem:[%s6733_s30 + $0x98] sm:$0xff] %v2979_v37  ;;  %v3079_v16 = vadd.f32 %v6709_v31, %v2413_v15  ;;  %v3081_v61 = vadd.f32 %v6711_v11, %v2413_v15  ;;  %v3085_v50 = vadd.f32 %v6722_v42, %v2418_v1  ;;  %v2982_v9 = vpop.f32.mrb[92].mxu0 }
 0x417   : > { %v3087_v63 = vadd.f32 %v6724_v29, %v2418_v1  ;;  %v2983_v13 = vadd.f32 %v2982_v9, %v6749_v55  ;;  %v6862_v43 = vpop.f32.mrb[40].mxu1  ;;  %v2984_v49 = vpop.f32.mrb[93].mxu0 }
 0x418   : > { %3405 = vst [vmem:[%s6733_s30 + $0x1a0] sm:$0xff] %v3079_v16  ;;  %3406 = vst [vmem:[%s6733_s30 + $0x1a8] sm:$0xff] %v3081_v61  ;;  %v2985_v31 = vadd.f32 %v2984_v49, %v6749_v55  ;;  %v6869_v11 = vpop.f32.mrb[41].mxu1 }
 0x419   : > { %3407 = vst [vmem:[%s6733_s30 + $0x1b0] sm:$0xff] %v3085_v50  ;;  %3408 = vst [vmem:[%s6733_s30 + $0x1b8] sm:$0xff] %v3087_v63  ;;  %v2423_v42 = vpop.permute.xlu1 %2422  ;;  %v2428_v29 = vpop.permute.xlu0 %2427 }
 0x41a   : > { %3373 = vst [vmem:[%s6733_s30 + $0xa0] sm:$0xff] %v2983_v13  ;;  %3374 = vst [vmem:[%s6733_s30 + $0xa8] sm:$0xff] %v2985_v31  ;;  %v3091_v19 = vadd.f32 %v6735_v17, %v2423_v42  ;;  %v3093_v12 = vadd.f32 %v6737_v14, %v2423_v42  ;;  %v3097_v40 = vadd.f32 %v6745_v25, %v2428_v29  ;;  %v2988_v24 = vpop.f32.mrb[94].mxu0 }
 0x41b   : > { %v3099_v20 = vadd.f32 %v6747_v51, %v2428_v29  ;;  %v2989_v55 = vadd.f32 %v2988_v24, %v6751_v27  ;;  %v6878_v47 = vpop.f32.mrb[42].mxu1  ;;  %v2990_v53 = vpop.f32.mrb[95].mxu0 }
 0x41c   : > { %3409 = vst [vmem:[%s6733_s30 + $0x1c0] sm:$0xff] %v3091_v19  ;;  %3410 = vst [vmem:[%s6733_s30 + $0x1c8] sm:$0xff] %v3093_v12  ;;  %v2991_v17 = vadd.f32 %v2990_v53, %v6751_v27  ;;  %v6885_v14 = vpop.f32.mrb[43].mxu1 }
 0x41d   : > { %3411 = vst [vmem:[%s6733_s30 + $0x1d0] sm:$0xff] %v3097_v40  ;;  %3412 = vst [vmem:[%s6733_s30 + $0x1d8] sm:$0xff] %v3099_v20  ;;  %v2433_v25 = vpop.permute.xlu1 %2432  ;;  %v2438_v51 = vpop.permute.xlu0 %2437 }
 0x41e   : > { %3375 = vst [vmem:[%s6733_s30 + $0xb0] sm:$0xff] %v2989_v55  ;;  %3376 = vst [vmem:[%s6733_s30 + $0xb8] sm:$0xff] %v2991_v17  ;;  %v3103_v4 = vadd.f32 %v6755_v21, %v2433_v25  ;;  %v3105_v2 = vadd.f32 %v6757_v58, %v2433_v25  ;;  %v3109_v38 = vadd.f32 %v6765_v33, %v2438_v51  ;;  %v2994_v62 = vpop.f32.mrb[96].mxu0 }
 0x41f   : > { %v3111_v48 = vadd.f32 %v6767_v56, %v2438_v51  ;;  %v2995_v27 = vadd.f32 %v2994_v62, %v6760_v26  ;;  %v6894_v30 = vpop.f32.mrb[44].mxu1  ;;  %v2996_v8 = vpop.f32.mrb[97].mxu0 }
 0x420   : > { %3413 = vst [vmem:[%s6733_s30 + $0x1e0] sm:$0xff] %v3103_v4  ;;  %3414 = vst [vmem:[%s6733_s30 + $0x1e8] sm:$0xff] %v3105_v2  ;;  %v2997_v21 = vadd.f32 %v2996_v8, %v6760_v26  ;;  %v6901_v58 = vpop.f32.mrb[45].mxu1 }
 0x421   : > { %3415 = vst [vmem:[%s6733_s30 + $0x1f0] sm:$0xff] %v3109_v38  ;;  %3416 = vst [vmem:[%s6733_s30 + $0x1f8] sm:$0xff] %v3111_v48  ;;  %v2443_v33 = vpop.permute.xlu1 %2442  ;;  %v2448_v56 = vpop.permute.xlu0 %2447 }
 0x422   : > { %3377 = vst [vmem:[%s6733_s30 + $0xc0] sm:$0xff] %v2995_v27  ;;  %3378 = vst [vmem:[%s6733_s30 + $0xc8] sm:$0xff] %v2997_v21  ;;  %v3115_v23 = vadd.f32 %v6775_v34, %v2443_v33  ;;  %v3117_v3 = vadd.f32 %v6777_v52, %v2443_v33  ;;  %v3121_v45 = vadd.f32 %v6786_v5, %v2448_v56  ;;  %v3000_v18 = vpop.f32.mrb[98].mxu0 }
 0x423   : > { %v3123_v60 = vadd.f32 %v6789_v32, %v2448_v56  ;;  %v3001_v26 = vadd.f32 %v3000_v18, %v6762_v54  ;;  %v6910_v22 = vpop.f32.mrb[46].mxu1  ;;  %v3002_v28 = vpop.f32.mrb[99].mxu0 }
 0x424   : > { %3417 = vst [vmem:[%s6733_s30 + $0x200] sm:$0xff] %v3115_v23  ;;  %3418 = vst [vmem:[%s6733_s30 + $0x208] sm:$0xff] %v3117_v3  ;;  %v3003_v34 = vadd.f32 %v3002_v28, %v6762_v54  ;;  %v3170_v52 = vpop.f32.mrb[47].mxu1 }
 0x425   : > { %3419 = vst [vmem:[%s6733_s30 + $0x210] sm:$0xff] %v3121_v45  ;;  %3420 = vst [vmem:[%s6733_s30 + $0x218] sm:$0xff] %v3123_v60  ;;  %v2453_v5 = vpop.permute.xlu1 %2452  ;;  %v2458_v32 = vpop.permute.xlu0 %2457 }
 0x426   : > { %3379 = vst [vmem:[%s6733_s30 + $0xd0] sm:$0xff] %v3001_v26  ;;  %3380 = vst [vmem:[%s6733_s30 + $0xd8] sm:$0xff] %v3003_v34  ;;  %v3127_v37 = vadd.f32 %v6797_v0, %v2453_v5  ;;  %v3129_v15 = vadd.f32 %v6804_v59, %v2453_v5  ;;  %v3133_v1 = vadd.f32 %v6814_v7, %v2458_v32  ;;  %v3006_v61 = vpop.f32.mrb[100].mxu0 }
 0x427   : > { %v3135_v16 = vadd.f32 %v6821_v36, %v2458_v32  ;;  %v3007_v54 = vadd.f32 %v3006_v61, %v6770_v10  ;;  %v6924_v50 = vpop.f32.mrb[48].mxu1  ;;  %v3008_v63 = vpop.f32.mrb[101].mxu0 }
 0x428   : > { %3421 = vst [vmem:[%s6733_s30 + $0x220] sm:$0xff] %v3127_v37  ;;  %3422 = vst [vmem:[%s6733_s30 + $0x228] sm:$0xff] %v3129_v15  ;;  %v3009_v0 = vadd.f32 %v3008_v63, %v6770_v10  ;;  %v3176_v59 = vpop.f32.mrb[49].mxu1 }
 0x429   : > { %3423 = vst [vmem:[%s6733_s30 + $0x230] sm:$0xff] %v3133_v1  ;;  %3424 = vst [vmem:[%s6733_s30 + $0x238] sm:$0xff] %v3135_v16  ;;  %v2463_v7 = vpop.permute.xlu1 %2462  ;;  %v2468_v36 = vpop.permute.xlu0 %2467 }
 0x42a   : > { %3381 = vst [vmem:[%s6733_s30 + $0xe0] sm:$0xff] %v3007_v54  ;;  %3382 = vst [vmem:[%s6733_s30 + $0xe8] sm:$0xff] %v3009_v0  ;;  %v3139_v9 = vadd.f32 %v6830_v6, %v2463_v7  ;;  %v3141_v13 = vadd.f32 %v6837_v35, %v2463_v7  ;;  %v3145_v49 = vadd.f32 %v6846_v39, %v2468_v36  ;;  %v3012_v42 = vpop.f32.mrb[102].mxu0 }
 0x42b   : > { %v3147_v31 = vadd.f32 %v6853_v46, %v2468_v36  ;;  %v3013_v10 = vadd.f32 %v3012_v42, %v6772_v44  ;;  %v3180_v29 = vpop.f32.mrb[50].mxu1  ;;  %v3014_v19 = vpop.f32.mrb[103].mxu0 }
 0x42c   : > { %3425 = vst [vmem:[%s6733_s30 + $0x240] sm:$0xff] %v3139_v9  ;;  %3426 = vst [vmem:[%s6733_s30 + $0x248] sm:$0xff] %v3141_v13  ;;  %v3015_v6 = vadd.f32 %v3014_v19, %v6772_v44  ;;  %v3182_v35 = vpop.f32.mrb[51].mxu1 }
 0x42d   : > { %3427 = vst [vmem:[%s6733_s30 + $0x250] sm:$0xff] %v3145_v49  ;;  %3428 = vst [vmem:[%s6733_s30 + $0x258] sm:$0xff] %v3147_v31  ;;  %v2473_v39 = vpop.permute.xlu1 %2472  ;;  %v2478_v12 = vpop.permute.xlu0 %2477 }
 0x42e   : > { %3383 = vst [vmem:[%s6733_s30 + $0xf0] sm:$0xff] %v3013_v10  ;;  %3384 = vst [vmem:[%s6733_s30 + $0xf8] sm:$0xff] %v3015_v6  ;;  %v3151_v46 = vadd.f32 %v6862_v43, %v2473_v39  ;;  %v3153_v40 = vadd.f32 %v6869_v11, %v2473_v39  ;;  %v3157_v20 = vadd.f32 %v6878_v47, %v2478_v12  ;;  %v3018_v55 = vpop.f32.mrb[104].mxu0 }
 0x42f   : > { %v3159_v24 = vadd.f32 %v6885_v14, %v2478_v12  ;;  %v3019_v44 = vadd.f32 %v3018_v55, %v6780_v57  ;;  %v3186_v53 = vpop.f32.mrb[52].mxu1  ;;  %v3020_v17 = vpop.f32.mrb[105].mxu0 }
 0x430   : > { %3429 = vst [vmem:[%s6733_s30 + $0x260] sm:$0xff] %v3151_v46  ;;  %3430 = vst [vmem:[%s6733_s30 + $0x268] sm:$0xff] %v3153_v40  ;;  %v3021_v43 = vadd.f32 %v3020_v17, %v6780_v57  ;;  %v3188_v11 = vpop.f32.mrb[53].mxu1 }
 0x431   : > { %3431 = vst [vmem:[%s6733_s30 + $0x270] sm:$0xff] %v3157_v20  ;;  %3432 = vst [vmem:[%s6733_s30 + $0x278] sm:$0xff] %v3159_v24  ;;  %v2483_v47 = vpop.permute.xlu1 %2482  ;;  %v2488_v25 = vpop.permute.xlu0 %2487 }
 0x432   : > { %3385 = vst [vmem:[%s6733_s30 + $0x100] sm:$0xff] %v3019_v44  ;;  %3386 = vst [vmem:[%s6733_s30 + $0x108] sm:$0xff] %v3021_v43  ;;  %v3163_v14 = vadd.f32 %v6894_v30, %v2483_v47  ;;  %v3165_v51 = vadd.f32 %v6901_v58, %v2483_v47  ;;  %v3169_v4 = vadd.f32 %v6910_v22, %v2488_v25  ;;  %v3024_v38 = vpop.f32.mrb[106].mxu0 }
 0x433   : > { %v3171_v2 = vadd.f32 %v3170_v52, %v2488_v25  ;;  %v3025_v48 = vadd.f32 %v3024_v38, %v6782_v41  ;;  %v3192_v57 = vpop.f32.mrb[54].mxu1  ;;  %v3026_v62 = vpop.f32.mrb[107].mxu0 }
 0x434   : > { %3433 = vst [vmem:[%s6733_s30 + $0x280] sm:$0xff] %v3163_v14  ;;  %3434 = vst [vmem:[%s6733_s30 + $0x288] sm:$0xff] %v3165_v51  ;;  %v3027_v27 = vadd.f32 %v3026_v62, %v6782_v41  ;;  %v3194_v30 = vpop.f32.mrb[55].mxu1 }
 0x435   : > { %3435 = vst [vmem:[%s6733_s30 + $0x290] sm:$0xff] %v3169_v4  ;;  %3436 = vst [vmem:[%s6733_s30 + $0x298] sm:$0xff] %v3171_v2  ;;  %v2493_v8 = vpop.permute.xlu1 %2492  ;;  %v2498_v21 = vpop.permute.xlu0 %2497 }
 0x436   : > { %3387 = vst [vmem:[%s6733_s30 + $0x110] sm:$0xff] %v3025_v48  ;;  %3388 = vst [vmem:[%s6733_s30 + $0x118] sm:$0xff] %v3027_v27  ;;  %v3175_v58 = vadd.f32 %v6924_v50, %v2493_v8  ;;  %v3177_v33 = vadd.f32 %v3176_v59, %v2493_v8  ;;  %v3181_v56 = vadd.f32 %v3180_v29, %v2498_v21 }
 0x437   : > { %v3183_v23 = vadd.f32 %v3182_v35, %v2498_v21  ;;  %v3198_v3 = vpop.f32.mrb[56].mxu1 }
 0x438   : > { %3437 = vst [vmem:[%s6733_s30 + $0x2a0] sm:$0xff] %v3175_v58  ;;  %3438 = vst [vmem:[%s6733_s30 + $0x2a8] sm:$0xff] %v3177_v33  ;;  %v3200_v41 = vpop.f32.mrb[57].mxu1 }
 0x439   : > { %3439 = vst [vmem:[%s6733_s30 + $0x2b0] sm:$0xff] %v3181_v56  ;;  %3440 = vst [vmem:[%s6733_s30 + $0x2b8] sm:$0xff] %v3183_v23  ;;  %v2503_v45 = vpop.permute.xlu1 %2502  ;;  %v2508_v60 = vpop.permute.xlu0 %2507 }
 0x43a   : > { %v3187_v18 = vadd.f32 %v3186_v53, %v2503_v45  ;;  %v3189_v26 = vadd.f32 %v3188_v11, %v2503_v45  ;;  %v3193_v22 = vadd.f32 %v3192_v57, %v2508_v60  ;;  %v3195_v28 = vadd.f32 %v3194_v30, %v2508_v60 }
 0x43b   : > { %v3204_v34 = vpop.f32.mrb[58].mxu1 }
 0x43c   : > { %3441 = vst [vmem:[%s6733_s30 + $0x2c0] sm:$0xff] %v3187_v18  ;;  %3442 = vst [vmem:[%s6733_s30 + $0x2c8] sm:$0xff] %v3189_v26  ;;  %v3206_v52 = vpop.f32.mrb[59].mxu1 }
 0x43d   : > { %3443 = vst [vmem:[%s6733_s30 + $0x2d0] sm:$0xff] %v3193_v22  ;;  %3444 = vst [vmem:[%s6733_s30 + $0x2d8] sm:$0xff] %v3195_v28  ;;  %v2513_v5 = vpop.permute.xlu1 %2512  ;;  %v2518_v32 = vpop.permute.xlu0 %2517 }
 0x43e   : > { %v3199_v37 = vadd.f32 %v3198_v3, %v2513_v5  ;;  %v3201_v15 = vadd.f32 %v3200_v41, %v2513_v5  ;;  %v3205_v1 = vadd.f32 %v3204_v34, %v2518_v32  ;;  %v3207_v16 = vadd.f32 %v3206_v52, %v2518_v32 }
 0x43f   : > { %v3210_v61 = vpop.f32.mrb[60].mxu1 }
 0x440   : > { %3445 = vst [vmem:[%s6733_s30 + $0x2e0] sm:$0xff] %v3199_v37  ;;  %3446 = vst [vmem:[%s6733_s30 + $0x2e8] sm:$0xff] %v3201_v15  ;;  %v3212_v54 = vpop.f32.mrb[61].mxu1 }
 0x441   : > { %3447 = vst [vmem:[%s6733_s30 + $0x2f0] sm:$0xff] %v3205_v1  ;;  %3448 = vst [vmem:[%s6733_s30 + $0x2f8] sm:$0xff] %v3207_v16  ;;  %v2523_v50 = vpop.permute.xlu1 %2522  ;;  %v2528_v63 = vpop.permute.xlu0 %2527 }
 0x442   : > { %v3211_v0 = vadd.f32 %v3210_v61, %v2523_v50  ;;  %v3213_v59 = vadd.f32 %v3212_v54, %v2523_v50 }
 0x443   : > { %v3216_v7 = vpop.f32.mrb[62].mxu1 }
 0x444   : > { %3449 = vst [vmem:[%s6733_s30 + $0x300] sm:$0xff] %v3211_v0  ;;  %3450 = vst [vmem:[%s6733_s30 + $0x308] sm:$0xff] %v3213_v59  ;;  %v3217_v36 = vadd.f32 %v3216_v7, %v2528_v63  ;;  %v3218_v9 = vpop.f32.mrb[63].mxu1 }
 0x445   : > { %v3219_v13 = vadd.f32 %v3218_v9, %v2528_v63  ;;  %v2533_v49 = vpop.permute.xlu1 %2532  ;;  %v2538_v19 = vpop.permute.xlu0 %2537 }
 0x446   : > { %3451 = vst [vmem:[%s6733_s30 + $0x310] sm:$0xff] %v3217_v36 }
 0x447   : > { %3452 = vst [vmem:[%s6733_s30 + $0x318] sm:$0xff] %v3219_v13  ;;  %v3222_v31 = vpop.f32.mrb[64].mxu1 }
 0x448   : > { %v3223_v42 = vadd.f32 %v3222_v31, %v2533_v49  ;;  %v3224_v10 = vpop.f32.mrb[65].mxu1 }
 0x449   : > { %v3225_v29 = vadd.f32 %v3224_v10, %v2533_v49  ;;  %v2543_v46 = vpop.permute.xlu1 %2542  ;;  %v2548_v44 = vpop.permute.xlu0 %2547 }
 0x44a   : > { %3453 = vst [vmem:[%s6733_s30 + $0x320] sm:$0xff] %v3223_v42 }
 0x44b   : > { %3454 = vst [vmem:[%s6733_s30 + $0x328] sm:$0xff] %v3225_v29  ;;  %v3228_v6 = vpop.f32.mrb[66].mxu1 }
 0x44c   : > { %v3229_v35 = vadd.f32 %v3228_v6, %v2538_v19  ;;  %v3230_v39 = vpop.f32.mrb[67].mxu1 }
 0x44d   : > { %v3231_v12 = vadd.f32 %v3230_v39, %v2538_v19  ;;  %v2553_v47 = vpop.permute.xlu1 %2552  ;;  %v2558_v2 = vpop.permute.xlu0 %2557 }
 0x44e   : > { %3455 = vst [vmem:[%s6733_s30 + $0x330] sm:$0xff] %v3229_v35 }
 0x44f   : > { %3456 = vst [vmem:[%s6733_s30 + $0x338] sm:$0xff] %v3231_v12  ;;  %v3234_v40 = vpop.f32.mrb[68].mxu1 }
 0x450   : > { %v3235_v20 = vadd.f32 %v3234_v40, %v2543_v46  ;;  %v3236_v24 = vpop.f32.mrb[69].mxu1 }
 0x451   : > { %v3237_v55 = vadd.f32 %v3236_v24, %v2543_v46  ;;  %v2563_v27 = vpop.permute.xlu1 %2562  ;;  %v2568_v33 = vpop.permute.xlu0 %2567 }
 0x452   : > { %3457 = vst [vmem:[%s6733_s30 + $0x340] sm:$0xff] %v3235_v20 }
 0x453   : > { %3458 = vst [vmem:[%s6733_s30 + $0x348] sm:$0xff] %v3237_v55  ;;  %v3240_v53 = vpop.f32.mrb[70].mxu1 }
 0x454   : > { %v3241_v17 = vadd.f32 %v3240_v53, %v2548_v44  ;;  %v3242_v43 = vpop.f32.mrb[71].mxu1 }
 0x455   : > { %v3243_v11 = vadd.f32 %v3242_v43, %v2548_v44  ;;  %v2573_v45 = vpop.permute.xlu1 %2572  ;;  %v2578_v28 = vpop.permute.xlu0 %2577 }
 0x456   : > { %3459 = vst [vmem:[%s6733_s30 + $0x350] sm:$0xff] %v3241_v17 }
 0x457   : > { %3460 = vst [vmem:[%s6733_s30 + $0x358] sm:$0xff] %v3243_v11  ;;  %v3246_v25 = vpop.f32.mrb[72].mxu1 }
 0x458   : > { %v3247_v14 = vadd.f32 %v3246_v25, %v2553_v47  ;;  %v3248_v51 = vpop.f32.mrb[73].mxu1 }
 0x459   : > { %v3249_v4 = vadd.f32 %v3248_v51, %v2553_v47  ;;  %v2583_v37 = vpop.permute.xlu1 %2582  ;;  %v2588_v54 = vpop.permute.xlu0 %2587 }
 0x45a   : > { %3461 = vst [vmem:[%s6733_s30 + $0x360] sm:$0xff] %v3247_v14 }
 0x45b   : > { %3462 = vst [vmem:[%s6733_s30 + $0x368] sm:$0xff] %v3249_v4  ;;  %v3252_v38 = vpop.f32.mrb[74].mxu1 }
 0x45c   : > { %v3253_v48 = vadd.f32 %v3252_v38, %v2558_v2  ;;  %v3254_v57 = vpop.f32.mrb[75].mxu1 }
 0x45d   : > { %v3255_v62 = vadd.f32 %v3254_v57, %v2558_v2  ;;  %v2593_v7 = vpop.permute.xlu1 %2592  ;;  %v2598_v31 = vpop.permute.xlu0 %2597 }
 0x45e   : > { %3463 = vst [vmem:[%s6733_s30 + $0x370] sm:$0xff] %v3253_v48 }
 0x45f   : > { %3464 = vst [vmem:[%s6733_s30 + $0x378] sm:$0xff] %v3255_v62  ;;  %v3258_v30 = vpop.f32.mrb[76].mxu1 }
 0x460   : > { %v3259_v8 = vadd.f32 %v3258_v30, %v2563_v27  ;;  %v3260_v21 = vpop.f32.mrb[77].mxu1 }
 0x461   : > { %v3261_v58 = vadd.f32 %v3260_v21, %v2563_v27  ;;  %v2603_v6 = vpop.permute.xlu1 %2602  ;;  %v2608_v40 = vpop.permute.xlu0 %2607 }
 0x462   : > { %3465 = vst [vmem:[%s6733_s30 + $0x380] sm:$0xff] %v3259_v8 }
 0x463   : > { %3466 = vst [vmem:[%s6733_s30 + $0x388] sm:$0xff] %v3261_v58  ;;  %v3264_v56 = vpop.f32.mrb[78].mxu1 }
 0x464   : > { %v3265_v23 = vadd.f32 %v3264_v56, %v2568_v33  ;;  %v3266_v3 = vpop.f32.mrb[79].mxu1 }
 0x465   : > { %v3267_v41 = vadd.f32 %v3266_v3, %v2568_v33  ;;  %v2613_v53 = vpop.permute.xlu1 %2612  ;;  %v2618_v25 = vpop.permute.xlu0 %2617 }
 0x466   : > { %3467 = vst [vmem:[%s6733_s30 + $0x390] sm:$0xff] %v3265_v23 }
 0x467   : > { %3468 = vst [vmem:[%s6733_s30 + $0x398] sm:$0xff] %v3267_v41  ;;  %v3270_v60 = vpop.f32.mrb[80].mxu1 }
 0x468   : > { %v3271_v18 = vadd.f32 %v3270_v60, %v2573_v45  ;;  %v3272_v26 = vpop.f32.mrb[81].mxu1 }
 0x469   : > { %v3273_v22 = vadd.f32 %v3272_v26, %v2573_v45  ;;  %v2623_v38 = vpop.permute.xlu1 %2622  ;;  %v2628_v30 = vpop.permute.xlu0 %2627 }
 0x46a   : > { %3469 = vst [vmem:[%s6733_s30 + $0x3a0] sm:$0xff] %v3271_v18 }
 0x46b   : > { %3470 = vst [vmem:[%s6733_s30 + $0x3a8] sm:$0xff] %v3273_v22  ;;  %v3276_v34 = vpop.f32.mrb[82].mxu1 }
 0x46c   : > { %v3277_v52 = vadd.f32 %v3276_v34, %v2578_v28  ;;  %v3278_v5 = vpop.f32.mrb[83].mxu1 }
 0x46d   : > { %v3279_v32 = vadd.f32 %v3278_v5, %v2578_v28  ;;  %v2633_v56 = vpop.permute.xlu1 %2632  ;;  %v2638_v60 = vpop.permute.xlu0 %2637 }
 0x46e   : > { %3471 = vst [vmem:[%s6733_s30 + $0x3b0] sm:$0xff] %v3277_v52 }
 0x46f   : > { %3472 = vst [vmem:[%s6733_s30 + $0x3b8] sm:$0xff] %v3279_v32  ;;  %v3282_v15 = vpop.f32.mrb[84].mxu1 }
 0x470   : > { %v3283_v1 = vadd.f32 %v3282_v15, %v2583_v37  ;;  %v3284_v16 = vpop.f32.mrb[85].mxu1 }
 0x471   : > { %v3285_v61 = vadd.f32 %v3284_v16, %v2583_v37 }
 0x472   : > { %3473 = vst [vmem:[%s6733_s30 + $0x3c0] sm:$0xff] %v3283_v1 }
 0x473   : > { %3474 = vst [vmem:[%s6733_s30 + $0x3c8] sm:$0xff] %v3285_v61  ;;  %v3288_v50 = vpop.f32.mrb[86].mxu1 }
 0x474   : > { %v3289_v63 = vadd.f32 %v3288_v50, %v2588_v54  ;;  %v3290_v0 = vpop.f32.mrb[87].mxu1 }
 0x475   : > { %v3291_v59 = vadd.f32 %v3290_v0, %v2588_v54 }
 0x476   : > { %3475 = vst [vmem:[%s6733_s30 + $0x3d0] sm:$0xff] %v3289_v63 }
 0x477   : > { %3476 = vst [vmem:[%s6733_s30 + $0x3d8] sm:$0xff] %v3291_v59  ;;  %v3294_v36 = vpop.f32.mrb[88].mxu1 }
 0x478   : > { %v3295_v9 = vadd.f32 %v3294_v36, %v2593_v7  ;;  %v3296_v13 = vpop.f32.mrb[89].mxu1 }
 0x479   : > { %v3297_v49 = vadd.f32 %v3296_v13, %v2593_v7 }
 0x47a   : > { %3477 = vst [vmem:[%s6733_s30 + $0x3e0] sm:$0xff] %v3295_v9 }
 0x47b   : > { %3478 = vst [vmem:[%s6733_s30 + $0x3e8] sm:$0xff] %v3297_v49  ;;  %v3300_v42 = vpop.f32.mrb[90].mxu1 }
 0x47c   : > { %v3301_v10 = vadd.f32 %v3300_v42, %v2598_v31  ;;  %v3302_v29 = vpop.f32.mrb[91].mxu1 }
 0x47d   : > { %v3303_v19 = vadd.f32 %v3302_v29, %v2598_v31 }
 0x47e   : > { %3479 = vst [vmem:[%s6733_s30 + $0x3f0] sm:$0xff] %v3301_v10 }
 0x47f   : > { %3480 = vst [vmem:[%s6733_s30 + $0x3f8] sm:$0xff] %v3303_v19  ;;  %v3306_v35 = vpop.f32.mrb[92].mxu1 }
 0x480   : > { %v3307_v39 = vadd.f32 %v3306_v35, %v2603_v6  ;;  %v3308_v12 = vpop.f32.mrb[93].mxu1 }
 0x481   : > { %v3309_v46 = vadd.f32 %v3308_v12, %v2603_v6 }
 0x482   : > { %3481 = vst [vmem:[%s6733_s30 + $0x400] sm:$0xff] %v3307_v39 }
 0x483   : > { %3482 = vst [vmem:[%s6733_s30 + $0x408] sm:$0xff] %v3309_v46  ;;  %v3312_v20 = vpop.f32.mrb[94].mxu1 }
 0x484   : > { %v3313_v24 = vadd.f32 %v3312_v20, %v2608_v40  ;;  %v3314_v55 = vpop.f32.mrb[95].mxu1 }
 0x485   : > { %v3315_v44 = vadd.f32 %v3314_v55, %v2608_v40 }
 0x486   : > { %3483 = vst [vmem:[%s6733_s30 + $0x410] sm:$0xff] %v3313_v24 }
 0x487   : > { %3484 = vst [vmem:[%s6733_s30 + $0x418] sm:$0xff] %v3315_v44  ;;  %v3318_v17 = vpop.f32.mrb[96].mxu1 }
 0x488   : > { %v3319_v43 = vadd.f32 %v3318_v17, %v2613_v53  ;;  %v3320_v11 = vpop.f32.mrb[97].mxu1 }
 0x489   : > { %v3321_v47 = vadd.f32 %v3320_v11, %v2613_v53 }
 0x48a   : > { %3485 = vst [vmem:[%s6733_s30 + $0x420] sm:$0xff] %v3319_v43 }
 0x48b   : > { %3486 = vst [vmem:[%s6733_s30 + $0x428] sm:$0xff] %v3321_v47  ;;  %v3324_v14 = vpop.f32.mrb[98].mxu1 }
 0x48c   : > { %v3325_v51 = vadd.f32 %v3324_v14, %v2618_v25  ;;  %v3326_v4 = vpop.f32.mrb[99].mxu1 }
 0x48d   : > { %v3327_v2 = vadd.f32 %v3326_v4, %v2618_v25 }
 0x48e   : > { %3487 = vst [vmem:[%s6733_s30 + $0x430] sm:$0xff] %v3325_v51 }
 0x48f   : > { %3488 = vst [vmem:[%s6733_s30 + $0x438] sm:$0xff] %v3327_v2  ;;  %v3330_v48 = vpop.f32.mrb[100].mxu1 }
 0x490   : > { %v3331_v57 = vadd.f32 %v3330_v48, %v2623_v38  ;;  %v3332_v62 = vpop.f32.mrb[101].mxu1 }
 0x491   : > { %v3333_v27 = vadd.f32 %v3332_v62, %v2623_v38 }
 0x492   : > { %3489 = vst [vmem:[%s6733_s30 + $0x440] sm:$0xff] %v3331_v57 }
 0x493   : > { %3490 = vst [vmem:[%s6733_s30 + $0x448] sm:$0xff] %v3333_v27  ;;  %v3336_v8 = vpop.f32.mrb[102].mxu1 }
 0x494   : > { %v3337_v21 = vadd.f32 %v3336_v8, %v2628_v30  ;;  %v3338_v58 = vpop.f32.mrb[103].mxu1 }
 0x495   : > { %v3339_v33 = vadd.f32 %v3338_v58, %v2628_v30 }
 0x496   : > { %3491 = vst [vmem:[%s6733_s30 + $0x450] sm:$0xff] %v3337_v21 }
 0x497   : > { %3492 = vst [vmem:[%s6733_s30 + $0x458] sm:$0xff] %v3339_v33  ;;  %v3342_v23 = vpop.f32.mrb[104].mxu1 }
 0x498   : > { %v3343_v3 = vadd.f32 %v3342_v23, %v2633_v56  ;;  %v3344_v41 = vpop.f32.mrb[105].mxu1 }
 0x499   : > { %v3345_v45 = vadd.f32 %v3344_v41, %v2633_v56 }
 0x49a   : > { %3493 = vst [vmem:[%s6733_s30 + $0x460] sm:$0xff] %v3343_v3 }
 0x49b   : > { %3494 = vst [vmem:[%s6733_s30 + $0x468] sm:$0xff] %v3345_v45  ;;  %v3348_v18 = vpop.f32.mrb[106].mxu1 }
 0x49c   : > { %v3349_v26 = vadd.f32 %v3348_v18, %v2638_v60  ;;  %v3350_v22 = vpop.f32.mrb[107].mxu1 }
 0x49d   : > { %v3351_v28 = vadd.f32 %v3350_v22, %v2638_v60 }
 0x49e   : > { %3495 = vst [vmem:[%s6733_s30 + $0x470] sm:$0xff] %v3349_v26 }
 0x49f   : > { %3496 = vst [vmem:[%s6733_s30 + $0x478] sm:$0xff] %v3351_v28 }
 0x4a0 PF: > { %s15_s18 = sadd.s32 1, %s4023_s18  }
 0x4a1   : > { %p12_p4 = scmp.ge.s32.totalorder %s15_s18, 4  }
 0x4a3   :  { %14 = sbr.rel (!%p12_p4) target bundleno = 1 (0x1), region = 70 }

</bundles_post_ra>
